<compile_context>
chip_gen: v5e
topology: v5e:2x2
jax: 0.10.0
libtpu: 0.0.40
codegen_flags: <defaults>
</compile_context>

<pallas_src>
import numpy as np
import jax
import jax.numpy as jnp
from jax.experimental import pallas as pl
from jax.experimental.pallas import tpu as pltpu


# ---------------------------------------------------------------------------
# Kernel
# ---------------------------------------------------------------------------
def object_attention_kernel(
    x_ref, proxy_ref,                       # (1, C, TQ) / (1, C, M)  (native dtype)
    wp1_ref, bp1_ref, wp2_ref, bp2_ref,     # f_pixel (transposed, K-padded; attn scale folded into wp2/bp2)
    wprox_ref, bprox_ref,                   # packed [f_object layer-1 ; f_down] : (2*K_pad, C)
    wo2_ref, bo2_ref,                       # f_object layer-2
    wu_ref, bu_ref,                         # f_up
    out_ref,                                # (1, C, TQ) f32
):
    k_pad = wo2_ref.shape[0]

    # ---- proxy path: key / value for this batch element ----------------------
    # Recomputed per pixel tile: M is tiny so this is <1% of the tile's MXU
    # work, and it lets both grid axes be "parallel" with no scratch state.
    p = proxy_ref[0].astype(jnp.bfloat16)                                # (C, M)
    pp = jnp.dot(wprox_ref[...], p, preferred_element_type=jnp.float32)
    pp = jnp.maximum(pp + bprox_ref[...], 0.0)                           # (2*K_pad, M)
    ko1 = pp[:k_pad].astype(jnp.bfloat16)                                # f_object layer-1 out^T
    v_t = pp[k_pad:].astype(jnp.bfloat16)                                # value^T : (K_pad, M)
    k2 = jnp.dot(wo2_ref[...], ko1, preferred_element_type=jnp.float32)
    k2 = jnp.maximum(k2 + bo2_ref[...], 0.0)                             # key^T : (K_pad, M)
    key = k2.T.astype(jnp.bfloat16)                                      # key   : (M, K_pad)

    # ---- pixel path: query^T for this tile (lane axis = pixels) --------------
    x = x_ref[0].astype(jnp.bfloat16)                                    # (C, TQ)
    q = jnp.dot(wp1_ref[...], x, preferred_element_type=jnp.float32)     # (K_pad, TQ)
    q = jnp.maximum(q + bp1_ref[...], 0.0).astype(jnp.bfloat16)
    q = jnp.dot(wp2_ref[...], q, preferred_element_type=jnp.float32)     # attn scale already folded in
    q = jnp.maximum(q + bp2_ref[...], 0.0).astype(jnp.bfloat16)          # (K_pad, TQ)

    # ---- attention: softmax over the (small) proxy axis ----------------------
    sim = jnp.dot(key, q, preferred_element_type=jnp.float32)            # (M, TQ)
    sim = sim - jnp.max(sim, axis=0, keepdims=True)
    sim = jnp.exp(sim)
    sim = sim * pl.reciprocal(jnp.sum(sim, axis=0, keepdims=True), approx=True)

    ctx = jnp.dot(v_t, sim.astype(jnp.bfloat16),
                  preferred_element_type=jnp.float32)                    # (K_pad, TQ)

    # ---- f_up ----------------------------------------------------------------
    out = jnp.dot(wu_ref[...], ctx.astype(jnp.bfloat16),
                  preferred_element_type=jnp.float32)                    # (C, TQ)
    out_ref[0] = jnp.maximum(out + bu_ref[...], 0.0).astype(out_ref.dtype)


# ---------------------------------------------------------------------------
# Parameter preparation (transpose / pad / pack / fold scale / cast to bf16)
# ---------------------------------------------------------------------------
def _pad_to(a, shape):
    out = jnp.zeros(shape, a.dtype)
    return out.at[tuple(slice(0, s) for s in a.shape)].set(a)


def _prepare_kernel_params(params, key_channels, lane=128):
    (wp1, bp1, wp2, bp2, wo1, bo1, wo2, bo2, wd, bd, wu, bu) = params
    C = wp1.shape[0]
    K = key_channels
    assert wp1.shape[1] == K
    K_pad = ((K + lane - 1) // lane) * lane
    scale = float(K) ** -0.5   # folded into f_pixel layer-2 (ReLU commutes with a positive scale)

    wp1T = _pad_to(wp1.T, (K_pad, C))
    bp1T = _pad_to(bp1.T, (K_pad, 1))
    wp2T = _pad_to(wp2.T * scale, (K_pad, K_pad))
    bp2T = _pad_to(bp2.T * scale, (K_pad, 1))

    wo1T = _pad_to(wo1.T, (K_pad, C))
    bo1T = _pad_to(bo1.T, (K_pad, 1))
    wdT = _pad_to(wd.T, (K_pad, C))
    bdT = _pad_to(bd.T, (K_pad, 1))
    wprox = jnp.concatenate([wo1T, wdT], axis=0)          # (2*K_pad, C)
    bprox = jnp.concatenate([bo1T, bdT], axis=0)          # (2*K_pad, 1)

    wo2T = _pad_to(wo2.T, (K_pad, K_pad))
    bo2T = _pad_to(bo2.T, (K_pad, 1))

    wuT = _pad_to(wu.T, (C, K_pad))
    buT = bu.T                                            # (C, 1)

    bf16 = jnp.bfloat16
    return (wp1T.astype(bf16), bp1T, wp2T.astype(bf16), bp2T,
            wprox.astype(bf16), bprox, wo2T.astype(bf16), bo2T,
            wuT.astype(bf16), buT, K_pad)


def _pick_pixel_tile(HW, C, K_pad, M, budget=24 * 1024 * 1024):
    """Largest lane-aligned pixel tile whose VMEM footprint fits the budget."""
    for cand in (2048, 1024, 512, 256, 128):
        if HW % cand:
            continue
        io = 2 * (C * cand * 4) + 2 * (C * cand * 4)          # double-buffered x + out tiles
        live = (3 * K_pad + M + C) * cand * 4                  # f32/bf16 body intermediates (upper bound)
        wts = 2 * (4 * K_pad * C * 2 + 2 * K_pad * K_pad * 2   # bf16 weights (double-buffered)
                   + 6 * K_pad * 4 + C * 4)                    # f32 biases
        if io + live + wts <= budget:
            return cand
    return HW   # fallback: full image as one (possibly unaligned) tile


# ---------------------------------------------------------------------------
# Wrapper
# ---------------------------------------------------------------------------
def object_attention_block(x_nchw, proxy_nchw, params, *, key_channels):
    """x_nchw: (B, C, H, W), proxy_nchw: (B, C, M, 1). Returns (B, C, H, W) f32."""
    B, C, H, W = x_nchw.shape
    M = proxy_nchw.shape[2]
    HW = H * W

    (wp1T, bp1T, wp2T, bp2T, wprox, bprox, wo2T, bo2T, wuT, buT, K_pad) = \
        _prepare_kernel_params(params, key_channels)

    # NCHW -> (B, C, HW): pure reshape, no HBM transpose, no dtype-cast pass
    # (the kernel casts to bf16 in-register).
    x = x_nchw.reshape(B, C, HW)
    pr = proxy_nchw.reshape(B, C, M)

    TQ = _pick_pixel_tile(HW, C, K_pad, M)
    n_q = HW // TQ

    def const_spec(arr):
        nd = arr.ndim
        return pl.BlockSpec(arr.shape, lambda b, q, _nd=nd: (0,) * _nd)

    in_specs = [
        pl.BlockSpec((1, C, TQ), lambda b, q: (b, 0, q)),   # x tile
        pl.BlockSpec((1, C, M), lambda b, q: (b, 0, 0)),    # proxy (re-fetched only when b changes)
        const_spec(wp1T), const_spec(bp1T), const_spec(wp2T), const_spec(bp2T),
        const_spec(wprox), const_spec(bprox), const_spec(wo2T), const_spec(bo2T),
        const_spec(wuT), const_spec(buT),
    ]

    out = pl.pallas_call(
        object_attention_kernel,
        out_shape=jax.ShapeDtypeStruct((B, C, HW), jnp.float32),
        grid_spec=pltpu.PrefetchScalarGridSpec(
            num_scalar_prefetch=0,
            grid=(B, n_q),
            in_specs=in_specs,
            out_specs=pl.BlockSpec((1, C, TQ), lambda b, q: (b, 0, q)),
        ),
        compiler_params=pltpu.CompilerParams(
            # No cross-iteration state (proxy path recomputed per tile), so
            # both axes are megacore-shardable.
            dimension_semantics=("parallel", "parallel"),
            vmem_limit_bytes=32 * 1024 * 1024,
        ),
    )(x, pr, wp1T, bp1T, wp2T, bp2T, wprox, bprox, wo2T, bo2T, wuT, buT)

    return out.reshape(B, C, H, W)


# ---------------------------------------------------------------------------
# Parameter construction: 1x1 Conv(no bias) + BatchNorm(eval) + ReLU folded
# into effective (C_in, C_out) weight + (1, C_out) bias.
# ---------------------------------------------------------------------------
def _make_fused_convbn(key, c_in, c_out, eps=1e-5):
    kw, kg, kb, km, kv = jax.random.split(key, 5)
    w = 0.1 * jax.random.normal(kw, (c_out, c_in), dtype=jnp.float32)
    gamma = 1.0 + 0.1 * jax.random.normal(kg, (c_out,), dtype=jnp.float32)
    beta = 0.05 * jax.random.normal(kb, (c_out,), dtype=jnp.float32)
    mean = 0.02 * jax.random.normal(km, (c_out,), dtype=jnp.float32)
    var = 1.0 + 0.1 * jax.random.uniform(kv, (c_out,), dtype=jnp.float32)
    scale = gamma / jnp.sqrt(var + eps)
    w_eff = (w * scale[:, None]).T                            # (c_in, c_out)
    b_eff = (beta - mean * scale)[None, :]                    # (1, c_out)
    return w_eff, b_eff


def _reference(x_nchw, proxy_nchw, params, key_channels):
    """Pure-JAX f32 reference of the PyTorch forward (scale=1, BN folded)."""
    (wp1, bp1, wp2, bp2, wo1, bo1, wo2, bo2, wd, bd, wu, bu) = params
    B, C, H, W = x_nchw.shape
    M = proxy_nchw.shape[2]
    with jax.default_matmul_precision("float32"):
        x = jnp.transpose(x_nchw.reshape(B, C, H * W), (0, 2, 1))
        p = jnp.transpose(proxy_nchw.reshape(B, C, M), (0, 2, 1))
        relu = lambda a: jnp.maximum(a, 0.0)
        q = relu(relu(x @ wp1 + bp1) @ wp2 + bp2)                 # (B, HW, K)
        k = relu(relu(p @ wo1 + bo1) @ wo2 + bo2)                 # (B, M, K)
        v = relu(p @ wd + bd)                                     # (B, M, K)
        sim = jnp.einsum("bqc,bmc->bqm", q, k) * (float(key_channels) ** -0.5)
        sim = jax.nn.softmax(sim, axis=-1)
        ctx = jnp.einsum("bqm,bmc->bqc", sim, v)
        out = relu(ctx @ wu + bu)                                 # (B, HW, C)
        return jnp.transpose(out, (0, 2, 1)).reshape(B, C, H, W)


if __name__ == "__main__":
    # in_channels=32, key_channels=16, 32x32 image (HW=1024 -> one 1024-pixel tile), 8 object regions
    B, C, K, H, W, M = 2, 32, 16, 32, 32, 8

    root = jax.random.PRNGKey(0)
    kx, kp, k1, k2, k3, k4, k5, k6 = jax.random.split(root, 8)

    x = jax.random.normal(kx, (B, C, H, W), dtype=jnp.float32)
    proxy = jax.random.normal(kp, (B, C, M, 1), dtype=jnp.float32)
    # Quantize inputs to the bf16 grid so kernel/reference differences reflect
    # only the bf16 matmul precision.
    x = x.astype(jnp.bfloat16).astype(jnp.float32)
    proxy = proxy.astype(jnp.bfloat16).astype(jnp.float32)

    wp1, bp1 = _make_fused_convbn(k1, C, K)   # f_pixel[0]
    wp2, bp2 = _make_fused_convbn(k2, K, K)   # f_pixel[1]
    wo1, bo1 = _make_fused_convbn(k3, C, K)   # f_object[0]
    wo2, bo2 = _make_fused_convbn(k4, K, K)   # f_object[1]
    wd, bd = _make_fused_convbn(k5, C, K)     # f_down
    wu, bu = _make_fused_convbn(k6, K, C)     # f_up
    params = (wp1, bp1, wp2, bp2, wo1, bo1, wo2, bo2, wd, bd, wu, bu)

    out = object_attention_block(x, proxy, params, key_channels=K)
    out = jax.block_until_ready(out)

    ref = jax.block_until_ready(_reference(x, proxy, params, K))
    assert out.shape == (B, C, H, W)
    # bf16 MXU operands + approx softmax reciprocal -> looser tolerance than pure f32.
    np.testing.assert_allclose(np.asarray(out), np.asarray(ref), rtol=5e-2, atol=5e-2)

    print("KERNEL_OK")
</pallas_src>

<mosaic_0001>
module attributes {stable_mosaic.version = 11 : i64} {
  func.func @object_attention_kernel(%arg0: i32, %arg1: i32, %arg2: memref<1x32x1024xf32, #tpu.memory_space<vmem>>, %arg3: memref<1x32x8xf32, #tpu.memory_space<vmem>>, %arg4: memref<128x32xbf16, #tpu.memory_space<vmem>>, %arg5: memref<128x1xf32, #tpu.memory_space<vmem>>, %arg6: memref<128x128xbf16, #tpu.memory_space<vmem>>, %arg7: memref<128x1xf32, #tpu.memory_space<vmem>>, %arg8: memref<256x32xbf16, #tpu.memory_space<vmem>>, %arg9: memref<256x1xf32, #tpu.memory_space<vmem>>, %arg10: memref<128x128xbf16, #tpu.memory_space<vmem>>, %arg11: memref<128x1xf32, #tpu.memory_space<vmem>>, %arg12: memref<32x128xbf16, #tpu.memory_space<vmem>>, %arg13: memref<32x1xf32, #tpu.memory_space<vmem>>, %arg14: memref<1x32x1024xf32, #tpu.memory_space<vmem>>) attributes {dimension_semantics = [#tpu.dimension_semantics<parallel>, #tpu.dimension_semantics<parallel>], iteration_bounds = array<i64: 2, 1>, scalar_prefetch = 0 : i64, scratch_operands = 0 : i64, tpu.core_type = #tpu.core_type<tc>, window_params = [{transform_indices = @transform_0, window_bounds = array<i64: 1, 32, 1024>}, {transform_indices = @transform_1, window_bounds = array<i64: 1, 32, 8>}, {pipeline_mode = #tpu.pipeline_mode<synchronous>, transform_indices = @transform_2, window_bounds = array<i64: 128, 32>}, {pipeline_mode = #tpu.pipeline_mode<synchronous>, transform_indices = @transform_3, window_bounds = array<i64: 128, 1>}, {pipeline_mode = #tpu.pipeline_mode<synchronous>, transform_indices = @transform_4, window_bounds = array<i64: 128, 128>}, {pipeline_mode = #tpu.pipeline_mode<synchronous>, transform_indices = @transform_5, window_bounds = array<i64: 128, 1>}, {pipeline_mode = #tpu.pipeline_mode<synchronous>, transform_indices = @transform_6, window_bounds = array<i64: 256, 32>}, {pipeline_mode = #tpu.pipeline_mode<synchronous>, transform_indices = @transform_7, window_bounds = array<i64: 256, 1>}, {pipeline_mode = #tpu.pipeline_mode<synchronous>, transform_indices = @transform_8, window_bounds = array<i64: 128, 128>}, {pipeline_mode = #tpu.pipeline_mode<synchronous>, transform_indices = @transform_9, window_bounds = array<i64: 128, 1>}, {pipeline_mode = #tpu.pipeline_mode<synchronous>, transform_indices = @transform_10, window_bounds = array<i64: 32, 128>}, {pipeline_mode = #tpu.pipeline_mode<synchronous>, transform_indices = @transform_11, window_bounds = array<i64: 32, 1>}, {transform_indices = @transform_12, window_bounds = array<i64: 1, 32, 1024>}]} {
    %c0 = arith.constant 0 : index
    %c0_0 = arith.constant 0 : index
    %c0_1 = arith.constant 0 : index
    %0 = vector.load %arg3[%c0, %c0_0, %c0_1] : memref<1x32x8xf32, #tpu.memory_space<vmem>>, vector<1x32x8xf32>
    %1 = vector.shape_cast %0 : vector<1x32x8xf32> to vector<32x8xf32>
    %2 = arith.truncf %1 : vector<32x8xf32> to vector<32x8xbf16>
    %c0_2 = arith.constant 0 : index
    %c0_3 = arith.constant 0 : index
    %3 = vector.load %arg8[%c0_2, %c0_3] : memref<256x32xbf16, #tpu.memory_space<vmem>>, vector<256x32xbf16>
    %cst = arith.constant dense<0.000000e+00> : vector<256x8xf32>
    %4 = tpu.matmul %3, %2, %cst {dimension_numbers = #tpu.dot_dimension_numbers<[1], [0], [0], [1], [0, 0, 1, 1], [], []>} : vector<256x32xbf16>, vector<32x8xbf16>, vector<256x8xf32> -> vector<256x8xf32>
    %c0_4 = arith.constant 0 : index
    %c0_5 = arith.constant 0 : index
    %5 = vector.load %arg9[%c0_4, %c0_5] : memref<256x1xf32, #tpu.memory_space<vmem>>, vector<256x1xf32>
    %6 = vector.broadcast %5 : vector<256x1xf32> to vector<256x8xf32>
    %7 = arith.addf %4, %6 : vector<256x8xf32>
    %cst_6 = arith.constant 0.000000e+00 : f32
    %8 = vector.broadcast %cst_6 : f32 to vector<256x8xf32>
    %9 = arith.maximumf %7, %8 : vector<256x8xf32>
    %10 = vector.extract_strided_slice %9 {offsets = [0, 0], sizes = [128, 8], strides = [1, 1]} : vector<256x8xf32> to vector<128x8xf32>
    %11 = arith.truncf %10 : vector<128x8xf32> to vector<128x8xbf16>
    %12 = vector.extract_strided_slice %9 {offsets = [128, 0], sizes = [128, 8], strides = [1, 1]} : vector<256x8xf32> to vector<128x8xf32>
    %13 = arith.truncf %12 : vector<128x8xf32> to vector<128x8xbf16>
    %c0_7 = arith.constant 0 : index
    %c0_8 = arith.constant 0 : index
    %14 = vector.load %arg10[%c0_7, %c0_8] : memref<128x128xbf16, #tpu.memory_space<vmem>>, vector<128x128xbf16>
    %cst_9 = arith.constant dense<0.000000e+00> : vector<128x8xf32>
    %15 = tpu.matmul %14, %11, %cst_9 {dimension_numbers = #tpu.dot_dimension_numbers<[1], [0], [0], [1], [0, 0, 1, 1], [], []>} : vector<128x128xbf16>, vector<128x8xbf16>, vector<128x8xf32> -> vector<128x8xf32>
    %c0_10 = arith.constant 0 : index
    %c0_11 = arith.constant 0 : index
    %16 = vector.load %arg11[%c0_10, %c0_11] : memref<128x1xf32, #tpu.memory_space<vmem>>, vector<128x1xf32>
    %17 = vector.broadcast %16 : vector<128x1xf32> to vector<128x8xf32>
    %18 = arith.addf %15, %17 : vector<128x8xf32>
    %cst_12 = arith.constant 0.000000e+00 : f32
    %19 = vector.broadcast %cst_12 : f32 to vector<128x8xf32>
    %20 = arith.maximumf %18, %19 : vector<128x8xf32>
    %21 = tpu.transpose %20, [1, 0] : vector<128x8xf32> -> vector<8x128xf32>
    %22 = arith.truncf %21 : vector<8x128xf32> to vector<8x128xbf16>
    %c0_13 = arith.constant 0 : index
    %c0_14 = arith.constant 0 : index
    %c0_15 = arith.constant 0 : index
    %23 = vector.load %arg2[%c0_13, %c0_14, %c0_15] : memref<1x32x1024xf32, #tpu.memory_space<vmem>>, vector<1x32x1024xf32>
    %24 = vector.shape_cast %23 : vector<1x32x1024xf32> to vector<32x1024xf32>
    %25 = arith.truncf %24 : vector<32x1024xf32> to vector<32x1024xbf16>
    %c0_16 = arith.constant 0 : index
    %c0_17 = arith.constant 0 : index
    %26 = vector.load %arg4[%c0_16, %c0_17] : memref<128x32xbf16, #tpu.memory_space<vmem>>, vector<128x32xbf16>
    %cst_18 = arith.constant dense<0.000000e+00> : vector<128x1024xf32>
    %27 = tpu.matmul %26, %25, %cst_18 {dimension_numbers = #tpu.dot_dimension_numbers<[1], [0], [0], [1], [0, 0, 1, 1], [], []>} : vector<128x32xbf16>, vector<32x1024xbf16>, vector<128x1024xf32> -> vector<128x1024xf32>
    %c0_19 = arith.constant 0 : index
    %c0_20 = arith.constant 0 : index
    %28 = vector.load %arg5[%c0_19, %c0_20] : memref<128x1xf32, #tpu.memory_space<vmem>>, vector<128x1xf32>
    %29 = vector.broadcast %28 : vector<128x1xf32> to vector<128x1024xf32>
    %30 = arith.addf %27, %29 : vector<128x1024xf32>
    %cst_21 = arith.constant 0.000000e+00 : f32
    %31 = vector.broadcast %cst_21 : f32 to vector<128x1024xf32>
    %32 = arith.maximumf %30, %31 : vector<128x1024xf32>
    %33 = arith.truncf %32 : vector<128x1024xf32> to vector<128x1024xbf16>
    %c0_22 = arith.constant 0 : index
    %c0_23 = arith.constant 0 : index
    %34 = vector.load %arg6[%c0_22, %c0_23] : memref<128x128xbf16, #tpu.memory_space<vmem>>, vector<128x128xbf16>
    %cst_24 = arith.constant dense<0.000000e+00> : vector<128x1024xf32>
    %35 = tpu.matmul %34, %33, %cst_24 {dimension_numbers = #tpu.dot_dimension_numbers<[1], [0], [0], [1], [0, 0, 1, 1], [], []>} : vector<128x128xbf16>, vector<128x1024xbf16>, vector<128x1024xf32> -> vector<128x1024xf32>
    %c0_25 = arith.constant 0 : index
    %c0_26 = arith.constant 0 : index
    %36 = vector.load %arg7[%c0_25, %c0_26] : memref<128x1xf32, #tpu.memory_space<vmem>>, vector<128x1xf32>
    %37 = vector.broadcast %36 : vector<128x1xf32> to vector<128x1024xf32>
    %38 = arith.addf %35, %37 : vector<128x1024xf32>
    %cst_27 = arith.constant 0.000000e+00 : f32
    %39 = vector.broadcast %cst_27 : f32 to vector<128x1024xf32>
    %40 = arith.maximumf %38, %39 : vector<128x1024xf32>
    %41 = arith.truncf %40 : vector<128x1024xf32> to vector<128x1024xbf16>
    %cst_28 = arith.constant dense<0.000000e+00> : vector<8x1024xf32>
    %42 = tpu.matmul %22, %41, %cst_28 {dimension_numbers = #tpu.dot_dimension_numbers<[1], [0], [0], [1], [0, 0, 1, 1], [], []>} : vector<8x128xbf16>, vector<128x1024xbf16>, vector<8x1024xf32> -> vector<8x1024xf32>
    %cst_29 = arith.constant dense<0xFF800000> : vector<1024xf32>
    %43 = vector.multi_reduction <maximumf>, %42, %cst_29 [0] : vector<8x1024xf32> to vector<1024xf32>
    %44 = vector.shape_cast %43 : vector<1024xf32> to vector<1x1024xf32>
    %45 = vector.broadcast %44 : vector<1x1024xf32> to vector<8x1024xf32>
    %46 = arith.subf %42, %45 : vector<8x1024xf32>
    %47 = math.exp %46 : vector<8x1024xf32>
    %cst_30 = arith.constant dense<0.000000e+00> : vector<1024xf32>
    %48 = vector.multi_reduction <add>, %47, %cst_30 [0] : vector<8x1024xf32> to vector<1024xf32>
    %49 = vector.shape_cast %48 : vector<1024xf32> to vector<1x1024xf32>
    %50 = tpu.reciprocal %49 {approx = true} : vector<1x1024xf32> -> vector<1x1024xf32>
    %51 = vector.broadcast %50 : vector<1x1024xf32> to vector<8x1024xf32>
    %52 = arith.mulf %47, %51 : vector<8x1024xf32>
    %53 = arith.truncf %52 : vector<8x1024xf32> to vector<8x1024xbf16>
    %cst_31 = arith.constant dense<0.000000e+00> : vector<128x1024xf32>
    %54 = tpu.matmul %13, %53, %cst_31 {dimension_numbers = #tpu.dot_dimension_numbers<[1], [0], [0], [1], [0, 0, 1, 1], [], []>} : vector<128x8xbf16>, vector<8x1024xbf16>, vector<128x1024xf32> -> vector<128x1024xf32>
    %c0_32 = arith.constant 0 : index
    %c0_33 = arith.constant 0 : index
    %55 = vector.load %arg12[%c0_32, %c0_33] : memref<32x128xbf16, #tpu.memory_space<vmem>>, vector<32x128xbf16>
    %56 = arith.truncf %54 : vector<128x1024xf32> to vector<128x1024xbf16>
    %cst_34 = arith.constant dense<0.000000e+00> : vector<32x1024xf32>
    %57 = tpu.matmul %55, %56, %cst_34 {dimension_numbers = #tpu.dot_dimension_numbers<[1], [0], [0], [1], [0, 0, 1, 1], [], []>} : vector<32x128xbf16>, vector<128x1024xbf16>, vector<32x1024xf32> -> vector<32x1024xf32>
    %c0_35 = arith.constant 0 : index
    %c0_36 = arith.constant 0 : index
    %58 = vector.load %arg13[%c0_35, %c0_36] : memref<32x1xf32, #tpu.memory_space<vmem>>, vector<32x1xf32>
    %59 = vector.broadcast %58 : vector<32x1xf32> to vector<32x1024xf32>
    %60 = arith.addf %57, %59 : vector<32x1024xf32>
    %cst_37 = arith.constant 0.000000e+00 : f32
    %61 = vector.broadcast %cst_37 : f32 to vector<32x1024xf32>
    %62 = arith.maximumf %60, %61 : vector<32x1024xf32>
    %c0_38 = arith.constant 0 : index
    %c0_39 = arith.constant 0 : index
    %c0_40 = arith.constant 0 : index
    %63 = vector.load %arg14[%c0_38, %c0_39, %c0_40] : memref<1x32x1024xf32, #tpu.memory_space<vmem>>, vector<1x32x1024xf32>
    %64 = vector.shape_cast %63 : vector<1x32x1024xf32> to vector<32x1024xf32>
    %65 = vector.shape_cast %62 : vector<32x1024xf32> to vector<1x32x1024xf32>
    tpu.vector_store %arg14[%c0_38, %c0_39, %c0_40], %65 {strides = array<i32>} : memref<1x32x1024xf32, #tpu.memory_space<vmem>>, vector<1x32x1024xf32>,
    return
  }
  func.func @transform_0(%arg0: i32, %arg1: i32) -> (i32, i32, i32) {
    %c0_i32 = arith.constant 0 : i32
    %c0_i32_0 = arith.constant 0 : i32
    return %arg0, %c0_i32, %arg1 : i32, i32, i32
  }
  func.func @transform_1(%arg0: i32, %arg1: i32) -> (i32, i32, i32) {
    %c0_i32 = arith.constant 0 : i32
    %c0_i32_0 = arith.constant 0 : i32
    %c0_i32_1 = arith.constant 0 : i32
    return %arg0, %c0_i32, %c0_i32_0 : i32, i32, i32
  }
  func.func @transform_2(%arg0: i32, %arg1: i32) -> (i32, i32) {
    %c0_i32 = arith.constant 0 : i32
    %c0_i32_0 = arith.constant 0 : i32
    %c0_i32_1 = arith.constant 0 : i32
    return %c0_i32, %c0_i32_0 : i32, i32
  }
  func.func @transform_3(%arg0: i32, %arg1: i32) -> (i32, i32) {
    %c0_i32 = arith.constant 0 : i32
    %c0_i32_0 = arith.constant 0 : i32
    %c0_i32_1 = arith.constant 0 : i32
    return %c0_i32, %c0_i32_0 : i32, i32
  }
  func.func @transform_4(%arg0: i32, %arg1: i32) -> (i32, i32) {
    %c0_i32 = arith.constant 0 : i32
    %c0_i32_0 = arith.constant 0 : i32
    %c0_i32_1 = arith.constant 0 : i32
    return %c0_i32, %c0_i32_0 : i32, i32
  }
  func.func @transform_5(%arg0: i32, %arg1: i32) -> (i32, i32) {
    %c0_i32 = arith.constant 0 : i32
    %c0_i32_0 = arith.constant 0 : i32
    %c0_i32_1 = arith.constant 0 : i32
    return %c0_i32, %c0_i32_0 : i32, i32
  }
  func.func @transform_6(%arg0: i32, %arg1: i32) -> (i32, i32) {
    %c0_i32 = arith.constant 0 : i32
    %c0_i32_0 = arith.constant 0 : i32
    %c0_i32_1 = arith.constant 0 : i32
    return %c0_i32, %c0_i32_0 : i32, i32
  }
  func.func @transform_7(%arg0: i32, %arg1: i32) -> (i32, i32) {
    %c0_i32 = arith.constant 0 : i32
    %c0_i32_0 = arith.constant 0 : i32
    %c0_i32_1 = arith.constant 0 : i32
    return %c0_i32, %c0_i32_0 : i32, i32
  }
  func.func @transform_8(%arg0: i32, %arg1: i32) -> (i32, i32) {
    %c0_i32 = arith.constant 0 : i32
    %c0_i32_0 = arith.constant 0 : i32
    %c0_i32_1 = arith.constant 0 : i32
    return %c0_i32, %c0_i32_0 : i32, i32
  }
  func.func @transform_9(%arg0: i32, %arg1: i32) -> (i32, i32) {
    %c0_i32 = arith.constant 0 : i32
    %c0_i32_0 = arith.constant 0 : i32
    %c0_i32_1 = arith.constant 0 : i32
    return %c0_i32, %c0_i32_0 : i32, i32
  }
  func.func @transform_10(%arg0: i32, %arg1: i32) -> (i32, i32) {
    %c0_i32 = arith.constant 0 : i32
    %c0_i32_0 = arith.constant 0 : i32
    %c0_i32_1 = arith.constant 0 : i32
    return %c0_i32, %c0_i32_0 : i32, i32
  }
  func.func @transform_11(%arg0: i32, %arg1: i32) -> (i32, i32) {
    %c0_i32 = arith.constant 0 : i32
    %c0_i32_0 = arith.constant 0 : i32
    %c0_i32_1 = arith.constant 0 : i32
    return %c0_i32, %c0_i32_0 : i32, i32
  }
  func.func @transform_12(%arg0: i32, %arg1: i32) -> (i32, i32, i32) {
    %c0_i32 = arith.constant 0 : i32
    %c0_i32_0 = arith.constant 0 : i32
    return %arg0, %c0_i32, %arg1 : i32, i32, i32
  }
}

</mosaic_0001>

<bundles_post_ra>
// kernel: tpu_custom_call.1
= control target key start
LH: loop header
LB: loop body
LE: loop exit
PB: predicated region body
PF: predicated region fallthrough
CT: control target
= control target key end

     0   :  { %s6945_s0 = inlined_call_operand.hbm [shape: f32[2,32,1024], index: 0, kind: input, shape index: {}]   ;;  %s6946_s1 = inlined_call_operand.vmem [shape: f32[2,32,8], index: 1, kind: input, shape index: {}]   ;;  %s6947_s2 = inlined_call_operand.vmem [shape: bf16[128,32], index: 2, kind: input, shape index: {}]   ;;  %s6948_s3 = inlined_call_operand.vmem [shape: f32[128,1], index: 3, kind: input, shape index: {}]   ;;  %s6949_s4 = inlined_call_operand.vmem [shape: bf16[128,128], index: 4, kind: input, shape index: {}]   ;;  %s6950_s5 = inlined_call_operand.vmem [shape: f32[128,1], index: 5, kind: input, shape index: {}]   ;;  %s6951_s6 = inlined_call_operand.vmem [shape: bf16[256,32], index: 6, kind: input, shape index: {}]   ;;  %s6952_s7 = inlined_call_operand.vmem [shape: f32[256,1], index: 7, kind: input, shape index: {}]   ;;  %s6953_s8 = inlined_call_operand.vmem [shape: bf16[128,128], index: 8, kind: input, shape index: {}]   ;;  %s6954_s9 = inlined_call_operand.vmem [shape: f32[128,1], index: 9, kind: input, shape index: {}]   ;;  %s6955_s10 = inlined_call_operand.vmem [shape: bf16[32,128], index: 10, kind: input, shape index: {}]   ;;  %s6956_s11 = inlined_call_operand.vmem [shape: f32[32,1], index: 11, kind: input, shape index: {}]   ;;  %s6957_s12 = inlined_call_operand.hbm [shape: f32[2,32,1024], index: 12, kind: output, shape index: {}]  }
   0x1   :  { %6998 = sst [smem:[#allocation81_spill]] %s6945_s0 }
   0x2   :  { %6999 = sst [smem:[#allocation82_spill]] %s6955_s10 }
   0x3   :  { %7000 = sst [smem:[#allocation83_spill]] %s6957_s12 }
   0x4   :  { %17 = vsyncpa [#allocation3], 0 }
   0x5   :  { %19 = vsyncpa [#allocation3 + $0x1], 0 }
   0x6   :  { %20 = vsyncpa [#allocation4], 0 }
   0x7   :  { %22 = vsyncpa [#allocation4 + $0x1], 0  ;;  %s4584_s21 = smov 0   ;;  %s4586_s22 = smov 0  }
   0x8   :  { %s4588_s23 = smov 0   ;;  %s4590_s24 = smov 0  }
   0x9   :  { %s4592_s25 = smov 0   ;;  %s4594_s26 = smov 0  }
   0xa LB: > { %7001 = sst [smem:[#allocation8_spill]] %s4492_s21  ;;  %s3908_s27 = sadd.s32 4294967295, %s4512_s26   ;;  %s4512_s26 = sphi %s4594_s26, %s28_s26   ;;  %s4508_s25 = sphi %s4592_s25, %s7215_s25   ;;  %s4504_s24 = sphi %s4590_s24, %s7214_s24   ;;  %s4500_s23 = sphi %s4588_s23, %s7218_s23   ;;  %s4496_s22 = sphi %s4586_s22, %s7217_s22   ;;  %s4492_s21 = sphi %s4584_s21, %s7216_s21  }
   0xb   : > { %7002 = sst [smem:[#allocation9_spill]] %s4508_s25  ;;  %s3909_s28 = sadd.s32 4294967294, %s4512_s26  }
   0xc   : > { %s40_s29 = sadd.s32 1, %s4508_s25  ;;  %s49_s30 = sadd.s32 1, %s4500_s23 }
   0xd   : > { %p42_p0 = scmp.ge.s32.totalorder %s40_s29, 2  ;;  %p56_p1 = scmp.ne.s32.totalorder %s4500_s23, %s4496_s22 }
   0xe   : > { %p57_p2 = scmp.eq.s32.totalorder %s4512_s26, 0  ;;  %p62_p3 = scmp.ne.s32.totalorder %s4496_s22, %s4492_s21 }
   0xf   : > { %s7220_s29 = smov (%p42_p0, %s40_s29), 0  ;;  %p63_p5 = scmp.eq.s32.totalorder %s3908_s27, 0 }
  0x10   : > { %7003 = sst [smem:[#allocation10_spill]] %s7220_s29  ;;  %p4625_p4 = por %p57_p2, %p56_p1 }
  0x11   : > { %s44_s14 = ssub.s32 %s4508_s25, %s7220_s29  ;;  %p324_p6 = scmp.eq.s32.totalorder %s3908_s27, 1 }
  0x12   : > { %p47_p7 = scmp.eq.s32.totalorder %s44_s14, 0  ;;  %p4631_p8 = por %p63_p5, %p62_p3 }
  0x13   : > { %p4635_p9 = por %p324_p6, %p56_p1  ;;  %p330_p10 = scmp.eq.s32.totalorder %s3909_s28, 1 }
  0x14   : > { %s4640_s17 = scalar_select %p47_p7, %s4500_s23, %s49_s30  }
  0x15   : > { %s7006_s16 = scalar_select %p4635_p9, 1, 0 }
  0x16   : > { %7008 = sst [smem:[#allocation12_spill]] %s4640_s17  ;;  %p4642_p11 = por %p330_p10, %p62_p3 }
  0x17   : > { %7007 = sst [smem:[#allocation11_spill]] %s7006_s16  ;;  %p3911_p12 = scmp.ge.s32.totalorder %s4512_s26, 2 }
  0x18   : > { %p4302_p13 = scmp.lt.s32.totalorder %s4512_s26, 2  ;;  %s380_s19 = sand.u32 1, %s4500_s23  }
  0x19   : > { %s3912_s20 = sshll.u32 %s380_s19, 8  ;;  %s4237_s27 = sshll.u32 %s4508_s25, 8 }
  0x1a   : > { %s7010_s0 = sld [smem:[#allocation81_spill]]  ;;  %s384_s12 = scalar_lea.vmem [#allocation2], %s3912_s20 }
  0x1b   : > { %s394_s16 = sshll.u32 %s384_s12, 4  ;;  %p4295_p0 = pnand %p4302_p13, %p4625_p4  ;;  %s395_s16 = int_to_ptr.vmem [resolvable:$true] %s394_s16 }
  0x1c   : > { %p3915_p1 = scmp.ge.s32.totalorder %s4512_s26, 1  ;;  %s381_s28 = scalar_lea.sflag [#allocation3], %s380_s19 }
  0x1d   : > { %s4514_s30 = smov 1024   ;;  %s4515_s17 = smov 64  }
  0x1e   : > { %p410_p2 = scmp.lt.s32.totalorder %s4512_s26, 3 }
  0x20   : > { %s391_s21 = scalar_lea.hbm %s7010_s0, %s4237_s27  ;;  %p411_p3 = pnand %p3915_p1, %p410_p2 }
  0x21   : > { %s392_s10 = sshll.u32 %s391_s21, 4  ;;  %s393_s10 = int_to_ptr.hbm [resolvable:$true] %s392_s10 }
  0x22   : > { %4297 = dma.hbm_to_vmem [thread:$0]  (!%p4295_p0), %s393_s10, 4096, %s395_s16, %s381_s28, %s4514_s30, %s4514_s30, %s4515_s17  }
  0x23   : > { %414 = sbr.rel (%p411_p3) target bundleno = 1704 (0x6a8), region = 68 }
  0x28   : > { %s4658_s25 = sand.u32 1, %s4496_s22  }
  0x29   : > { %s3916_s12 = sshll.u32 %s4658_s25, 8  ;;  %s417_s21 = scalar_lea.sflag [#allocation3], %s4658_s25 }
  0x2a   : > { %s4664_s29 = scalar_lea.vmem [#allocation2], %s3916_s12 }
  0x2b   : > { %4483 = dma.done.wait (%p4631_p8), %s417_s21, 4096  }
  0x2c   : > { %4485 = vsyncadd (%p4631_p8), %s417_s21, 4294963200  ;;  %p468_p4 = scmp.lt.s32.totalorder %s4504_s24, 1  ;;  %v4516_v0 = vmov 0   ;;  %v527_v1 = vld [vmem:[%s6952_s7 + $0x70] sm:$0xff]  ;;  %v525_v2 = vld [vmem:[%s6952_s7 + $0x60] sm:$0xff]  ;;  %vm785_vm0 = vcmask 261120  }
  0x2d   : > { %4359 = vset.pattern.permute.xlu2 %v4516_v0  ;;  %4358 = vset.pattern.permute.xlu1 %v4516_v0  ;;  %v523_v3 = vld [vmem:[%s6952_s7 + $0x50] sm:$0xff]  ;;  %v1245_v6 = vld [vmem:[%s4664_s29 + $0x80] sm:$0xff]  ;;  %v1246_v9 = vld [vmem:[%s4664_s29 + $0x88] sm:$0xff]  ;;  %vm3054_vm1 = vcmask 1043456   ;;  %vm3029_vm2 = vcmask 64512   ;;  %s7194_s17 = sld [smem:[#allocation82_spill]] }
  0x2e   : > { %4357 = vset.pattern.permute.xlu0 %v4516_v0  ;;  %s469_s10 = scalar_select %p468_p4, %s4504_s24, 1  ;;  %607 = vperm.xlu1 %4358, %v525_v2   ;;  %v1253_v8 = vld [vmem:[%s4664_s29 + $0xc0] sm:$0xff]  ;;  %v1254_v10 = vld [vmem:[%s4664_s29 + $0xc8] sm:$0xff]  ;;  %v528_v22 = vld [vmem:[%s6952_s7 + $0x78] sm:$0xff] }
  0x2f   : > { %617 = vperm.xlu0 %4357, %v527_v1   ;;  %597 = vperm.xlu2 %4359, %v523_v3   ;;  %v1269_v11 = vpack.c.bf16 %v1253_v8, %v1245_v6  ;;  %v1270_v12 = vpack.c.bf16 %v1254_v10, %v1246_v9  ;;  %v1229_v15 = vld [vmem:[%s4664_s29] sm:$0xff]  ;;  %v1230_v18 = vld [vmem:[%s4664_s29 + $0x8] sm:$0xff]  ;;  %v524_v25 = vld [vmem:[%s6952_s7 + $0x58] sm:$0xff]  ;;  %s6768_s15 = scalar_lea.vmem [#allocation5], %s3916_s12  ;;  %s4281_s12 = sshll.u32 %s4504_s24, 8 }
  0x30   : > { %s4238_s13 = sshll.u32 %s469_s10, 5  ;;  %v1237_v17 = vld [vmem:[%s4664_s29 + $0x40] sm:$0xff]  ;;  %v1238_v19 = vld [vmem:[%s4664_s29 + $0x48] sm:$0xff]  ;;  %v519_v29 = vld [vmem:[%s6952_s7 + $0x30] sm:$0xff]  ;;  %s3806_s21 = sshll.u32 %s6768_s15, 4  ;;  %s3807_s21 = int_to_ptr.vmem [resolvable:$true] %s3806_s21 }
  0x31   : > { %s472_s19 = scalar_lea.vmem %s6946_s1, %s4238_s13  ;;  %1459 = vmatpush.bf16.msra.mxu2 %v1269_v11  ;;  %1508 = vmatpush.bf16.msra.mxu3 %v1270_v12  ;;  %v1261_v20 = vpack.c.bf16 %v1237_v17, %v1229_v15  ;;  %v1262_v21 = vpack.c.bf16 %v1238_v19, %v1230_v18  ;;  %v526_v23 = vld [vmem:[%s6952_s7 + $0x68] sm:$0xff]  ;;  %v4239_v24 = vld [vmem:[%s6951_s6] sm:$0xff]  ;;  %v520_v30 = vld [vmem:[%s6952_s7 + $0x38] sm:$0xff]  ;;  %s3792_s13 = scalar_lea.sflag [#allocation4], %s4658_s25 }
  0x32   : > { %v477_v4 = vld [vmem:[%s472_s19 + $0x10] sm:$0xff]  ;;  %v478_v5 = vld [vmem:[%s472_s19 + $0x18] sm:$0xff]  ;;  %v475_v13 = vld [vmem:[%s472_s19] sm:$0xff] }
  0x33   : > { %v480_v7 = vpack.c.bf16 %v478_v5, %v477_v4  ;;  %v476_v14 = vld [vmem:[%s472_s19 + $0x8] sm:$0xff]  ;;  %v4707_v26 = vld [vmem:[%s6947_s2] sm:$0xff]  ;;  %v516_v35 = vld [vmem:[%s6952_s7 + $0x18] sm:$0xff] }
  0x34   : > { %v479_v16 = vpack.c.bf16 %v476_v14, %v475_v13  ;;  %v522_v27 = vld [vmem:[%s6952_s7 + $0x48] sm:$0xff]  ;;  %v521_v28 = vld [vmem:[%s6952_s7 + $0x40] sm:$0xff]  ;;  %v515_v36 = vld [vmem:[%s6952_s7 + $0x10] sm:$0xff] }
  0x35   : > { %840 = vmatpush.bf16.msra.mxu0 %v480_v7  ;;  %1460 = vmatpush.bf16.msra.mxu2 %v1261_v20  ;;  %v517_v31 = vld [vmem:[%s6952_s7 + $0x20] sm:$0xff]  ;;  %v4240_v32 = vld [vmem:[%s6951_s6 + $0x8] sm:$0xff]  ;;  %v1307_v38 = vld [vmem:[%s6948_s3 + $0x70] sm:$0xff] }
  0x36   : > { %1509 = vmatpush.bf16.msra.mxu3 %v1262_v21  ;;  %612 = vperm.xlu1 %4358, %v526_v23   ;;  %v518_v33 = vld [vmem:[%s6952_s7 + $0x28] sm:$0xff]  ;;  %v513_v37 = vld [vmem:[%s6952_s7] sm:$0xff]  ;;  %v4241_v40 = vld [vmem:[%s6951_s6 + $0x10] sm:$0xff] }
  0x37   : > { %622 = vperm.xlu0 %4357, %v528_v22   ;;  %602 = vperm.xlu2 %4359, %v524_v25   ;;  %v4738_v34 = vld [vmem:[%s6947_s2 + $0x8] sm:$0xff]  ;;  %v1308_v41 = vld [vmem:[%s6948_s3 + $0x78] sm:$0xff]  ;;  %v4769_v42 = vld [vmem:[%s6947_s2 + $0x10] sm:$0xff] }
  0x38   : > { %4064 = vmatmul.msk.bf16.vlgmr.msra.gmra.mxu2 %vm785_vm0, %v4707_v26  ;;  %v514_v39 = vld [vmem:[%s6952_s7 + $0x8] sm:$0xff]  ;;  %7011 = vst [vmem:[#allocation13_spill] sm:$0xff] %v4769_v42  ;;  %v1305_v44 = vld [vmem:[%s6948_s3 + $0x60] sm:$0xff]  ;;  %v1303_v45 = vld [vmem:[%s6948_s3 + $0x50] sm:$0xff] }
  0x39   : > { %841 = vmatpush.bf16.msra.mxu0 %v479_v16  ;;  %4072 = vmatmul.msk.bf16.vlgmr.msra.gmra.mxu3 %vm785_vm0, %v4707_v26  ;;  %v1306_v43 = vld [vmem:[%s6948_s3 + $0x68] sm:$0xff]  ;;  %v1301_v46 = vld [vmem:[%s6948_s3 + $0x40] sm:$0xff]  ;;  %v1304_v47 = vld [vmem:[%s6948_s3 + $0x58] sm:$0xff] }
  0x3a   : > { %v4242_v48 = vld [vmem:[%s6951_s6 + $0x18] sm:$0xff]  ;;  %v1302_v49 = vld [vmem:[%s6948_s3 + $0x48] sm:$0xff]  ;;  %v1299_v52 = vld [vmem:[%s6948_s3 + $0x30] sm:$0xff] }
  0x3b   : > { %v4800_v50 = vld [vmem:[%s6947_s2 + $0x18] sm:$0xff]  ;;  %v1297_v53 = vld [vmem:[%s6948_s3 + $0x20] sm:$0xff]  ;;  %v1295_v54 = vld [vmem:[%s6948_s3 + $0x10] sm:$0xff] }
  0x3c   : > { %3984 = vmatmul.msk.bf16.vlgmr.msra.gmra.mxu0 %vm785_vm0, %v4239_v24  ;;  %v1300_v51 = vld [vmem:[%s6948_s3 + $0x38] sm:$0xff]  ;;  %v1298_v55 = vld [vmem:[%s6948_s3 + $0x28] sm:$0xff]  ;;  %v4243_v56 = vld [vmem:[%s6951_s6 + $0x20] sm:$0xff] }
  0x3d   : > { %v1296_v57 = vld [vmem:[%s6948_s3 + $0x18] sm:$0xff]  ;;  %v4831_v58 = vld [vmem:[%s6947_s2 + $0x20] sm:$0xff]  ;;  %v1294_v59 = vld [vmem:[%s6948_s3 + $0x8] sm:$0xff] }
  0x3e   : > { %592 = vperm.xlu1 %4358, %v522_v27   ;;  %v1293_v60 = vld [vmem:[%s6948_s3] sm:$0xff]  ;;  %v989_v62 = vld [vmem:[%s6954_s9 + $0x10] sm:$0xff]  ;;  %v988_v63 = vld [vmem:[%s6954_s9 + $0x8] sm:$0xff] }
  0x3f   : > { %587 = vperm.xlu0 %4357, %v521_v28   ;;  %577 = vperm.xlu2 %4359, %v519_v29   ;;  %v987_v61 = vld [vmem:[%s6954_s9] sm:$0xff]  ;;  %v4244_v0 = vld [vmem:[%s6951_s6 + $0x28] sm:$0xff]  ;;  %v990_v1 = vld [vmem:[%s6954_s9 + $0x18] sm:$0xff] }
  0x40   : > { %v4862_v2 = vld [vmem:[%s6947_s2 + $0x28] sm:$0xff]  ;;  %v991_v4 = vld [vmem:[%s6954_s9 + $0x20] sm:$0xff]  ;;  %v993_v5 = vld [vmem:[%s6954_s9 + $0x30] sm:$0xff] }
  0x41   : > { %v992_v3 = vld [vmem:[%s6954_s9 + $0x28] sm:$0xff]  ;;  %v1247_v6 = vld [vmem:[%s4664_s29 + $0x90] sm:$0xff]  ;;  %v1248_v8 = vld [vmem:[%s4664_s29 + $0x98] sm:$0xff] }
  0x42   : > { %v1255_v7 = vld [vmem:[%s4664_s29 + $0xd0] sm:$0xff]  ;;  %v1256_v9 = vld [vmem:[%s4664_s29 + $0xd8] sm:$0xff]  ;;  %v995_v12 = vld [vmem:[%s6954_s9 + $0x40] sm:$0xff] }
  0x43   : > { %v1271_v10 = vpack.c.bf16 %v1255_v7, %v1247_v6  ;;  %v1272_v11 = vpack.c.bf16 %v1256_v9, %v1248_v8  ;;  %v1231_v13 = vld [vmem:[%s4664_s29 + $0x10] sm:$0xff]  ;;  %v1232_v15 = vld [vmem:[%s4664_s29 + $0x18] sm:$0xff]  ;;  %v996_v19 = vld [vmem:[%s6954_s9 + $0x48] sm:$0xff] }
  0x44   : > { %v1239_v14 = vld [vmem:[%s4664_s29 + $0x50] sm:$0xff]  ;;  %v994_v16 = vld [vmem:[%s6954_s9 + $0x38] sm:$0xff]  ;;  %v2058_v7 = vld [vmem:[%s6950_s5 + $0x28] sm:$0xff] }
  0x45   : > { %1557 = vmatpush.bf16.msrb.mxu2 %v1271_v10  ;;  %1606 = vmatpush.bf16.msrb.mxu3 %v1272_v11  ;;  %v4245_v17 = vld [vmem:[%s6951_s6 + $0x30] sm:$0xff]  ;;  %v1240_v18 = vld [vmem:[%s4664_s29 + $0x58] sm:$0xff]  ;;  %v1263_v21 = vpack.c.bf16 %v1239_v14, %v1231_v13 }
  0x46   : > { %567 = vperm.xlu1 %4358, %v517_v31   ;;  %v4901_v20 = vld [vmem:[%s6947_s2 + $0x30] sm:$0xff]  ;;  %v1264_v22 = vpack.c.bf16 %v1240_v18, %v1232_v15  ;;  %v2068_v25 = vld [vmem:[%s6950_s5 + $0x78] sm:$0xff] }
  0x47   : > { %582 = vperm.xlu0 %4357, %v520_v30   ;;  %572 = vperm.xlu2 %4359, %v518_v33   ;;  %v2067_v23 = vld [vmem:[%s6950_s5 + $0x70] sm:$0xff]  ;;  %v2065_v30 = vld [vmem:[%s6950_s5 + $0x60] sm:$0xff]  ;;  %v998_v31 = vld [vmem:[%s6954_s9 + $0x58] sm:$0xff] }
  0x48   : > { %4065 = vmatmul.msk.bf16.gmra.mxu2 %vm785_vm0, %v4738_v34  ;;  %v997_v24 = vld [vmem:[%s6954_s9 + $0x50] sm:$0xff]  ;;  %v2066_v33 = vld [vmem:[%s6950_s5 + $0x68] sm:$0xff] }
  0x49   : > { %4073 = vmatmul.msk.bf16.gmra.mxu3 %vm785_vm0, %v4738_v34  ;;  %1558 = vmatpush.bf16.msrb.mxu2 %v1263_v21  ;;  %v2055_v18 = vld [vmem:[%s6950_s5 + $0x10] sm:$0xff]  ;;  %v2053_v21 = vld [vmem:[%s6950_s5] sm:$0xff] }
  0x4a   : > { %1607 = vmatpush.bf16.msrb.mxu3 %v1264_v22 }
  0x4c   : > { %3985 = vmatmul.msk.bf16.gmra.mxu0 %vm785_vm0, %v4240_v32  ;;  %v4246_v32 = vld [vmem:[%s6951_s6 + $0x38] sm:$0xff] }
  0x4e   : > { %562 = vperm.xlu1 %4358, %v516_v35   ;;  %v4938_v35 = vld [vmem:[%s6947_s2 + $0x38] sm:$0xff] }
  0x4f   : > { %557 = vperm.xlu0 %4357, %v515_v36   ;;  %547 = vperm.xlu2 %4359, %v513_v37  }
  0x56   : > { %1381 = vperm.xlu1 %4358, %v1307_v38  }
  0x57   : > { %552 = vperm.xlu0 %4357, %v514_v39   ;;  %1386 = vperm.xlu2 %4359, %v1308_v41   ;;  %v2063_v39 = vld [vmem:[%s6950_s5 + $0x50] sm:$0xff]  ;;  %v2064_v41 = vld [vmem:[%s6950_s5 + $0x58] sm:$0xff] }
  0x58   : > { %4066 = vmatmul.msk.bf16.gmra.mxu2 %vm785_vm0, %v4769_v42 }
  0x59   : > { %4074 = vmatmul.msk.bf16.gmra.mxu3 %vm785_vm0, %v4769_v42 }
  0x5c   : > { %3986 = vmatmul.msk.bf16.gmra.mxu0 %vm785_vm0, %v4241_v40  ;;  %v999_v40 = vld [vmem:[%s6954_s9 + $0x60] sm:$0xff] }
  0x5e   : > { %1376 = vperm.xlu1 %4358, %v1306_v43  }
  0x5f   : > { %1371 = vperm.xlu0 %4357, %v1305_v44   ;;  %1361 = vperm.xlu2 %4359, %v1303_v45  }
  0x66   : > { %1351 = vperm.xlu1 %4358, %v1301_v46   ;;  %v1001_v46 = vld [vmem:[%s6954_s9 + $0x70] sm:$0xff] }
  0x67   : > { %1366 = vperm.xlu0 %4357, %v1304_v47   ;;  %1356 = vperm.xlu2 %4359, %v1302_v49   ;;  %v1000_v47 = vld [vmem:[%s6954_s9 + $0x68] sm:$0xff] }
  0x68   : > { %4067 = vmatmul.msk.bf16.gmra.mxu2 %vm785_vm0, %v4800_v50 }
  0x69   : > { %4075 = vmatmul.msk.bf16.gmra.mxu3 %vm785_vm0, %v4800_v50 }
  0x6c   : > { %3987 = vmatmul.msk.bf16.gmra.mxu0 %vm785_vm0, %v4242_v48  ;;  %v4247_v48 = vld [vmem:[%s6951_s6 + $0x40] sm:$0xff] }
  0x6e   : > { %1346 = vperm.xlu1 %4358, %v1300_v51   ;;  %v2061_v51 = vld [vmem:[%s6950_s5 + $0x40] sm:$0xff] }
  0x6f   : > { %1341 = vperm.xlu0 %4357, %v1299_v52   ;;  %1331 = vperm.xlu2 %4359, %v1297_v53  }
  0x76   : > { %1321 = vperm.xlu1 %4358, %v1295_v54  }
  0x77   : > { %1336 = vperm.xlu0 %4357, %v1298_v55   ;;  %1326 = vperm.xlu2 %4359, %v1296_v57   ;;  %v2062_v57 = vld [vmem:[%s6950_s5 + $0x48] sm:$0xff] }
  0x78   : > { %4068 = vmatmul.msk.bf16.gmra.mxu2 %vm785_vm0, %v4831_v58 }
  0x79   : > { %4076 = vmatmul.msk.bf16.gmra.mxu3 %vm785_vm0, %v4831_v58 }
  0x7c   : > { %3988 = vmatmul.msk.bf16.gmra.mxu0 %vm785_vm0, %v4243_v56  ;;  %v1002_v56 = vld [vmem:[%s6954_s9 + $0x78] sm:$0xff] }
  0x7e   : > { %1316 = vperm.xlu1 %4358, %v1294_v59  }
  0x7f   : > { %1311 = vperm.xlu0 %4357, %v1293_v60   ;;  %1005 = vperm.xlu2 %4359, %v987_v61   ;;  %v2059_v61 = vld [vmem:[%s6950_s5 + $0x30] sm:$0xff] }
  0x86   : > { %1015 = vperm.xlu1 %4358, %v989_v62  }
  0x87   : > { %1010 = vperm.xlu0 %4357, %v988_v63   ;;  %1020 = vperm.xlu2 %4359, %v990_v1   ;;  %v2057_v1 = vld [vmem:[%s6950_s5 + $0x20] sm:$0xff] }
  0x88   : > { %4069 = vmatmul.msk.bf16.gmra.mxu2 %vm785_vm0, %v4862_v2 }
  0x89   : > { %4077 = vmatmul.msk.bf16.gmra.mxu3 %vm785_vm0, %v4862_v2  ;;  %v4917_v27 = vpop.permute.xlu2 %597 }
  0x8c   : > { %3989 = vmatmul.msk.bf16.gmra.mxu0 %vm785_vm0, %v4244_v0 }
  0x8e   : > { %1030 = vperm.xlu1 %4358, %v992_v3   ;;  %v2060_v3 = vld [vmem:[%s6950_s5 + $0x38] sm:$0xff] }
  0x8f   : > { %1025 = vperm.xlu0 %4357, %v991_v4   ;;  %1035 = vperm.xlu2 %4359, %v993_v5   ;;  %v4248_v4 = vld [vmem:[%s6951_s6 + $0x48] sm:$0xff] }
  0x91   : > { %v4940_v36 = vpop.permute.xlu2 %602 }
  0x96   : > { %1045 = vperm.xlu1 %4358, %v995_v12  }
  0x97   : > { %1040 = vperm.xlu0 %4357, %v994_v16   ;;  %1050 = vperm.xlu2 %4359, %v996_v19  }
  0x98   : > { %4070 = vmatmul.msk.bf16.gmra.mxu2 %vm785_vm0, %v4901_v20 }
  0x99   : > { %4078 = vmatmul.msk.bf16.gmra.mxu3 %vm785_vm0, %v4901_v20  ;;  %v4964_v45 = vpop.permute.xlu2 %577 }
  0x9c   : > { %3990 = vmatmul.msk.bf16.gmra.mxu0 %vm785_vm0, %v4245_v17  ;;  %v2056_v17 = vld [vmem:[%s6950_s5 + $0x18] sm:$0xff] }
  0x9e   : > { %2141 = vperm.xlu1 %4358, %v2067_v23  }
  0x9f   : > { %1055 = vperm.xlu0 %4357, %v997_v24   ;;  %2146 = vperm.xlu2 %4359, %v2068_v25  }
  0xa0   : > { %v4921_v29 = vpop.permute.xlu1 %607 }
  0xa1   : > { %v4919_v28 = vpop.permute.xlu0 %617  ;;  %v4995_v59 = vpop.permute.xlu2 %572 }
  0xa6   : > { %2131 = vperm.xlu1 %4358, %v2065_v30  }
  0xa7   : > { %1060 = vperm.xlu0 %4357, %v998_v31   ;;  %2136 = vperm.xlu2 %4359, %v2066_v33  }
  0xa8   : > { %4071 = vmatmul.msk.bf16.gmra.mxu2 %vm785_vm0, %v4938_v35  ;;  %v4949_v38 = vpop.permute.xlu1 %612 }
  0xa9   : > { %4079 = vmatmul.msk.bf16.gmra.mxu3 %vm785_vm0, %v4938_v35  ;;  %v4947_v37 = vpop.permute.xlu0 %622  ;;  %v548_v8 = vpop.permute.xlu2 %547 }
  0xac   : > { %3991 = vmatmul.msk.bf16.gmra.mxu0 %vm785_vm0, %v4246_v32 }
  0xae   : > { %2121 = vperm.xlu1 %4358, %v2063_v39   ;;  %v2054_v39 = vld [vmem:[%s6950_s5 + $0x8] sm:$0xff] }
  0xaf   : > { %1065 = vperm.xlu0 %4357, %v999_v40   ;;  %2126 = vperm.xlu2 %4359, %v2064_v41   ;;  %v4249_v40 = vld [vmem:[%s6951_s6 + $0x50] sm:$0xff] }
  0xb0   : > { %v4960_v43 = vpop.permute.xlu1 %592 }
  0xb1   : > { %v4962_v44 = vpop.permute.xlu0 %587 }
  0xb6   : > { %1075 = vperm.xlu1 %4358, %v1001_v46   ;;  %v529_v46 = vld [vmem:[%s6952_s7 + $0x80] sm:$0xff] }
  0xb7   : > { %1070 = vperm.xlu0 %4357, %v1000_v47   ;;  %2111 = vperm.xlu2 %4359, %v2061_v51   ;;  %v5053_v47 = vpop.permute.xlu2 %1386 }
  0xb8   : > { %4080 = vmatmul.msk.bf16.vlgmr.msrb.gmra.mxu2 %vm785_vm0, %v4707_v26  ;;  %v568_v53 = vpop.permute.xlu1 %567 }
  0xb9   : > { %v843_v49 = vpop.f32.mrf.mxu0  ;;  %4088 = vmatmul.msk.bf16.vlgmr.msrb.gmra.mxu3 %vm785_vm0, %v4707_v26  ;;  %v4983_v52 = vpop.permute.xlu0 %582 }
  0xba   : > { %v844_v9 = vadd.f32 %v843_v49, %v548_v8 }
  0xbb   : > { %v4985_v54 = vpop.f32.mrf.mxu2 }
  0xbc   : > { %3992 = vmatmul.msk.bf16.gmra.mxu0 %vm785_vm0, %v4247_v48  ;;  %v4987_v55 = vpop.f32.mrf.mxu3  ;;  %v923_v12 = vmax.f32 %v844_v9, 0.0 }
  0xbe   : > { %1080 = vperm.xlu1 %4358, %v1002_v56  }
  0xbf   : > { %2116 = vperm.xlu0 %4357, %v2062_v57   ;;  %2101 = vperm.xlu2 %4359, %v2059_v61  }
  0xc0   : > { %v563_v5 = vpop.permute.xlu1 %562 }
  0xc1   : > { %v845_v60 = vpop.f32.mrf.mxu0  ;;  %v558_v62 = vpop.permute.xlu0 %557 }
  0xc3   : > { %v5000_v63 = vpop.f32.mrf.mxu2 }
  0xc4   : > { %v5002_v0 = vpop.f32.mrf.mxu3 }
  0xc6   : > { %2091 = vperm.xlu1 %4358, %v2057_v1  }
  0xc7   : > { %2106 = vperm.xlu0 %4357, %v2060_v3   ;;  %2096 = vperm.xlu2 %4359, %v2058_v7  }
  0xc8   : > { %4081 = vmatmul.msk.bf16.gmra.mxu2 %vm785_vm0, %v4738_v34  ;;  %v5036_v24 = vpop.permute.xlu1 %1381 }
  0xc9   : > { %v848_v6 = vpop.f32.mrf.mxu0  ;;  %4089 = vmatmul.msk.bf16.gmra.mxu3 %vm785_vm0, %v4738_v34  ;;  %v553_v10 = vpop.permute.xlu0 %552  ;;  %7012 = vst [vmem:[#allocation14_spill] sm:$0xff] %v5036_v24 }
  0xca   : > { %v846_v11 = vadd.f32 %v845_v60, %v553_v10  ;;  %v849_v13 = vadd.f32 %v848_v6, %v558_v62  ;;  %v530_v60 = vld [vmem:[%s6952_s7 + $0x88] sm:$0xff]  ;;  %v531_v62 = vld [vmem:[%s6952_s7 + $0x90] sm:$0xff]  ;;  %v4250_v10 = vld [vmem:[%s6951_s6 + $0x58] sm:$0xff] }
  0xcb   : > { %v5021_v15 = vpop.f32.mrf.mxu2 }
  0xcc   : > { %3993 = vmatmul.msk.bf16.gmra.mxu0 %vm785_vm0, %v4248_v4  ;;  %v924_v14 = vmax.f32 %v846_v11, 0.0  ;;  %v5023_v16 = vpop.f32.mrf.mxu3  ;;  %v925_v25 = vmax.f32 %v849_v13, 0.0 }
  0xce   : > { %v5034_v23 = vpack.c.bf16 %v924_v14, %v923_v12  ;;  %2086 = vperm.xlu1 %4358, %v2056_v17   ;;  %v533_v12 = vld [vmem:[%s6952_s7 + $0xa0] sm:$0xff] }
  0xcf   : > { %2081 = vperm.xlu0 %4357, %v2055_v18   ;;  %2071 = vperm.xlu2 %4359, %v2053_v21  }
  0xd0   : > { %v5056_v48 = vpop.permute.xlu1 %1376 }
  0xd1   : > { %v850_v19 = vpop.f32.mrf.mxu0  ;;  %v5058_v49 = vpop.permute.xlu0 %1371 }
  0xd2   : > { %v851_v22 = vadd.f32 %v850_v19, %v563_v5  ;;  %7013 = vst [vmem:[#allocation15_spill] sm:$0xff] %v5058_v49  ;;  %v5073_v5 = vpop.permute.xlu2 %1361  ;;  %v534_v19 = vld [vmem:[%s6952_s7 + $0xa8] sm:$0xff] }
  0xd3   : > { %v5040_v32 = vpop.f32.mrf.mxu2 }
  0xd4   : > { %v926_v30 = vmax.f32 %v851_v22, 0.0  ;;  %v5042_v33 = vpop.f32.mrf.mxu3  ;;  %v535_v22 = vld [vmem:[%s6952_s7 + $0xb0] sm:$0xff] }
  0xd6   : > { %v5038_v31 = vpack.c.bf16 %v926_v30, %v925_v25 }
  0xd7   : > { %2076 = vperm.xlu0 %4357, %v2054_v39   ;;  %627 = vperm.xlu2 %4359, %v529_v46  }
  0xd8   : > { %4082 = vmatmul.msk.bf16.gmra.mxu2 %vm785_vm0, %v4769_v42  ;;  %v5077_v6 = vpop.permute.xlu1 %1351 }
  0xd9   : > { %v853_v41 = vpop.f32.mrf.mxu0  ;;  %4090 = vmatmul.msk.bf16.gmra.mxu3 %vm785_vm0, %v4769_v42  ;;  %7014 = vst [vmem:[#allocation16_spill] sm:$0xff] %v5077_v6  ;;  %v5079_v7 = vpop.permute.xlu0 %1366 }
  0xda   : > { %v854_v51 = vadd.f32 %v853_v41, %v568_v53  ;;  %v5099_v13 = vpop.permute.xlu2 %1356 }
  0xdb   : > { %v1472_v56 = vpop.f32.mrf.mxu2  ;;  %7015 = vst [vmem:[#allocation17_spill] sm:$0xff] %v5099_v13 }
  0xdc   : > { %3994 = vmatmul.msk.bf16.gmra.mxu0 %vm785_vm0, %v4249_v40  ;;  %v5064_v57 = vpop.f32.mrf.mxu3  ;;  %v927_v3 = vmax.f32 %v854_v51, 0.0  ;;  %v536_v51 = vld [vmem:[%s6952_s7 + $0xb8] sm:$0xff] }
  0xdf   : > { %632 = vperm.xlu0 %4357, %v530_v60   ;;  %637 = vperm.xlu2 %4359, %v531_v62   ;;  %v4251_v60 = vld [vmem:[%s6951_s6 + $0x60] sm:$0xff] }
  0xe0   : > { %v5108_v25 = vpop.permute.xlu1 %1346 }
  0xe1   : > { %v855_v61 = vpop.f32.mrf.mxu0  ;;  %7016 = vst [vmem:[#allocation18_spill] sm:$0xff] %v5108_v25  ;;  %v5110_v30 = vpop.permute.xlu0 %1341 }
  0xe2   : > { %v856_v1 = vadd.f32 %v855_v61, %v4995_v59  ;;  %v532_v59 = vld [vmem:[%s6952_s7 + $0x98] sm:$0xff]  ;;  %7017 = vst [vmem:[#allocation19_spill] sm:$0xff] %v5110_v30  ;;  %v5126_v62 = vpop.permute.xlu2 %1331 }
  0xe3   : > { %v5081_v8 = vpop.f32.mrf.mxu2  ;;  %7018 = vst [vmem:[#allocation20_spill] sm:$0xff] %v5126_v62 }
  0xe4   : > { %v928_v4 = vmax.f32 %v856_v1, 0.0  ;;  %v5083_v9 = vpop.f32.mrf.mxu3 }
  0xe6   : > { %v5075_v53 = vpack.c.bf16 %v928_v4, %v927_v3 }
  0xe7   : > { %642 = vperm.xlu0 %4357, %v532_v59   ;;  %647 = vperm.xlu2 %4359, %v533_v12  }
  0xe8   : > { %4083 = vmatmul.msk.bf16.gmra.mxu2 %vm785_vm0, %v4800_v50  ;;  %v5128_v1 = vpop.permute.xlu1 %1321 }
  0xe9   : > { %v858_v11 = vpop.f32.mrf.mxu0  ;;  %4091 = vmatmul.msk.bf16.gmra.mxu3 %vm785_vm0, %v4800_v50  ;;  %v5130_v3 = vpop.permute.xlu0 %1336 }
  0xea   : > { %v859_v14 = vadd.f32 %v858_v11, %v4964_v45  ;;  %7019 = vst [vmem:[#allocation21_spill] sm:$0xff] %v5130_v3  ;;  %v1473_v11 = vadd.f32 %v1472_v56, %v5126_v62  ;;  %v1522_v56 = vadd.f32 %v5064_v57, %v5126_v62 }
  0xeb   : > { %v1477_v17 = vpop.f32.mrf.mxu2 }
  0xec   : > { %3995 = vmatmul.msk.bf16.gmra.mxu0 %vm785_vm0, %v4250_v10  ;;  %v1526_v18 = vpop.f32.mrf.mxu3  ;;  %v929_v39 = vmax.f32 %v859_v14, 0.0  ;;  %v538_v10 = vld [vmem:[%s6952_s7 + $0xc8] sm:$0xff]  ;;  %v1478_v12 = vadd.f32 %v1477_v17, %v5110_v30 }
  0xef   : > { %652 = vperm.xlu0 %4357, %v534_v19   ;;  %657 = vperm.xlu2 %4359, %v535_v22   ;;  %v539_v19 = vld [vmem:[%s6952_s7 + $0xd0] sm:$0xff] }
  0xf1   : > { %v860_v21 = vpop.f32.mrf.mxu0 }
  0xf2   : > { %v861_v50 = vadd.f32 %v860_v21, %v4983_v52  ;;  %v537_v52 = vld [vmem:[%s6952_s7 + $0xc0] sm:$0xff]  ;;  %v1527_v21 = vadd.f32 %v1526_v18, %v5110_v30  ;;  %v1877_v18 = vmax.f32 %v1473_v11, 0.0 }
  0xf3   : > { %v1479_v41 = vpop.f32.mrf.mxu2 }
  0xf4   : > { %v930_v45 = vmax.f32 %v861_v50, 0.0  ;;  %v1528_v46 = vpop.f32.mrf.mxu3  ;;  %v5150_v50 = vpop.permute.xlu2 %1326 }
  0xf5   : > { %v1529_v22 = vadd.f32 %v1528_v46, %v5108_v25  ;;  %7020 = vst [vmem:[#allocation22_spill] sm:$0xff] %v5150_v50  ;;  %v5161_v46 = vpop.permute.xlu0 %1311 }
  0xf6   : > { %v5113_v40 = vpack.c.bf16 %v930_v45, %v929_v39  ;;  %v1470_v39 = vadd.f32 %v5040_v32, %v5150_v50  ;;  %v1519_v45 = vadd.f32 %v5042_v33, %v5150_v50  ;;  %v1524_v32 = vadd.f32 %v5083_v9, %v5130_v3 }
  0xf7   : > { %662 = vperm.xlu0 %4357, %v536_v51   ;;  %667 = vperm.xlu2 %4359, %v537_v52   ;;  %v1893_v51 = vmax.f32 %v1478_v12, 0.0  ;;  %v1463_v33 = vadd.f32 %v4985_v54, %v5161_v46  ;;  %v1878_v12 = vmax.f32 %v1522_v56, 0.0  ;;  %v1512_v9 = vadd.f32 %v4987_v55, %v5161_v46  ;;  %v541_v56 = vld [vmem:[%s6952_s7 + $0xe0] sm:$0xff] }
  0xf8   : > { %4084 = vmatmul.msk.bf16.gmra.mxu2 %vm785_vm0, %v4831_v58 }
  0xf9   : > { %v5121_v61 = vpop.f32.mrf.mxu0  ;;  %4092 = vmatmul.msk.bf16.gmra.mxu3 %vm785_vm0, %v4831_v58  ;;  %v1480_v58 = vadd.f32 %v1479_v41, %v5108_v25  ;;  %v1894_v41 = vmax.f32 %v1527_v21, 0.0  ;;  %v1846_v42 = vmax.f32 %v1512_v9, 0.0  ;;  %v1235_v9 = vld [vmem:[%s4664_s29 + $0x30] sm:$0xff] }
  0xfb   : > { %v1482_v4 = vpop.f32.mrf.mxu2  ;;  %v1901_v52 = vmax.f32 %v1480_v58, 0.0 }
  0xfc   : > { %3996 = vmatmul.msk.bf16.gmra.mxu0 %vm785_vm0, %v4251_v60  ;;  %v1531_v59 = vpop.f32.mrf.mxu3  ;;  %v1483_v17 = vadd.f32 %v1482_v4, %v5077_v6  ;;  %v5159_v60 = vpop.permute.xlu1 %1316  ;;  %v1475_v4 = vadd.f32 %v5081_v8, %v5130_v3  ;;  %v4252_v8 = vld [vmem:[%s6951_s6 + $0x68] sm:$0xff]  ;;  %v1845_v3 = vmax.f32 %v1463_v33, 0.0  ;;  %v1252_v33 = vld [vmem:[%s4664_s29 + $0xb8] sm:$0xff] }
  0xfd   : > { %v1532_v57 = vadd.f32 %v1531_v59, %v5077_v6  ;;  %v1465_v11 = vadd.f32 %v5000_v63, %v5159_v60  ;;  %v540_v59 = vld [vmem:[%s6952_s7 + $0xd8] sm:$0xff]  ;;  %v1514_v54 = vadd.f32 %v5002_v0, %v5159_v60  ;;  %v1886_v6 = vmax.f32 %v1524_v32, 0.0  ;;  %v1259_v32 = vld [vmem:[%s4664_s29 + $0xf0] sm:$0xff] }
  0xfe   : > { %v5189_v0 = vpack.c.bf16 %v1901_v52, %v1893_v51 }
  0xff   : > { %672 = vperm.xlu0 %4357, %v538_v10   ;;  %677 = vperm.xlu2 %4359, %v539_v19   ;;  %v1902_v10 = vmax.f32 %v1529_v22, 0.0  ;;  %v1909_v19 = vmax.f32 %v1483_v17, 0.0  ;;  %v1885_v17 = vmax.f32 %v1475_v4, 0.0  ;;  %v1910_v30 = vmax.f32 %v1532_v57, 0.0 }
 0x100   : > { %v1853_v62 = vmax.f32 %v1465_v11, 0.0  ;;  %v5196_v49 = vpack.c.bf16 %v1886_v6, %v1878_v12  ;;  %v1468_v57 = vadd.f32 %v5021_v15, %v5128_v1  ;;  %v1870_v4 = vmax.f32 %v1519_v45, 0.0 }
 0x101   : > { %v5142_v14 = vpop.f32.mrf.mxu0 }
 0x102   : > { %v5206_v51 = vpack.c.bf16 %v1853_v62, %v1845_v3  ;;  %v1861_v6 = vmax.f32 %v1468_v57, 0.0 }
 0x103   : > { %v1484_v21 = vpop.f32.mrf.mxu2 }
 0x104   : > { %v1533_v25 = vpop.f32.mrf.mxu3  ;;  %v1485_v63 = vadd.f32 %v1484_v21, %v5099_v13  ;;  %v5191_v21 = vpack.c.bf16 %v1902_v10, %v1894_v41 }
 0x105   : > { %v1534_v58 = vadd.f32 %v1533_v25, %v5099_v13  ;;  %v1869_v25 = vmax.f32 %v1470_v39, 0.0  ;;  %v5194_v13 = vpack.c.bf16 %v1885_v17, %v1877_v18  ;;  %v1517_v39 = vadd.f32 %v5023_v16, %v5128_v1  ;;  %v542_v16 = vld [vmem:[%s6952_s7 + $0xe8] sm:$0xff] }
 0x106   : > { %v1917_v55 = vmax.f32 %v1485_v63, 0.0  ;;  %v1854_v18 = vmax.f32 %v1514_v54, 0.0  ;;  %v1243_v54 = vld [vmem:[%s4664_s29 + $0x70] sm:$0xff]  ;;  %v1236_v63 = vld [vmem:[%s4664_s29 + $0x38] sm:$0xff] }
 0x107   : > { %v1918_v50 = vmax.f32 %v1534_v58, 0.0  ;;  %682 = vperm.xlu0 %4357, %v540_v59   ;;  %687 = vperm.xlu2 %4359, %v541_v56   ;;  %v1862_v45 = vmax.f32 %v1517_v39, 0.0  ;;  %v5217_v62 = vpack.c.bf16 %v1869_v25, %v1861_v6  ;;  %v4253_v25 = vld [vmem:[%s6951_s6 + $0x70] sm:$0xff]  ;;  %v1267_v57 = vpack.c.bf16 %v1243_v54, %v1235_v9  ;;  %v3542_v54 = vld [vmem:[%s6956_s11 + $0x18] sm:$0xff] }
 0x108   : > { %4085 = vmatmul.msk.bf16.gmra.mxu2 %vm785_vm0, %v4862_v2  ;;  %v5208_v41 = vpack.c.bf16 %v1917_v55, %v1909_v19  ;;  %v5212_v52 = vpack.c.bf16 %v1854_v18, %v1846_v42  ;;  %v1251_v42 = vld [vmem:[%s4664_s29 + $0xb0] sm:$0xff]  ;;  %v1260_v19 = vld [vmem:[%s4664_s29 + $0xf8] sm:$0xff] }
 0x109   : > { %v5184_v22 = vpop.f32.mrf.mxu0  ;;  %4093 = vmatmul.msk.bf16.gmra.mxu3 %vm785_vm0, %v4862_v2  ;;  %v5210_v15 = vpack.c.bf16 %v1918_v50, %v1910_v30  ;;  %v543_v30 = vld [vmem:[%s6952_s7 + $0xf0] sm:$0xff]  ;;  %v5224_v50 = vpack.c.bf16 %v1870_v4, %v1862_v45  ;;  %v1275_v12 = vpack.c.bf16 %v1259_v32, %v1251_v42  ;;  %v544_v55 = vld [vmem:[%s6952_s7 + $0xf8] sm:$0xff] }
 0x10a   : > { %v1244_v4 = vld [vmem:[%s4664_s29 + $0x78] sm:$0xff] }
 0x10b   : > { %v1487_v10 = vpop.f32.mrf.mxu2  ;;  %1753 = vmatpush.bf16.msra.mxu2 %v1275_v12  ;;  %v3540_v12 = vld [vmem:[%s6956_s11 + $0x8] sm:$0xff] }
 0x10c   : > { %3997 = vmatmul.msk.bf16.gmra.mxu0 %vm785_vm0, %v4252_v8  ;;  %v1536_v2 = vpop.f32.mrf.mxu3  ;;  %v1488_v11 = vadd.f32 %v1487_v10, %v5073_v5  ;;  %v1276_v8 = vpack.c.bf16 %v1260_v19, %v1252_v33  ;;  %v3539_v10 = vld [vmem:[%s6956_s11] sm:$0xff] }
 0x10d   : > { %v1537_v59 = vadd.f32 %v1536_v2, %v5073_v5  ;;  %v1268_v2 = vpack.c.bf16 %v1244_v4, %v1236_v63  ;;  %v4254_v63 = vld [vmem:[%s6951_s6 + $0x78] sm:$0xff] }
 0x10e   : > { %1802 = vmatpush.bf16.msra.mxu3 %v1276_v8  ;;  %v1925_v58 = vmax.f32 %v1488_v11, 0.0 }
 0x10f   : > { %692 = vperm.xlu0 %4357, %v542_v16   ;;  %697 = vperm.xlu2 %4359, %v543_v30   ;;  %v1926_v39 = vmax.f32 %v1537_v59, 0.0  ;;  %v3541_v59 = vld [vmem:[%s6956_s11 + $0x10] sm:$0xff] }
 0x110   : > { %1754 = vmatpush.bf16.msra.mxu2 %v1267_v57 }
 0x111   : > { %v5219_v3 = vpop.f32.mrf.mxu0 }
 0x112   : > { %1803 = vmatpush.bf16.msra.mxu3 %v1268_v2 }
 0x113   : > { %v1489_v56 = vpop.f32.mrf.mxu2 }
 0x114   : > { %v1538_v17 = vpop.f32.mrf.mxu3  ;;  %v1490_v18 = vadd.f32 %v1489_v56, %v5079_v7 }
 0x115   : > { %v1539_v6 = vadd.f32 %v1538_v17, %v5079_v7 }
 0x116   : > { %v1933_v16 = vmax.f32 %v1490_v18, 0.0 }
 0x117   : > { %v1934_v30 = vmax.f32 %v1539_v6, 0.0  ;;  %702 = vperm.xlu0 %4357, %v544_v55   ;;  %3545 = vperm.xlu2 %4359, %v3539_v10   ;;  %v871_v10 = vadd.f32 %v5219_v3, %v4940_v36  ;;  %v864_v36 = vadd.f32 %v5121_v61, %v4962_v44 }
 0x118   : > { %4086 = vmatmul.msk.bf16.gmra.mxu2 %vm785_vm0, %v4901_v20  ;;  %v5252_v42 = vpack.c.bf16 %v1933_v16, %v1925_v58 }
 0x119   : > { %v873_v45 = vpop.f32.mrf.mxu0  ;;  %4094 = vmatmul.msk.bf16.gmra.mxu3 %vm785_vm0, %v4901_v20  ;;  %v5254_v32 = vpack.c.bf16 %v1934_v30, %v1926_v39 }
 0x11a   : > { %v874_v39 = vadd.f32 %v873_v45, %v4921_v29  ;;  %v866_v29 = vadd.f32 %v5142_v14, %v4960_v43 }
 0x11b   : > { %v5256_v33 = vpop.f32.mrf.mxu2 }
 0x11c   : > { %3998 = vmatmul.msk.bf16.gmra.mxu0 %vm785_vm0, %v4253_v25  ;;  %v5258_v11 = vpop.f32.mrf.mxu3  ;;  %v935_v30 = vmax.f32 %v874_v39, 0.0 }
 0x11f   : > { %3550 = vperm.xlu0 %4357, %v3540_v12   ;;  %3555 = vperm.xlu2 %4359, %v3541_v59  }
 0x121   : > { %v875_v19 = vpop.f32.mrf.mxu0 }
 0x122   : > { %v876_v57 = vadd.f32 %v875_v19, %v4949_v38  ;;  %v931_v19 = vmax.f32 %v864_v36, 0.0 }
 0x123   : > { %v5266_v8 = vpop.f32.mrf.mxu2 }
 0x124   : > { %v5268_v9 = vpop.f32.mrf.mxu3  ;;  %v936_v2 = vmax.f32 %v876_v57, 0.0 }
 0x126   : > { %v961_v45 = vpack.c.bf16 %v936_v2, %v935_v30  ;;  %v1258_v30 = vld [vmem:[%s4664_s29 + $0xe8] sm:$0xff] }
 0x127   : > { %3560 = vperm.xlu0 %4357, %v3542_v54  }
 0x128   : > { %4087 = vmatmul.msk.bf16.gmra.mxu2 %vm785_vm0, %v4938_v35 }
 0x129   : > { %v878_v58 = vpop.f32.mrf.mxu0  ;;  %4095 = vmatmul.msk.bf16.gmra.mxu3 %vm785_vm0, %v4938_v35 }
 0x12a   : > { %v879_v56 = vadd.f32 %v878_v58, %v4919_v28  ;;  %v869_v28 = vadd.f32 %v5184_v22, %v4917_v27  ;;  %v932_v27 = vmax.f32 %v866_v29, 0.0 }
 0x12b   : > { %v5282_v17 = vpop.f32.mrf.mxu2 }
 0x12c   : > { %3999 = vmatmul.msk.bf16.gmra.mxu0 %vm785_vm0, %v4254_v63  ;;  %v5284_v55 = vpop.f32.mrf.mxu3  ;;  %v937_v18 = vmax.f32 %v879_v56, 0.0  ;;  %v933_v3 = vmax.f32 %v869_v28, 0.0  ;;  %v959_v14 = vpack.c.bf16 %v932_v27, %v931_v19  ;;  %v1250_v28 = vld [vmem:[%s4664_s29 + $0xa8] sm:$0xff]  ;;  %v1498_v27 = vadd.f32 %v5282_v17, %v5036_v24  ;;  %v1241_v19 = vld [vmem:[%s4664_s29 + $0x60] sm:$0xff] }
 0x12d   : > { %v1274_v36 = vpack.c.bf16 %v1258_v30, %v1250_v28  ;;  %v1544_v17 = vadd.f32 %v5268_v9, %v5056_v48  ;;  %v7026_v30 = vld [vmem:[#allocation22_spill] sm:$0xff] }
 0x131   : > { %v880_v25 = vpop.f32.mrf.mxu0 }
 0x132   : > { %v881_v4 = vadd.f32 %v880_v25, %v4947_v37  ;;  %v934_v37 = vmax.f32 %v871_v10, 0.0 }
 0x133   : > { %v1499_v12 = vpop.f32.mrf.mxu2 }
 0x134   : > { %v938_v6 = vmax.f32 %v881_v4, 0.0  ;;  %v1548_v59 = vpop.f32.mrf.mxu3  ;;  %v960_v22 = vpack.c.bf16 %v934_v37, %v933_v3  ;;  %v1233_v3 = vld [vmem:[%s4664_s29 + $0x20] sm:$0xff] }
 0x135   : > { %v1549_v29 = vadd.f32 %v1548_v59, %v5053_v47  ;;  %v4255_v59 = vld [vmem:[%s6953_s8] sm:$0xff] }
 0x136   : > { %v962_v16 = vpack.c.bf16 %v938_v6, %v937_v18 }
 0x138   : > { %1131 = vmatpush.bf16.msrb.mxu0 %v962_v16  ;;  %4282 = vmatpush.bf16.msra.mxu1 %v962_v16  ;;  %v1257_v16 = vld [vmem:[%s4664_s29 + $0xe0] sm:$0xff] }
 0x139   : > { %v5293_v38 = vpop.f32.mrf.mxu0  ;;  %4112 = vmatmul.msk.bf16.vlgmr.msra.gmra.mxu2 %vm785_vm0, %v4707_v26  ;;  %4120 = vmatmul.msk.bf16.vlgmr.msra.gmra.mxu3 %vm785_vm0, %v4707_v26 }
 0x13a   : > { %7021 = vst [vmem:[#allocation23_spill] sm:$0xff] %v5293_v38 }
 0x13b   : > { %v1560_v54 = vpop.f32.mrf.mxu2 }
 0x13c   : > { %1132 = vmatpush.bf16.msrb.mxu0 %v961_v45  ;;  %4283 = vmatpush.bf16.msra.mxu1 %v961_v45  ;;  %v1609_v63 = vpop.f32.mrf.mxu3  ;;  %v1561_v44 = vadd.f32 %v1560_v54, %v5161_v46  ;;  %v1234_v54 = vld [vmem:[%s4664_s29 + $0x28] sm:$0xff] }
 0x13d   : > { %v1610_v61 = vadd.f32 %v1609_v63, %v5161_v46 }
 0x13e   : > { %v1847_v4 = vmax.f32 %v1561_v44, 0.0  ;;  %v1966_v44 = vmax.f32 %v1549_v29, 0.0 }
 0x13f   : > { %v1848_v39 = vmax.f32 %v1610_v61, 0.0  ;;  %v1265_v61 = vpack.c.bf16 %v1241_v19, %v1233_v3  ;;  %v7028_v19 = vld [vmem:[#allocation13_spill] sm:$0xff] }
 0x140   : > { %1133 = vmatpush.bf16.msrb.mxu0 %v960_v22  ;;  %4284 = vmatpush.bf16.msra.mxu1 %v960_v22  ;;  %v1547_v22 = vadd.f32 %v5284_v55, %v5036_v24 }
 0x141   : > { %v5303_v43 = vpop.f32.mrf.mxu0 }
 0x142   : > { %7022 = vst [vmem:[#allocation24_spill] sm:$0xff] %v5303_v43 }
 0x143   : > { %v1562_v58 = vpop.f32.mrf.mxu2 }
 0x144   : > { %1134 = vmatpush.bf16.msrb.mxu0 %v959_v14  ;;  %4285 = vmatpush.bf16.msra.mxu1 %v959_v14  ;;  %v1611_v56 = vpop.f32.mrf.mxu3  ;;  %v1563_v26 = vadd.f32 %v1562_v58, %v5159_v60  ;;  %v1495_v14 = vadd.f32 %v5266_v8, %v5056_v48  ;;  %v1957_v8 = vmax.f32 %v1498_v27, 0.0 }
 0x145   : > { %v1612_v25 = vadd.f32 %v1611_v56, %v5159_v60  ;;  %v7025_v56 = vld [vmem:[#allocation15_spill] sm:$0xff] }
 0x146   : > { %v1855_v18 = vmax.f32 %v1563_v26, 0.0  ;;  %v1493_v26 = vadd.f32 %v5256_v33, %v7025_v56 }
 0x147   : > { %v1856_v6 = vmax.f32 %v1612_v25, 0.0  ;;  %v1542_v25 = vadd.f32 %v5258_v11, %v7025_v56 }
 0x148   : > { %1135 = vmatpush.bf16.msrb.mxu0 %v5113_v40  ;;  %4286 = vmatpush.bf16.msra.mxu1 %v5113_v40  ;;  %v1249_v40 = vld [vmem:[%s4664_s29 + $0xa0] sm:$0xff]  ;;  %v5320_v10 = vpack.c.bf16 %v1855_v18, %v1847_v4  ;;  %v1958_v4 = vmax.f32 %v1547_v22, 0.0  ;;  %v1949_v18 = vmax.f32 %v1495_v14, 0.0  ;;  %v1941_v11 = vmax.f32 %v1493_v26, 0.0  ;;  %v4257_v14 = vld [vmem:[%s6953_s8 + $0x10] sm:$0xff] }
 0x149   : > { %v5311_v57 = vpop.f32.mrf.mxu0  ;;  %4113 = vmatmul.msk.bf16.gmra.mxu2 %vm785_vm0, %v4738_v34  ;;  %4121 = vmatmul.msk.bf16.gmra.mxu3 %vm785_vm0, %v4738_v34  ;;  %v5322_v2 = vpack.c.bf16 %v1856_v6, %v1848_v39  ;;  %v1273_v34 = vpack.c.bf16 %v1257_v16, %v1249_v40  ;;  %v1942_v29 = vmax.f32 %v1542_v25, 0.0 }
 0x14a   : > { %7023 = vst [vmem:[#allocation25_spill] sm:$0xff] %v5311_v57  ;;  %v2030_v40 = vpack.c.bf16 %v1966_v44, %v1958_v4  ;;  %v2021_v3 = vpack.c.bf16 %v1949_v18, %v1941_v11 }
 0x14b   : > { %v1565_v37 = vpop.f32.mrf.mxu2 }
 0x14c   : > { %1136 = vmatpush.bf16.msrb.mxu0 %v5075_v53  ;;  %4287 = vmatpush.bf16.msra.mxu1 %v5075_v53  ;;  %v1500_v53 = vadd.f32 %v1499_v12, %v5053_v47  ;;  %v1614_v45 = vpop.f32.mrf.mxu3  ;;  %v1242_v12 = vld [vmem:[%s4664_s29 + $0x68] sm:$0xff]  ;;  %v1566_v9 = vadd.f32 %v1565_v37, %v5128_v1  ;;  %s7210_s29 = sld [smem:[#allocation83_spill]] }
 0x14d   : > { %v1266_v58 = vpack.c.bf16 %v1242_v12, %v1234_v54  ;;  %v1615_v39 = vadd.f32 %v1614_v45, %v5128_v1 }
 0x14e   : > { %v1965_v55 = vmax.f32 %v1500_v53, 0.0  ;;  %v1863_v37 = vmax.f32 %v1566_v9, 0.0 }
 0x14f   : > { %v1864_v45 = vmax.f32 %v1615_v39, 0.0  ;;  %v5396_v39 = vld [vmem:[%s6947_s2 + $0x18] sm:$0xff] }
 0x150   : > { %1137 = vmatpush.bf16.msrb.mxu0 %v5038_v31  ;;  %4288 = vmatpush.bf16.msra.mxu1 %v5038_v31  ;;  %v4256_v31 = vld [vmem:[%s6953_s8 + $0x8] sm:$0xff]  ;;  %v2029_v6 = vpack.c.bf16 %v1965_v55, %v1957_v8 }
 0x151   : > { %v5339_v63 = vpop.f32.mrf.mxu0 }
 0x152   : > { %7024 = vst [vmem:[#allocation26_spill] sm:$0xff] %v5339_v63  ;;  %s3805_s30 = scalar_lea.hbm %s7210_s29, %s4281_s12  ;;  %s4450_s12 = scalar_lea.hbm %s7210_s29, 512 }
 0x153   : > { %v1567_v16 = vpop.f32.mrf.mxu2  ;;  %s3808_s10 = sshll.u32 %s3805_s30, 4  ;;  %s3809_s10 = int_to_ptr.hbm [resolvable:$true] %s3808_s10 }
 0x154   : > { %1138 = vmatpush.bf16.msrb.mxu0 %v5034_v23  ;;  %4289 = vmatpush.bf16.msra.mxu1 %v5034_v23  ;;  %v1950_v23 = vmax.f32 %v1544_v17, 0.0  ;;  %v1616_v28 = vpop.f32.mrf.mxu3  ;;  %v1568_v53 = vadd.f32 %v1567_v16, %v7026_v30  ;;  %v7029_v17 = vld [vmem:[#allocation20_spill] sm:$0xff]  ;;  %v7033_v16 = vld [vmem:[#allocation19_spill] sm:$0xff]  ;;  %s4444_s16 = sshra.s32 %s3809_s10, 4  ;;  %s4445_s16 = int_to_ptr.hbm [resolvable:$true] %s4444_s16 }
 0x155   : > { %v1617_v33 = vadd.f32 %v1616_v28, %v7026_v30  ;;  %v5422_v28 = vld [vmem:[%s6947_s2 + $0x8] sm:$0xff]  ;;  %s4446_s24 = scalar_lea.hbm %s4445_s16, 256  ;;  %p4451_p8 = scmp.lt.s32.totalorder %s4445_s16, %s7210_s29 }
 0x156   : > { %v2022_v27 = vpack.c.bf16 %v1950_v23, %v1942_v29  ;;  %p4447_p5 = scmp.ne.s32.totalorder %s4445_s16, %s4446_s24  ;;  %p4452_p10 = scmp.lt.s32.totalorder %s4450_s12, %s4446_s24 }
 0x157   : > { %1139 = vmatmul.bf16.vlgmr.msrb.gmra.mxu0 %v4255_v59  ;;  %1144 = vmatmul.bf16.vlgmr.msra.gmra.mxu1 %v4256_v31 }
 0x158   : > { %1655 = vmatpush.bf16.msrb.mxu1 %v1273_v34  ;;  %1704 = vmatpush.bf16.msra.mxu0 %v1274_v36  ;;  %v1871_v34 = vmax.f32 %v1568_v53, 0.0  ;;  %v1872_v36 = vmax.f32 %v1617_v33, 0.0  ;;  %v7034_v53 = vld [vmem:[#allocation18_spill] sm:$0xff]  ;;  %p4448_p6 = pnand %p4447_p5, %p4635_p9  ;;  %p4453_p13 = por %p4452_p10, %p4451_p8 }
 0x159   : > { %v5361_v22 = vpop.f32.mrf.mxu0  ;;  %4114 = vmatmul.msk.bf16.gmra.mxu2 %vm785_vm0, %v7028_v19  ;;  %4122 = vmatmul.msk.bf16.gmra.mxu3 %vm785_vm0, %v7028_v19 }
 0x15a   : > { %7027 = vst [vmem:[#allocation22_spill] sm:$0xff] %v5361_v22  ;;  %v5367_v54 = vpack.c.bf16 %v1871_v34, %v1863_v37  ;;  %v5369_v12 = vpack.c.bf16 %v1872_v36, %v1864_v45  ;;  %v5433_v34 = vld [vmem:[%s6947_s2 + $0x20] sm:$0xff]  ;;  %p4449_p7 = pneg %p4448_p6 }
 0x15b   : > { %v1570_v59 = vpop.f32.mrf.mxu2 }
 0x15c   : > { %1656 = vmatpush.bf16.msrb.mxu1 %v1265_v61  ;;  %1705 = vmatpush.bf16.msra.mxu0 %v1266_v58  ;;  %v1619_v31 = vpop.f32.mrf.mxu3  ;;  %v1571_v55 = vadd.f32 %v1570_v59, %v7029_v17  ;;  %v4259_v59 = vld [vmem:[%s6953_s8 + $0x20] sm:$0xff]  ;;  %p4454_p0 = pnand %p4453_p13, %p4449_p7 }
 0x15d   : > { %v1620_v44 = vadd.f32 %v1619_v31, %v7029_v17 }
 0x15e   : > { %v1879_v25 = vmax.f32 %v1571_v55, 0.0 }
 0x15f   : > { %v1880_v8 = vmax.f32 %v1620_v44, 0.0 }
 0x160   : > { %2197 = vmatpush.bf16.msra.mxu1 %v2029_v6  ;;  %2246 = vmatpush.bf16.msrb.mxu0 %v2030_v40  ;;  %v4258_v40 = vld [vmem:[%s6953_s8 + $0x18] sm:$0xff] }
 0x161   : > { %v5380_v61 = vpop.f32.mrf.mxu0 }
 0x162   : > { %7030 = vst [vmem:[#allocation13_spill] sm:$0xff] %v5380_v61 }
 0x164   : > { %2198 = vmatpush.bf16.msra.mxu1 %v2021_v3  ;;  %2247 = vmatpush.bf16.msrb.mxu0 %v2022_v27  ;;  %v1621_v58 = vpop.f32.mrf.mxu3 }
 0x167   : > { %1149 = vmatmul.bf16.gmra.mxu1 %v4257_v14  ;;  %v5455_v14 = vld [vmem:[%s6947_s2 + $0x10] sm:$0xff] }
 0x168   : > { %2199 = vmatpush.bf16.msra.mxu1 %v5252_v42  ;;  %2248 = vmatpush.bf16.msrb.mxu0 %v5254_v32  ;;  %v5385_v42 = vld [vmem:[%s6947_s2] sm:$0xff]  ;;  %v1572_v32 = vpop.f32.mrf.mxu2 }
 0x169   : > { %4104 = vmatmul.msk.bf16.vlgmr.msra.gmra.mxu0 %vm785_vm0, %v5385_v42  ;;  %4115 = vmatmul.msk.bf16.gmra.mxu2 %vm785_vm0, %v5396_v39  ;;  %v5408_v6 = vpop.f32.mrf.mxu0 }
 0x16a   : > { %4123 = vmatmul.msk.bf16.gmra.mxu3 %vm785_vm0, %v5396_v39  ;;  %7032 = vst [vmem:[#allocation20_spill] sm:$0xff] %v5408_v6 }
 0x16c   : > { %2200 = vmatpush.bf16.msra.mxu1 %v5208_v41  ;;  %2249 = vmatpush.bf16.msrb.mxu0 %v5210_v15  ;;  %v7031_v41 = vld [vmem:[#allocation21_spill] sm:$0xff]  ;;  %v1624_v23 = vpop.f32.mrf.mxu3 }
 0x16d   : > { %v1573_v26 = vadd.f32 %v1572_v32, %v7031_v41  ;;  %v1622_v15 = vadd.f32 %v1621_v58, %v7031_v41  ;;  %v5462_v32 = vld [vmem:[%s6947_s2 + $0x28] sm:$0xff] }
 0x16f   : > { %v1887_v4 = vmax.f32 %v1573_v26, 0.0  ;;  %v1888_v9 = vmax.f32 %v1622_v15, 0.0 }
 0x170   : > { %2201 = vmatpush.bf16.msra.mxu1 %v5189_v0  ;;  %2250 = vmatpush.bf16.msrb.mxu0 %v5191_v21  ;;  %v1575_v21 = vpop.f32.mrf.mxu2 }
 0x171   : > { %v5402_v18 = vpack.c.bf16 %v1887_v4, %v1879_v25  ;;  %v5404_v0 = vpack.c.bf16 %v1888_v9, %v1880_v8  ;;  %v5428_v29 = vpop.f32.mrf.mxu0  ;;  %v4260_v25 = vld [vmem:[%s6953_s8 + $0x28] sm:$0xff] }
 0x172   : > { %7035 = vst [vmem:[#allocation21_spill] sm:$0xff] %v5428_v29 }
 0x174   : > { %2202 = vmatpush.bf16.msra.mxu1 %v5194_v13  ;;  %2251 = vmatpush.bf16.msrb.mxu0 %v5196_v49  ;;  %v1576_v13 = vadd.f32 %v1575_v21, %v7033_v16  ;;  %v1625_v49 = vadd.f32 %v1624_v23, %v7033_v16 }
 0x176   : > { %v1896_v11 = vmax.f32 %v1625_v49, 0.0 }
 0x177   : > { %1154 = vmatmul.bf16.gmra.mxu1 %v4258_v40 }
 0x178   : > { %2203 = vmatpush.bf16.msra.mxu1 %v5217_v62  ;;  %2252 = vmatpush.bf16.msrb.mxu0 %v5224_v50  ;;  %v1577_v62 = vpop.f32.mrf.mxu2  ;;  %v1626_v50 = vpop.f32.mrf.mxu3 }
 0x179   : > { %4105 = vmatmul.msk.bf16.gmra.mxu0 %vm785_vm0, %v5422_v28  ;;  %v1578_v33 = vadd.f32 %v1577_v62, %v7034_v53  ;;  %4116 = vmatmul.msk.bf16.gmra.mxu2 %vm785_vm0, %v5433_v34  ;;  %v5450_v31 = vpop.f32.mrf.mxu0 }
 0x17a   : > { %4124 = vmatmul.msk.bf16.gmra.mxu3 %vm785_vm0, %v5433_v34  ;;  %7036 = vst [vmem:[#allocation19_spill] sm:$0xff] %v5450_v31 }
 0x17b   : > { %v1903_v37 = vmax.f32 %v1578_v33, 0.0 }
 0x17c   : > { %2204 = vmatpush.bf16.msra.mxu1 %v5206_v51  ;;  %2253 = vmatpush.bf16.msrb.mxu0 %v5212_v52  ;;  %v1627_v51 = vadd.f32 %v1626_v50, %v7034_v53  ;;  %v1895_v52 = vmax.f32 %v1576_v13, 0.0  ;;  %v4261_v13 = vld [vmem:[%s6953_s8 + $0x30] sm:$0xff] }
 0x17e   : > { %v1904_v45 = vmax.f32 %v1627_v51, 0.0  ;;  %v5439_v36 = vpack.c.bf16 %v1903_v37, %v1895_v52  ;;  %v4262_v51 = vld [vmem:[%s6953_s8 + $0x38] sm:$0xff] }
 0x180   : > { %v5441_v3 = vpack.c.bf16 %v1904_v45, %v1896_v11  ;;  %v5443_v27 = vpop.f32.mrf.mxu2  ;;  %v5445_v19 = vpop.f32.mrf.mxu3 }
 0x181   : > { %v5468_v58 = vpop.f32.mrf.mxu0 }
 0x182   : > { %7037 = vst [vmem:[#allocation18_spill] sm:$0xff] %v5468_v58 }
 0x187   : > { %1159 = vmatmul.bf16.gmra.mxu1 %v4259_v59 }
 0x188   : > { %v1582_v55 = vpop.f32.mrf.mxu2  ;;  %v1631_v44 = vpop.f32.mrf.mxu3 }
 0x189   : > { %4106 = vmatmul.msk.bf16.gmra.mxu0 %vm785_vm0, %v5455_v14  ;;  %4117 = vmatmul.msk.bf16.gmra.mxu2 %vm785_vm0, %v5462_v32  ;;  %v5475_v9 = vpop.f32.mrf.mxu0 }
 0x18a   : > { %4125 = vmatmul.msk.bf16.gmra.mxu3 %vm785_vm0, %v5462_v32  ;;  %7038 = vst [vmem:[#allocation27_spill] sm:$0xff] %v5475_v9 }
 0x190   : > { %v1585_v26 = vpop.f32.mrf.mxu2  ;;  %v1634_v15 = vpop.f32.mrf.mxu3 }
 0x191   : > { %v5481_v40 = vpop.f32.mrf.mxu0 }
 0x192   : > { %7039 = vst [vmem:[#allocation28_spill] sm:$0xff] %v5481_v40 }
 0x197   : > { %1164 = vmatmul.bf16.gmra.mxu1 %v4260_v25 }
 0x198   : > { %v1587_v8 = vpop.f32.mrf.mxu2  ;;  %v1636_v4 = vpop.f32.mrf.mxu3 }
 0x199   : > { %4107 = vmatmul.msk.bf16.gmra.mxu0 %vm785_vm0, %v5396_v39  ;;  %4118 = vmatmul.msk.bf16.gmra.mxu2 %vm785_vm0, %v4901_v20  ;;  %v5488_v50 = vpop.f32.mrf.mxu0  ;;  %v1588_v31 = vadd.f32 %v1587_v8, %v5079_v7  ;;  %v1637_v58 = vadd.f32 %v1636_v4, %v5079_v7 }
 0x19a   : > { %4126 = vmatmul.msk.bf16.gmra.mxu3 %vm785_vm0, %v4901_v20  ;;  %7040 = vst [vmem:[#allocation29_spill] sm:$0xff] %v5488_v50 }
 0x19b   : > { %v1935_v4 = vmax.f32 %v1588_v31, 0.0 }
 0x1a0   : > { %v1590_v21 = vpop.f32.mrf.mxu2  ;;  %v1639_v23 = vpop.f32.mrf.mxu3 }
 0x1a1   : > { %v5497_v52 = vpop.f32.mrf.mxu0 }
 0x1a2   : > { %7041 = vst [vmem:[#allocation30_spill] sm:$0xff] %v5497_v52  ;;  %v1591_v52 = vadd.f32 %v1590_v21, %v7025_v56 }
 0x1a4   : > { %v1943_v22 = vmax.f32 %v1591_v52, 0.0 }
 0x1a7   : > { %1169 = vmatmul.bf16.gmra.mxu1 %v4261_v13 }
 0x1a8   : > { %v1592_v49 = vpop.f32.mrf.mxu2  ;;  %v1641_v62 = vpop.f32.mrf.mxu3 }
 0x1a9   : > { %4108 = vmatmul.msk.bf16.gmra.mxu0 %vm785_vm0, %v5433_v34  ;;  %4119 = vmatmul.msk.bf16.gmra.mxu2 %vm785_vm0, %v4938_v35  ;;  %v1642_v25 = vadd.f32 %v1641_v62, %v5056_v48 }
 0x1aa   : > { %4127 = vmatmul.msk.bf16.gmra.mxu3 %vm785_vm0, %v4938_v35  ;;  %v1593_v35 = vadd.f32 %v1592_v49, %v5056_v48 }
 0x1ab   : > { %v1952_v49 = vmax.f32 %v1642_v25, 0.0  ;;  %v5519_v25 = vpop.f32.mrf.mxu0 }
 0x1ac   : > { %v1951_v6 = vmax.f32 %v1593_v35, 0.0  ;;  %v1936_v35 = vmax.f32 %v1637_v58, 0.0 }
 0x1b0   : > { %v1595_v20 = vpop.f32.mrf.mxu2  ;;  %v1644_v33 = vpop.f32.mrf.mxu3 }
 0x1b1   : > { %v1596_v11 = vadd.f32 %v1595_v20, %v5036_v24  ;;  %v1645_v37 = vadd.f32 %v1644_v33, %v5036_v24  ;;  %v1640_v20 = vadd.f32 %v1639_v23, %v7025_v56  ;;  %v7042_v23 = vld [vmem:[#allocation17_spill] sm:$0xff] }
 0x1b2   : > { %7043 = vst [vmem:[#allocation17_spill] sm:$0xff] %v5519_v25 }
 0x1b3   : > { %v1959_v9 = vmax.f32 %v1596_v11, 0.0  ;;  %v1960_v33 = vmax.f32 %v1645_v37, 0.0  ;;  %v1944_v21 = vmax.f32 %v1640_v20, 0.0  ;;  %v1583_v11 = vadd.f32 %v1582_v55, %v7042_v23 }
 0x1b7   : > { %1174 = vmatmul.bf16.gmra.mxu1 %v4262_v51 }
 0x1b8   : > { %v1597_v45 = vpop.f32.mrf.mxu2  ;;  %v1646_v59 = vpop.f32.mrf.mxu3 }
 0x1b9   : > { %4109 = vmatmul.msk.bf16.gmra.mxu0 %vm785_vm0, %v5462_v32  ;;  %v1598_v13 = vadd.f32 %v1597_v45, %v5053_v47  ;;  %v1647_v50 = vadd.f32 %v1646_v59, %v5053_v47  ;;  %v1586_v45 = vadd.f32 %v1585_v26, %v5073_v5  ;;  %v1635_v59 = vadd.f32 %v1634_v15, %v5073_v5  ;;  %v7044_v26 = vld [vmem:[#allocation16_spill] sm:$0xff] }
 0x1ba   : > { %v1581_v15 = vadd.f32 %v5443_v27, %v7044_v26 }
 0x1bb   : > { %v1967_v51 = vmax.f32 %v1598_v13, 0.0  ;;  %v1968_v40 = vmax.f32 %v1647_v50, 0.0  ;;  %v1632_v50 = vadd.f32 %v1631_v44, %v7042_v23  ;;  %v1927_v52 = vmax.f32 %v1586_v45, 0.0  ;;  %v1006_v45 = vpop.permute.xlu2 %1005 }
 0x1bc   : > { %v1928_v55 = vmax.f32 %v1635_v59, 0.0  ;;  %v1919_v44 = vmax.f32 %v1583_v11, 0.0  ;;  %v1911_v31 = vmax.f32 %v1581_v15, 0.0  ;;  %v1016_v15 = vpop.permute.xlu1 %1015 }
 0x1bd   : > { %v2031_v29 = vpack.c.bf16 %v1967_v51, %v1959_v9  ;;  %v2032_v62 = vpack.c.bf16 %v1968_v40, %v1960_v33  ;;  %v2023_v9 = vpack.c.bf16 %v1951_v6, %v1943_v22  ;;  %v2024_v40 = vpack.c.bf16 %v1952_v49, %v1944_v21  ;;  %v5530_v22 = vld [vmem:[%s6947_s2 + $0x30] sm:$0xff]  ;;  %v5538_v49 = vpop.f32.mrf.mxu0 }
 0x1be   : > { %v1920_v13 = vmax.f32 %v1632_v50, 0.0  ;;  %v2015_v20 = vpack.c.bf16 %v1935_v4, %v1927_v52  ;;  %v2016_v33 = vpack.c.bf16 %v1936_v35, %v1928_v55  ;;  %7045 = vst [vmem:[#allocation16_spill] sm:$0xff] %v5538_v49 }
 0x1bf   : > { %2295 = vmatpush.bf16.msrb.mxu2 %v2031_v29  ;;  %2344 = vmatpush.bf16.msrb.mxu3 %v2032_v62  ;;  %v1630_v29 = vadd.f32 %v5445_v19, %v7044_v26  ;;  %v2007_v19 = vpack.c.bf16 %v1919_v44, %v1911_v31 }
 0x1c0   : > { %v5515_v37 = vpop.f32.mrf.mxu2  ;;  %v5517_v8 = vpop.f32.mrf.mxu3 }
 0x1c1   : > { %v1912_v58 = vmax.f32 %v1630_v29, 0.0 }
 0x1c3   : > { %2296 = vmatpush.bf16.msrb.mxu2 %v2023_v9  ;;  %2345 = vmatpush.bf16.msrb.mxu3 %v2024_v40  ;;  %v2008_v51 = vpack.c.bf16 %v1920_v13, %v1912_v58  ;;  %v1021_v13 = vpop.permute.xlu2 %1020 }
 0x1c7   : > { %2297 = vmatpush.bf16.msrb.mxu2 %v2015_v20  ;;  %2346 = vmatpush.bf16.msrb.mxu3 %v2016_v33  ;;  %v5586_v20 = vld [vmem:[%s6949_s4 + $0x8] sm:$0xff] }
 0x1c8   : > { %4096 = vmatmul.msk.bf16.vlgmr.msrb.gmra.mxu1 %vm785_vm0, %v5385_v42  ;;  %v5534_v6 = vpop.f32.mrf.mxu2  ;;  %v5536_v27 = vpop.f32.mrf.mxu3 }
 0x1c9   : > { %4110 = vmatmul.msk.bf16.gmra.mxu0 %vm785_vm0, %v5530_v22 }
 0x1cb   : > { %2298 = vmatpush.bf16.msrb.mxu2 %v2007_v19  ;;  %2347 = vmatpush.bf16.msrb.mxu3 %v2008_v51 }
 0x1cf   : > { %2299 = vmatpush.bf16.msrb.mxu2 %v5439_v36  ;;  %2348 = vmatpush.bf16.msrb.mxu3 %v5441_v3  ;;  %v5555_v36 = vld [vmem:[%s6947_s2 + $0x38] sm:$0xff] }
 0x1d0   : > { %v5542_v42 = vpop.f32.mrf.mxu2  ;;  %v5544_v62 = vpop.f32.mrf.mxu3 }
 0x1d3   : > { %2300 = vmatpush.bf16.msrb.mxu2 %v5402_v18  ;;  %2349 = vmatpush.bf16.msrb.mxu3 %v5404_v0 }
 0x1d4   : > { %v1140_v59 = vpop.f32.mrf.mxu0  ;;  %v1145_v21 = vpop.f32.mrf.mxu1 }
 0x1d5   : > { %v1141_v11 = vadd.f32 %v1140_v59, %v1006_v45  ;;  %v1146_v29 = vadd.f32 %v1145_v21, %v1016_v15 }
 0x1d7   : > { %v1180_v50 = vmax.f32 %v1141_v11, 0.0  ;;  %2301 = vmatpush.bf16.msrb.mxu2 %v5367_v54  ;;  %2350 = vmatpush.bf16.msrb.mxu3 %v5369_v12  ;;  %v5566_v54 = vld [vmem:[%s6949_s4] sm:$0xff]  ;;  %v1011_v12 = vpop.permute.xlu0 %1010 }
 0x1d8   : > { %4097 = vmatmul.msk.bf16.gmra.mxu1 %vm785_vm0, %v5422_v28  ;;  %v5559_v18 = vpop.f32.mrf.mxu2  ;;  %v5561_v0 = vpop.f32.mrf.mxu3 }
 0x1d9   : > { %4111 = vmatmul.msk.bf16.gmra.mxu0 %vm785_vm0, %v5555_v36  ;;  %1196 = vxpose.xlu1.b32.start [1/16] (narrow) %v1180_v50, 8 }
 0x1db   : > { %2302 = vmatpush.bf16.msrb.mxu2 %v5320_v10  ;;  %2351 = vmatpush.bf16.msrb.mxu3 %v5322_v2  ;;  %v1182_v10 = vmax.f32 %v1146_v29, 0.0 }
 0x1dc   : > { %v1142_v28 = vpop.f32.mrf.mxu0  ;;  %v1147_v3 = vpop.f32.mrf.mxu1 }
 0x1dd   : > { %v1143_v4 = vadd.f32 %v1142_v28, %v1011_v12  ;;  %v1148_v33 = vadd.f32 %v1147_v3, %v1021_v13 }
 0x1de   : > { %2303 = vmatmul.bf16.vlgmr.msrb.gmra.mxu2 %v5566_v54  ;;  %2352 = vmatmul.bf16.vlgmr.msrb.gmra.mxu3 %v5566_v54 }
 0x1df   : > { %v1181_v35 = vmax.f32 %v1143_v4, 0.0  ;;  %v1183_v51 = vmax.f32 %v1148_v33, 0.0  ;;  %v1026_v12 = vpop.permute.xlu0 %1025 }
 0x1e0   : > { %v5572_v9 = vpop.f32.mrf.mxu2  ;;  %v5574_v40 = vpop.f32.mrf.mxu3 }
 0x1e1   : > { %1197 = vxpose.xlu1.b32.cont [2/16] (narrow) %v1181_v35, 8 }
 0x1e4   : > { %v1150_v52 = vpop.f32.mrf.mxu1 }
 0x1e5   : > { %v1151_v28 = vadd.f32 %v1150_v52, %v1026_v12 }
 0x1e6   : > { %v1707_v55 = vpop.f32.mrf.mxu0 }
 0x1e7   : > { %v1708_v31 = vadd.f32 %v1707_v55, %v5161_v46  ;;  %v1184_v35 = vmax.f32 %v1151_v28, 0.0  ;;  %v1031_v55 = vpop.permute.xlu1 %1030 }
 0x1e8   : > { %4098 = vmatmul.msk.bf16.gmra.mxu1 %vm785_vm0, %v5455_v14  ;;  %v5578_v2 = vpop.f32.mrf.mxu2  ;;  %v5580_v44 = vpop.f32.mrf.mxu3 }
 0x1e9   : > { %2254 = vmatmul.bf16.vlgmr.msrb.gmra.mxu0 %v5566_v54  ;;  %1198 = vxpose.xlu1.b32.cont [3/16] (narrow) %v1182_v10, 8  ;;  %v1850_v45 = vmax.f32 %v1708_v31, 0.0  ;;  %v5608_v10 = vld [vmem:[%s6949_s4 + $0x10] sm:$0xff] }
 0x1ea   : > { %7047 = vst [vmem:[#allocation32_spill] sm:$0xff] %v5608_v10 }
 0x1ec   : > { %v1152_v58 = vpop.f32.mrf.mxu1 }
 0x1ed   : > { %v1153_v52 = vadd.f32 %v1152_v58, %v1031_v55  ;;  %v1036_v58 = vpop.permute.xlu2 %1035 }
 0x1ee   : > { %v1709_v19 = vpop.f32.mrf.mxu0  ;;  %2308 = vmatmul.bf16.gmra.mxu2 %v5586_v20  ;;  %2357 = vmatmul.bf16.gmra.mxu3 %v5586_v20 }
 0x1ef   : > { %v1710_v14 = vadd.f32 %v1709_v19, %v5159_v60  ;;  %v1185_v19 = vmax.f32 %v1153_v52, 0.0 }
 0x1f0   : > { %v5592_v21 = vpop.f32.mrf.mxu2  ;;  %v5594_v11 = vpop.f32.mrf.mxu3 }
 0x1f1   : > { %v1858_v59 = vmax.f32 %v1710_v14, 0.0  ;;  %1199 = vxpose.xlu1.b32.cont [4/16] (narrow) %v1183_v51, 8 }
 0x1f3   : > { %v5596_v50 = vpack.c.bf16 %v1858_v59, %v1850_v45 }
 0x1f4   : > { %v1155_v3 = vpop.f32.mrf.mxu1 }
 0x1f5   : > { %7046 = vst [vmem:[#allocation31_spill] sm:$0xff] %v5596_v50  ;;  %v1156_v28 = vadd.f32 %v1155_v3, %v1036_v58 }
 0x1f6   : > { %v1712_v4 = vpop.f32.mrf.mxu0 }
 0x1f7   : > { %v1713_v13 = vadd.f32 %v1712_v4, %v5128_v1  ;;  %v1186_v55 = vmax.f32 %v1156_v28, 0.0 }
 0x1f8   : > { %4099 = vmatmul.msk.bf16.gmra.mxu1 %vm785_vm0, %v5396_v39  ;;  %v5600_v15 = vpop.f32.mrf.mxu2  ;;  %v5602_v29 = vpop.f32.mrf.mxu3 }
 0x1f9   : > { %2259 = vmatmul.bf16.gmra.mxu0 %v5586_v20  ;;  %1200 = vxpose.xlu1.b32.cont [5/16] (narrow) %v1184_v35, 8  ;;  %v1866_v14 = vmax.f32 %v1713_v13, 0.0  ;;  %v1041_v13 = vpop.permute.xlu0 %1040 }
 0x1fc   : > { %v1157_v33 = vpop.f32.mrf.mxu1 }
 0x1fd   : > { %v1158_v3 = vadd.f32 %v1157_v33, %v1041_v13  ;;  %v1046_v33 = vpop.permute.xlu1 %1045 }
 0x1fe   : > { %v1714_v31 = vpop.f32.mrf.mxu0  ;;  %2313 = vmatmul.bf16.gmra.mxu2 %v5608_v10  ;;  %2362 = vmatmul.bf16.gmra.mxu3 %v5608_v10 }
 0x1ff   : > { %v1715_v39 = vadd.f32 %v1714_v31, %v7026_v30  ;;  %v1187_v58 = vmax.f32 %v1158_v3, 0.0 }
 0x200   : > { %v5614_v45 = vpop.f32.mrf.mxu2  ;;  %v5616_v59 = vpop.f32.mrf.mxu3 }
 0x201   : > { %v1874_v51 = vmax.f32 %v1715_v39, 0.0  ;;  %1201 = vxpose.xlu1.b32.cont [6/16] (narrow) %v1185_v19, 8  ;;  %v5630_v39 = vld [vmem:[%s6949_s4 + $0x18] sm:$0xff] }
 0x202   : > { %7049 = vst [vmem:[#allocation34_spill] sm:$0xff] %v5630_v39 }
 0x203   : > { %v5618_v12 = vpack.c.bf16 %v1874_v51, %v1866_v14 }
 0x204   : > { %v1160_v4 = vpop.f32.mrf.mxu1 }
 0x205   : > { %7048 = vst [vmem:[#allocation33_spill] sm:$0xff] %v5618_v12  ;;  %v5658_v12 = vpop.permute.xlu1 %2141 }
 0x206   : > { %v1717_v35 = vpop.f32.mrf.mxu0  ;;  %7052 = vst [vmem:[#allocation37_spill] sm:$0xff] %v5658_v12 }
 0x207   : > { %v1718_v19 = vadd.f32 %v1717_v35, %v7029_v17  ;;  %v1161_v35 = vadd.f32 %v1160_v4, %v1046_v33  ;;  %v1056_v4 = vpop.permute.xlu0 %1055 }
 0x208   : > { %4100 = vmatmul.msk.bf16.gmra.mxu1 %vm785_vm0, %v5433_v34  ;;  %v5622_v31 = vpop.f32.mrf.mxu2  ;;  %v5624_v52 = vpop.f32.mrf.mxu3 }
 0x209   : > { %2264 = vmatmul.bf16.gmra.mxu0 %v5608_v10  ;;  %1202 = vxpose.xlu1.b32.cont [7/16] (narrow) %v1186_v55, 8  ;;  %v1882_v28 = vmax.f32 %v1718_v19, 0.0  ;;  %v1188_v63 = vmax.f32 %v1161_v35, 0.0  ;;  %v1051_v19 = vpop.permute.xlu2 %1050 }
 0x20c   : > { %v1162_v14 = vpop.f32.mrf.mxu1 }
 0x20e   : > { %v1719_v51 = vpop.f32.mrf.mxu0  ;;  %2318 = vmatmul.bf16.gmra.mxu2 %v5630_v39  ;;  %2367 = vmatmul.bf16.gmra.mxu3 %v5630_v39 }
 0x20f   : > { %v1720_v34 = vadd.f32 %v1719_v51, %v7031_v41 }
 0x210   : > { %v5636_v25 = vpop.f32.mrf.mxu2  ;;  %v5638_v49 = vpop.f32.mrf.mxu3 }
 0x211   : > { %v1890_v55 = vmax.f32 %v1720_v34, 0.0  ;;  %1203 = vxpose.xlu1.b32.cont [8/16] (narrow) %v1187_v58, 8  ;;  %v5652_v34 = vld [vmem:[%s6949_s4 + $0x20] sm:$0xff]  ;;  %v1163_v58 = vadd.f32 %v1162_v14, %v1051_v19 }
 0x212   : > { %7051 = vst [vmem:[#allocation36_spill] sm:$0xff] %v5652_v34 }
 0x213   : > { %v5640_v61 = vpack.c.bf16 %v1890_v55, %v1882_v28  ;;  %v1189_v35 = vmax.f32 %v1163_v58, 0.0 }
 0x214   : > { %v1165_v13 = vpop.f32.mrf.mxu1 }
 0x215   : > { %7050 = vst [vmem:[#allocation35_spill] sm:$0xff] %v5640_v61  ;;  %v1166_v14 = vadd.f32 %v1165_v13, %v1056_v4  ;;  %v5674_v13 = vpop.permute.xlu1 %2131 }
 0x216   : > { %v1722_v57 = vpop.f32.mrf.mxu0  ;;  %7057 = vst [vmem:[#allocation42_spill] sm:$0xff] %v5674_v13 }
 0x217   : > { %v1723_v28 = vadd.f32 %v1722_v57, %v7033_v16 }
 0x218   : > { %4101 = vmatmul.msk.bf16.gmra.mxu1 %vm785_vm0, %v5462_v32  ;;  %v5644_v51 = vpop.f32.mrf.mxu2  ;;  %v5646_v3 = vpop.f32.mrf.mxu3 }
 0x219   : > { %2269 = vmatmul.bf16.gmra.mxu0 %v5630_v39  ;;  %1204 = vxpose.xlu1.b32.cont [9/16] (narrow) %v1188_v63, 8  ;;  %v1898_v63 = vmax.f32 %v1723_v28, 0.0  ;;  %v1061_v39 = vpop.permute.xlu0 %1060  ;;  %v5667_v28 = vpop.permute.xlu2 %2146 }
 0x21a   : > { %7055 = vst [vmem:[#allocation40_spill] sm:$0xff] %v5667_v28 }
 0x21c   : > { %v1167_v55 = vpop.f32.mrf.mxu1 }
 0x21d   : > { %v1168_v4 = vadd.f32 %v1167_v55, %v1061_v39  ;;  %v5684_v13 = vpop.permute.xlu1 %2121 }
 0x21e   : > { %v1724_v33 = vpop.f32.mrf.mxu0  ;;  %2323 = vmatmul.bf16.gmra.mxu2 %v5652_v34  ;;  %2372 = vmatmul.bf16.gmra.mxu3 %v5652_v34  ;;  %7061 = vst [vmem:[#allocation46_spill] sm:$0xff] %v5684_v13 }
 0x21f   : > { %v1725_v32 = vadd.f32 %v1724_v33, %v7034_v53  ;;  %v1190_v33 = vmax.f32 %v1166_v14, 0.0 }
 0x220   : > { %v1786_v43 = vpop.f32.mrf.mxu2  ;;  %v1835_v50 = vpop.f32.mrf.mxu3 }
 0x221   : > { %v1906_v38 = vmax.f32 %v1725_v32, 0.0  ;;  %1205 = vxpose.xlu1.b32.cont [10/16] (narrow) %v1189_v35, 8 }
 0x223   : > { %v5660_v61 = vpack.c.bf16 %v1906_v38, %v1898_v63  ;;  %v5672_v38 = vld [vmem:[%s6949_s4 + $0x28] sm:$0xff]  ;;  %v1191_v63 = vmax.f32 %v1168_v4, 0.0 }
 0x224   : > { %v1170_v57 = vpop.f32.mrf.mxu1  ;;  %7056 = vst [vmem:[#allocation41_spill] sm:$0xff] %v5672_v38 }
 0x225   : > { %7053 = vst [vmem:[#allocation38_spill] sm:$0xff] %v5660_v61 }
 0x226   : > { %v5662_v19 = vpop.f32.mrf.mxu0 }
 0x227   : > { %7054 = vst [vmem:[#allocation39_spill] sm:$0xff] %v5662_v19 }
 0x228   : > { %4102 = vmatmul.msk.bf16.gmra.mxu1 %vm785_vm0, %v5530_v22  ;;  %v1788_v10 = vpop.f32.mrf.mxu2  ;;  %v1837_v58 = vpop.f32.mrf.mxu3 }
 0x229   : > { %2274 = vmatmul.bf16.gmra.mxu0 %v5652_v34  ;;  %1206 = vxpose.xlu1.b32.cont [11/16] (narrow) %v1190_v33, 8  ;;  %v1066_v22 = vpop.permute.xlu0 %1065  ;;  %v5680_v33 = vpop.permute.xlu2 %2136 }
 0x22a   : > { %7059 = vst [vmem:[#allocation44_spill] sm:$0xff] %v5680_v33  ;;  %v1171_v12 = vadd.f32 %v1170_v57, %v1066_v22  ;;  %v1789_v57 = vadd.f32 %v1788_v10, %v5056_v48  ;;  %v1838_v22 = vadd.f32 %v1837_v58, %v5056_v48  ;;  %v1784_v58 = vadd.f32 %v5644_v51, %v5079_v7 }
 0x22b   : > { %v1831_v51 = vadd.f32 %v5638_v49, %v5073_v5  ;;  %v1777_v49 = vadd.f32 %v5614_v45, %v7044_v26 }
 0x22c   : > { %v1172_v32 = vpop.f32.mrf.mxu1  ;;  %v1192_v39 = vmax.f32 %v1171_v12, 0.0 }
 0x22e   : > { %v5676_v35 = vpop.f32.mrf.mxu0  ;;  %2328 = vmatmul.bf16.gmra.mxu2 %v5672_v38  ;;  %2377 = vmatmul.bf16.gmra.mxu3 %v5672_v38 }
 0x22f   : > { %7058 = vst [vmem:[#allocation43_spill] sm:$0xff] %v5676_v35 }
 0x230   : > { %v1791_v14 = vpop.f32.mrf.mxu2  ;;  %v1840_v28 = vpop.f32.mrf.mxu3 }
 0x231   : > { %1207 = vxpose.xlu1.b32.cont [12/16] (narrow) %v1191_v63, 8  ;;  %v1792_v55 = vadd.f32 %v1791_v14, %v5036_v24  ;;  %v1841_v19 = vadd.f32 %v1840_v28, %v5036_v24  ;;  %v1071_v63 = vpop.permute.xlu0 %1070  ;;  %v1787_v14 = vadd.f32 %v1786_v43, %v7025_v56  ;;  %v1836_v28 = vadd.f32 %v1835_v50, %v7025_v56  ;;  %v5710_v56 = vpop.permute.xlu2 %2126 }
 0x232   : > { %v1173_v13 = vadd.f32 %v1172_v32, %v1071_v63  ;;  %v1955_v50 = vmax.f32 %v1789_v57, 0.0  ;;  %v1956_v32 = vmax.f32 %v1838_v22, 0.0  ;;  %v1076_v57 = vpop.permute.xlu1 %1075 }
 0x234   : > { %v1175_v34 = vpop.f32.mrf.mxu1 }
 0x236   : > { %v5682_v61 = vpop.f32.mrf.mxu0 }
 0x237   : > { %7060 = vst [vmem:[#allocation45_spill] sm:$0xff] %v5682_v61  ;;  %v1964_v61 = vmax.f32 %v1841_v19, 0.0  ;;  %v1782_v19 = vadd.f32 %v5636_v25, %v5073_v5  ;;  %v1939_v25 = vmax.f32 %v1784_v58, 0.0 }
 0x238   : > { %4103 = vmatmul.msk.bf16.gmra.mxu1 %vm785_vm0, %v5555_v36  ;;  %v1793_v4 = vpop.f32.mrf.mxu2  ;;  %v1842_v35 = vpop.f32.mrf.mxu3  ;;  %v5700_v36 = vld [vmem:[%s6949_s4 + $0x30] sm:$0xff] }
 0x239   : > { %2279 = vmatmul.bf16.gmra.mxu0 %v5672_v38  ;;  %v1794_v33 = vadd.f32 %v1793_v4, %v5053_v47  ;;  %v1843_v12 = vadd.f32 %v1842_v35, %v5053_v47  ;;  %1208 = vxpose.xlu1.b32.cont [13/16] (narrow) %v1192_v39, 8  ;;  %v1963_v38 = vmax.f32 %v1792_v55, 0.0  ;;  %v1833_v35 = vadd.f32 %v5646_v3, %v5079_v7 }
 0x23a   : > { %v1947_v3 = vmax.f32 %v1787_v14, 0.0  ;;  %v1193_v55 = vmax.f32 %v1173_v13, 0.0  ;;  %v1826_v13 = vadd.f32 %v5616_v59, %v7044_v26  ;;  %v1931_v14 = vmax.f32 %v1782_v19, 0.0 }
 0x23b   : > { %v1971_v10 = vmax.f32 %v1794_v33, 0.0  ;;  %v1972_v24 = vmax.f32 %v1843_v12, 0.0  ;;  %v1948_v33 = vmax.f32 %v1836_v28, 0.0  ;;  %v1932_v28 = vmax.f32 %v1831_v51, 0.0 }
 0x23c   : > { %v5706_v39 = vpop.f32.mrf.mxu1  ;;  %v2027_v22 = vpack.c.bf16 %v1955_v50, %v1947_v3  ;;  %v2019_v45 = vpack.c.bf16 %v1939_v25, %v1931_v14  ;;  %v1772_v59 = vadd.f32 %v5592_v21, %v7033_v16  ;;  %v1916_v19 = vmax.f32 %v1826_v13, 0.0 }
 0x23d   : > { %v2035_v4 = vpack.c.bf16 %v1971_v10, %v1963_v38  ;;  %v2036_v63 = vpack.c.bf16 %v1972_v24, %v1964_v61  ;;  %v1779_v24 = vadd.f32 %v5622_v31, %v7042_v23  ;;  %v1828_v61 = vadd.f32 %v5624_v52, %v7042_v23 }
 0x23e   : > { %v5708_v43 = vpop.f32.mrf.mxu0  ;;  %2333 = vmatmul.bf16.gmra.mxu2 %v5700_v36  ;;  %2382 = vmatmul.bf16.gmra.mxu3 %v5700_v36  ;;  %v1940_v38 = vmax.f32 %v1833_v35, 0.0  ;;  %v2028_v12 = vpack.c.bf16 %v1956_v32, %v1948_v33  ;;  %v1176_v10 = vadd.f32 %v1175_v34, %v1076_v57  ;;  %v1774_v31 = vadd.f32 %v5600_v15, %v7034_v53  ;;  %v5736_v15 = vpop.permute.xlu2 %2111 }
 0x23f   : > { %2491 = vmatpush.bf16.msra.mxu2 %v2035_v4  ;;  %2540 = vmatpush.bf16.msra.mxu3 %v2036_v63  ;;  %v1823_v52 = vadd.f32 %v5602_v29, %v7034_v53  ;;  %v1923_v58 = vmax.f32 %v1779_v24, 0.0  ;;  %v1924_v35 = vmax.f32 %v1828_v61, 0.0  ;;  %v1821_v34 = vadd.f32 %v5594_v11, %v7033_v16  ;;  %v1081_v57 = vpop.permute.xlu1 %1080  ;;  %v5744_v24 = vpop.permute.xlu0 %2116 }
 0x240   : > { %v2020_v4 = vpack.c.bf16 %v1940_v38, %v1932_v28  ;;  %v1915_v63 = vmax.f32 %v1777_v49, 0.0  ;;  %v1194_v51 = vmax.f32 %v1176_v10, 0.0  ;;  %v1769_v29 = vadd.f32 %v5578_v2, %v7031_v41  ;;  %v5751_v2 = vld [vmem:[%s6949_s4 + $0x38] sm:$0xff] }
 0x241   : > { %1209 = vxpose.xlu1.b32.cont [14/16] (narrow) %v1193_v55, 8  ;;  %v1818_v3 = vadd.f32 %v5580_v44, %v7031_v41  ;;  %v1907_v21 = vmax.f32 %v1774_v31, 0.0  ;;  %v1908_v33 = vmax.f32 %v1823_v52, 0.0  ;;  %v2012_v55 = vpack.c.bf16 %v1924_v35, %v1916_v19 }
 0x242   : > { %v2011_v11 = vpack.c.bf16 %v1923_v58, %v1915_v63  ;;  %v1767_v61 = vadd.f32 %v5572_v9, %v7029_v17  ;;  %v1816_v44 = vadd.f32 %v5574_v40, %v7029_v17  ;;  %v1899_v25 = vmax.f32 %v1772_v59, 0.0 }
 0x243   : > { %2492 = vmatpush.bf16.msra.mxu2 %v2027_v22  ;;  %2541 = vmatpush.bf16.msra.mxu3 %v2028_v12  ;;  %v1900_v38 = vmax.f32 %v1821_v34, 0.0  ;;  %v1178_v22 = vadd.f32 %v5706_v39, %v1081_v57  ;;  %v1764_v12 = vadd.f32 %v5559_v18, %v7026_v30  ;;  %v1813_v9 = vadd.f32 %v5561_v0, %v7026_v30 }
 0x244   : > { %v1891_v13 = vmax.f32 %v1769_v29, 0.0  ;;  %v1892_v14 = vmax.f32 %v1818_v3, 0.0  ;;  %v2003_v31 = vpack.c.bf16 %v1907_v21, %v1899_v25  ;;  %v1762_v52 = vadd.f32 %v5542_v42, %v5128_v1 }
 0x245   : > { %v1658_v50 = vpop.f32.mrf.mxu1  ;;  %v2004_v40 = vpack.c.bf16 %v1908_v33, %v1900_v38  ;;  %v1811_v18 = vadd.f32 %v5544_v62, %v5128_v1  ;;  %v1883_v0 = vmax.f32 %v1767_v61, 0.0  ;;  %v1884_v58 = vmax.f32 %v1816_v44, 0.0 }
 0x246   : > { %v5730_v32 = vpop.f32.mrf.mxu0  ;;  %v1659_v49 = vadd.f32 %v1658_v50, %v5161_v46  ;;  %v1195_v35 = vmax.f32 %v1178_v22, 0.0  ;;  %v1759_v50 = vadd.f32 %v5534_v6, %v5159_v60  ;;  %v1808_v42 = vadd.f32 %v5536_v27, %v5159_v60  ;;  %v7062_v22 = vld [vmem:[#allocation14_spill] sm:$0xff] }
 0x247   : > { %2493 = vmatpush.bf16.msra.mxu2 %v2019_v45  ;;  %2542 = vmatpush.bf16.msra.mxu3 %v2020_v4  ;;  %v1875_v59 = vmax.f32 %v1764_v12, 0.0  ;;  %v1876_v34 = vmax.f32 %v1813_v9, 0.0  ;;  %v1995_v63 = vpack.c.bf16 %v1891_v13, %v1883_v0  ;;  %v1996_v19 = vpack.c.bf16 %v1892_v14, %v1884_v58 }
 0x248   : > { %2205 = vmatmul.bf16.vlgmr.msra.gmra.mxu1 %v5566_v54  ;;  %v1849_v45 = vmax.f32 %v1659_v49, 0.0  ;;  %v1757_v29 = vadd.f32 %v5515_v37, %v5161_v46  ;;  %v1806_v6 = vadd.f32 %v5517_v8, %v5161_v46  ;;  %v1867_v3 = vmax.f32 %v1762_v52, 0.0 }
 0x249   : > { %2284 = vmatmul.bf16.gmra.mxu0 %v5700_v36  ;;  %1210 = vxpose.xlu1.b32.cont [15/16] (narrow) %v1194_v51, 8  ;;  %v5772_v51 = vpop.permute.xlu2 %2101  ;;  %v1868_v21 = vmax.f32 %v1811_v18, 0.0  ;;  %v1859_v27 = vmax.f32 %v1759_v50, 0.0  ;;  %v1860_v33 = vmax.f32 %v1808_v42, 0.0 }
 0x24a   : > { %v1987_v57 = vpack.c.bf16 %v1875_v59, %v1867_v3  ;;  %v1851_v44 = vmax.f32 %v1757_v29, 0.0  ;;  %v1852_v25 = vmax.f32 %v1806_v6, 0.0 }
 0x24b   : > { %2494 = vmatpush.bf16.msra.mxu2 %v2011_v11  ;;  %2543 = vmatpush.bf16.msra.mxu3 %v2012_v55  ;;  %v1988_v61 = vpack.c.bf16 %v1876_v34, %v1868_v21 }
 0x24c   : > { %v1979_v46 = vpack.c.bf16 %v1859_v27, %v1851_v44  ;;  %v1980_v37 = vpack.c.bf16 %v1860_v33, %v1852_v25 }
 0x24d   : > { %v1660_v28 = vpop.f32.mrf.mxu1 }
 0x24e   : > { %v1739_v10 = vpop.f32.mrf.mxu0  ;;  %v1661_v39 = vadd.f32 %v1660_v28, %v5159_v60  ;;  %2338 = vmatmul.bf16.gmra.mxu2 %v5751_v2  ;;  %2387 = vmatmul.bf16.gmra.mxu3 %v5751_v2  ;;  %v5780_v60 = vpop.permute.xlu0 %2106 }
 0x24f   : > { %2495 = vmatpush.bf16.msra.mxu2 %v2003_v31  ;;  %2544 = vmatpush.bf16.msra.mxu3 %v2004_v40  ;;  %v1740_v14 = vadd.f32 %v1739_v10, %v5056_v48  ;;  %v7063_v40 = vld [vmem:[#allocation15_spill] sm:$0xff]  ;;  %v1735_v10 = vadd.f32 %v5708_v43, %v5079_v7 }
 0x250   : > { %v1857_v4 = vmax.f32 %v1661_v39, 0.0  ;;  %v1738_v52 = vadd.f32 %v5730_v32, %v7063_v40  ;;  %v7067_v43 = vld [vmem:[#allocation39_spill] sm:$0xff] }
 0x251   : > { %1211 = vxpose.xlu1.b32.end [16/16] (narrow) %v1195_v35, 8  ;;  %v5784_v8 = vpop.permute.xlu2 %2096  ;;  %v1954_v50 = vmax.f32 %v1740_v14, 0.0  ;;  %v1938_v29 = vmax.f32 %v1735_v10, 0.0  ;;  %v1728_v21 = vadd.f32 %v7067_v43, %v7044_v26 }
 0x252   : > { %v5774_v62 = vpack.c.bf16 %v1857_v4, %v1849_v45  ;;  %v7064_v45 = vld [vmem:[#allocation45_spill] sm:$0xff]  ;;  %v1946_v59 = vmax.f32 %v1738_v52, 0.0 }
 0x253   : > { %2496 = vmatpush.bf16.msra.mxu2 %v1995_v63  ;;  %2545 = vmatpush.bf16.msra.mxu3 %v1996_v19  ;;  %v1733_v4 = vadd.f32 %v7064_v45, %v5073_v5  ;;  %v7066_v63 = vld [vmem:[#allocation43_spill] sm:$0xff] }
 0x254   : > { %v1730_v19 = vadd.f32 %v7066_v63, %v7042_v23  ;;  %v2026_v6 = vpack.c.bf16 %v1954_v50, %v1946_v59 }
 0x255   : > { %v1663_v11 = vpop.f32.mrf.mxu1  ;;  %v1930_v33 = vmax.f32 %v1733_v4, 0.0  ;;  %v7072_v4 = vld [vmem:[#allocation38_spill] sm:$0xff] }
 0x256   : > { %v1742_v55 = vpop.f32.mrf.mxu0  ;;  %v1664_v38 = vadd.f32 %v1663_v11, %v5128_v1  ;;  %v5788_v13 = vpop.permute.xlu0 %2081  ;;  %v1922_v25 = vmax.f32 %v1730_v19, 0.0  ;;  %v7074_v19 = vld [vmem:[#allocation34_spill] sm:$0xff] }
 0x257   : > { %2497 = vmatpush.bf16.msra.mxu2 %v1987_v57  ;;  %2546 = vmatpush.bf16.msra.mxu3 %v1988_v61  ;;  %v1743_v12 = vadd.f32 %v1742_v55, %v7062_v22  ;;  %v7068_v55 = vld [vmem:[#allocation32_spill] sm:$0xff] }
 0x258   : > { %2210 = vmatmul.bf16.gmra.mxu1 %v5586_v20  ;;  %v1865_v1 = vmax.f32 %v1664_v38, 0.0  ;;  %v2018_v38 = vpack.c.bf16 %v1938_v29, %v1930_v33  ;;  %v7075_v29 = vld [vmem:[#allocation35_spill] sm:$0xff] }
 0x259   : > { %2289 = vmatmul.bf16.gmra.mxu0 %v5751_v2  ;;  %v1962_v39 = vmax.f32 %v1743_v12, 0.0  ;;  %v5807_v3 = vpop.permute.xlu2 %2071  ;;  %v1914_v12 = vmax.f32 %v1728_v21, 0.0 }
 0x25b   : > { %2498 = vmatpush.bf16.msra.mxu2 %v1979_v46  ;;  %2547 = vmatpush.bf16.msra.mxu3 %v1980_v37 }
 0x25d   : > { %v1665_v9 = vpop.f32.mrf.mxu1 }
 0x25e   : > { %v1744_v49 = vpop.f32.mrf.mxu0  ;;  %v1666_v28 = vadd.f32 %v1665_v9, %v7026_v30  ;;  %2499 = vmatmul.bf16.vlgmr.msra.gmra.mxu2 %v5566_v54  ;;  %2548 = vmatmul.bf16.vlgmr.msra.gmra.mxu3 %v5566_v54  ;;  %v5811_v27 = vpop.permute.xlu0 %2076 }
 0x25f   : > { %v1745_v31 = vadd.f32 %v1744_v49, %v5053_v47 }
 0x260   : > { %v1873_v18 = vmax.f32 %v1666_v28, 0.0 }
 0x261   : > { %v1970_v0 = vmax.f32 %v1745_v31, 0.0  ;;  %v2304_v58 = vpop.f32.mrf.mxu2  ;;  %v2353_v35 = vpop.f32.mrf.mxu3 }
 0x262   : > { %v5799_v42 = vpack.c.bf16 %v1873_v18, %v1865_v1  ;;  %v2305_v11 = vadd.f32 %v2304_v58, %v5807_v3  ;;  %v2354_v57 = vadd.f32 %v2353_v35, %v5807_v3 }
 0x263   : > { %v2034_v30 = vpack.c.bf16 %v1970_v0, %v1962_v39  ;;  %v5821_v39 = vpop.permute.xlu1 %2091  ;;  %v2010_v0 = vpack.c.bf16 %v1922_v25, %v1914_v12 }
 0x264   : > { %v2591_v9 = vmax.f32 %v2305_v11, 0.0  ;;  %v2592_v31 = vmax.f32 %v2354_v57, 0.0 }
 0x265   : > { %2442 = vmatpush.bf16.msra.mxu0 %v2034_v30  ;;  %v1668_v34 = vpop.f32.mrf.mxu1 }
 0x266   : > { %v5803_v32 = vpop.f32.mrf.mxu0  ;;  %v1669_v49 = vadd.f32 %v1668_v34, %v7029_v17 }
 0x267   : > { %7065 = vst [vmem:[#allocation14_spill] sm:$0xff] %v5803_v32 }
 0x268   : > { %2215 = vmatmul.bf16.gmra.mxu1 %v7068_v55  ;;  %v1881_v17 = vmax.f32 %v1669_v49, 0.0 }
 0x269   : > { %2443 = vmatpush.bf16.msra.mxu0 %v2026_v6  ;;  %v2306_v61 = vpop.f32.mrf.mxu2  ;;  %v2355_v44 = vpop.f32.mrf.mxu3 }
 0x26a   : > { %v2307_v46 = vadd.f32 %v2306_v61, %v5811_v27  ;;  %v2356_v37 = vadd.f32 %v2355_v44, %v5811_v27 }
 0x26b   : > { %v5835_v34 = vpop.permute.xlu1 %2086 }
 0x26c   : > { %v2599_v14 = vmax.f32 %v2307_v46, 0.0  ;;  %v2600_v28 = vmax.f32 %v2356_v37, 0.0  ;;  %v7076_v46 = vld [vmem:[#allocation33_spill] sm:$0xff] }
 0x26d   : > { %2444 = vmatpush.bf16.msra.mxu0 %v2018_v38  ;;  %v1670_v52 = vpop.f32.mrf.mxu1 }
 0x26e   : > { %v5819_v1 = vpop.f32.mrf.mxu0  ;;  %v1671_v18 = vadd.f32 %v1670_v52, %v7031_v41  ;;  %2504 = vmatmul.bf16.gmra.mxu2 %v5586_v20  ;;  %2553 = vmatmul.bf16.gmra.mxu3 %v5586_v20  ;;  %v5826_v58 = vpack.c.bf16 %v2599_v14, %v2591_v9  ;;  %v5828_v35 = vpack.c.bf16 %v2600_v28, %v2592_v31 }
 0x26f   : > { %7069 = vst [vmem:[#allocation15_spill] sm:$0xff] %v5819_v1  ;;  %v7125_v1 = vld [vmem:[#allocation40_spill] sm:$0xff] }
 0x270   : > { %7070 = vst [vmem:[#allocation45_spill] sm:$0xff] %v5826_v58  ;;  %v1889_v10 = vmax.f32 %v1671_v18, 0.0 }
 0x271   : > { %7071 = vst [vmem:[#allocation43_spill] sm:$0xff] %v5828_v35  ;;  %2445 = vmatpush.bf16.msra.mxu0 %v2010_v0  ;;  %v2309_v50 = vpop.f32.mrf.mxu2  ;;  %v2358_v30 = vpop.f32.mrf.mxu3 }
 0x272   : > { %v5830_v45 = vpack.c.bf16 %v1889_v10, %v1881_v17  ;;  %v2310_v63 = vadd.f32 %v2309_v50, %v5788_v13  ;;  %v2359_v6 = vadd.f32 %v2358_v30, %v5788_v13  ;;  %v7081_v10 = vld [vmem:[#allocation36_spill] sm:$0xff] }
 0x274   : > { %v2607_v57 = vmax.f32 %v2310_v63, 0.0  ;;  %v2608_v37 = vmax.f32 %v2359_v6, 0.0 }
 0x275   : > { %2446 = vmatpush.bf16.msra.mxu0 %v7072_v4  ;;  %v1673_v59 = vpop.f32.mrf.mxu1 }
 0x276   : > { %v5833_v41 = vpop.f32.mrf.mxu0  ;;  %v1674_v61 = vadd.f32 %v1673_v59, %v7033_v16  ;;  %v7080_v16 = vld [vmem:[#allocation31_spill] sm:$0xff] }
 0x277   : > { %7073 = vst [vmem:[#allocation39_spill] sm:$0xff] %v5833_v41 }
 0x278   : > { %2220 = vmatmul.bf16.gmra.mxu1 %v7074_v19  ;;  %v1897_v14 = vmax.f32 %v1674_v61, 0.0 }
 0x279   : > { %2447 = vmatpush.bf16.msra.mxu0 %v7075_v29  ;;  %v2311_v43 = vpop.f32.mrf.mxu2  ;;  %v2360_v21 = vpop.f32.mrf.mxu3 }
 0x27a   : > { %v2312_v33 = vadd.f32 %v2311_v43, %v5835_v34  ;;  %v2361_v11 = vadd.f32 %v2360_v21, %v5835_v34 }
 0x27c   : > { %v2615_v44 = vmax.f32 %v2312_v33, 0.0  ;;  %v2616_v25 = vmax.f32 %v2361_v11, 0.0 }
 0x27d   : > { %2448 = vmatpush.bf16.msra.mxu0 %v7076_v46  ;;  %v1675_v38 = vpop.f32.mrf.mxu1 }
 0x27e   : > { %v1676_v12 = vadd.f32 %v1675_v38, %v7034_v53  ;;  %2509 = vmatmul.bf16.gmra.mxu2 %v7068_v55  ;;  %2558 = vmatmul.bf16.gmra.mxu3 %v7068_v55  ;;  %v5848_v9 = vpack.c.bf16 %v2615_v44, %v2607_v57  ;;  %v5850_v49 = vpack.c.bf16 %v2616_v25, %v2608_v37  ;;  %v5852_v31 = vpop.f32.mrf.mxu0 }
 0x27f   : > { %7079 = vst [vmem:[#allocation34_spill] sm:$0xff] %v5852_v31 }
 0x280   : > { %7077 = vst [vmem:[#allocation32_spill] sm:$0xff] %v5848_v9  ;;  %v1905_v28 = vmax.f32 %v1676_v12, 0.0  ;;  %v7086_v12 = vld [vmem:[#allocation41_spill] sm:$0xff] }
 0x281   : > { %7078 = vst [vmem:[#allocation38_spill] sm:$0xff] %v5850_v49  ;;  %2449 = vmatpush.bf16.msra.mxu0 %v7080_v16  ;;  %v2314_v52 = vpop.f32.mrf.mxu2  ;;  %v2363_v18 = vpop.f32.mrf.mxu3 }
 0x282   : > { %v5855_v0 = vpack.c.bf16 %v1905_v28, %v1897_v14  ;;  %v2315_v17 = vadd.f32 %v2314_v52, %v5821_v39  ;;  %v2364_v50 = vadd.f32 %v2363_v18, %v5821_v39 }
 0x284   : > { %2450 = vmatmul.bf16.vlgmr.msra.gmra.mxu0 %v5566_v54  ;;  %v2623_v6 = vmax.f32 %v2315_v17, 0.0  ;;  %v2624_v33 = vmax.f32 %v2364_v50, 0.0 }
 0x285   : > { %v5858_v53 = vpop.f32.mrf.mxu1 }
 0x286   : > { %v5863_v59 = vpop.f32.mrf.mxu0 }
 0x287   : > { %7082 = vst [vmem:[#allocation35_spill] sm:$0xff] %v5863_v59 }
 0x288   : > { %2225 = vmatmul.bf16.gmra.mxu1 %v7081_v10 }
 0x289   : > { %v2316_v30 = vpop.f32.mrf.mxu2  ;;  %v2365_v4 = vpop.f32.mrf.mxu3 }
 0x28a   : > { %v2317_v63 = vadd.f32 %v2316_v30, %v5784_v8  ;;  %v2366_v29 = vadd.f32 %v2365_v4, %v5784_v8 }
 0x28c   : > { %v2631_v43 = vmax.f32 %v2317_v63, 0.0  ;;  %v2632_v21 = vmax.f32 %v2366_v29, 0.0 }
 0x28d   : > { %v1680_v11 = vpop.f32.mrf.mxu1 }
 0x28e   : > { %2514 = vmatmul.bf16.gmra.mxu2 %v7074_v19  ;;  %2563 = vmatmul.bf16.gmra.mxu3 %v7074_v19  ;;  %v5869_v57 = vpack.c.bf16 %v2631_v43, %v2623_v6  ;;  %v5871_v61 = vpack.c.bf16 %v2632_v21, %v2624_v33  ;;  %v5874_v46 = vpop.f32.mrf.mxu0 }
 0x28f   : > { %7085 = vst [vmem:[#allocation36_spill] sm:$0xff] %v5874_v46 }
 0x290   : > { %7083 = vst [vmem:[#allocation33_spill] sm:$0xff] %v5869_v57 }
 0x291   : > { %7084 = vst [vmem:[#allocation31_spill] sm:$0xff] %v5871_v61  ;;  %v2319_v44 = vpop.f32.mrf.mxu2  ;;  %v2368_v25 = vpop.f32.mrf.mxu3 }
 0x292   : > { %v2320_v38 = vadd.f32 %v2319_v44, %v5772_v51  ;;  %v2369_v14 = vadd.f32 %v2368_v25, %v5772_v51 }
 0x294   : > { %2455 = vmatmul.bf16.gmra.mxu0 %v5586_v20  ;;  %v2639_v17 = vmax.f32 %v2320_v38, 0.0  ;;  %v2640_v4 = vmax.f32 %v2369_v14, 0.0 }
 0x295   : > { %v1683_v37 = vpop.f32.mrf.mxu1 }
 0x296   : > { %v5881_v29 = vpop.f32.mrf.mxu0 }
 0x298   : > { %2230 = vmatmul.bf16.gmra.mxu1 %v7086_v12 }
 0x299   : > { %v2321_v28 = vpop.f32.mrf.mxu2  ;;  %v2370_v16 = vpop.f32.mrf.mxu3 }
 0x29a   : > { %v2322_v52 = vadd.f32 %v2321_v28, %v5780_v60  ;;  %v2371_v18 = vadd.f32 %v2370_v16, %v5780_v60 }
 0x29c   : > { %v2647_v50 = vmax.f32 %v2322_v52, 0.0  ;;  %v2648_v30 = vmax.f32 %v2371_v18, 0.0 }
 0x29d   : > { %v1685_v63 = vpop.f32.mrf.mxu1 }
 0x29e   : > { %2519 = vmatmul.bf16.gmra.mxu2 %v7081_v10  ;;  %2568 = vmatmul.bf16.gmra.mxu3 %v7081_v10  ;;  %v5885_v6 = vpack.c.bf16 %v2647_v50, %v2639_v17  ;;  %v5887_v43 = vpack.c.bf16 %v2648_v30, %v2640_v4  ;;  %v5892_v44 = vpop.f32.mrf.mxu0  ;;  %v1686_v58 = vadd.f32 %v1685_v63, %v5079_v7 }
 0x29f   : > { %v1679_v7 = vadd.f32 %v5858_v53, %v7044_v26 }
 0x2a0   : > { %7087 = vst [vmem:[#allocation41_spill] sm:$0xff] %v5885_v6 }
 0x2a1   : > { %7088 = vst [vmem:[#allocation47_spill] sm:$0xff] %v5887_v43  ;;  %v5889_v21 = vpop.f32.mrf.mxu2 }
 0x2a2   : > { %7089 = vst [vmem:[#allocation48_spill] sm:$0xff] %v5889_v21 }
 0x2a4   : > { %2460 = vmatmul.bf16.gmra.mxu0 %v7068_v55 }
 0x2a5   : > { %v1688_v33 = vpop.f32.mrf.mxu1 }
 0x2a6   : > { %v5901_v28 = vpop.f32.mrf.mxu0  ;;  %v1689_v35 = vadd.f32 %v1688_v33, %v7063_v40  ;;  %v1681_v40 = vadd.f32 %v1680_v11, %v7042_v23  ;;  %v1937_v33 = vmax.f32 %v1686_v58, 0.0 }
 0x2a8   : > { %2235 = vmatmul.bf16.gmra.mxu1 %v5700_v36 }
 0x2a9   : > { %v5895_v25 = vpop.f32.mrf.mxu2 }
 0x2aa   : > { %7090 = vst [vmem:[#allocation49_spill] sm:$0xff] %v5895_v25 }
 0x2ad   : > { %v1690_v38 = vpop.f32.mrf.mxu1 }
 0x2ae   : > { %2524 = vmatmul.bf16.gmra.mxu2 %v7086_v12  ;;  %2573 = vmatmul.bf16.gmra.mxu3 %v7086_v12  ;;  %v5907_v18 = vpop.f32.mrf.mxu0  ;;  %v1691_v30 = vadd.f32 %v1690_v38, %v5056_v48  ;;  %v1684_v48 = vadd.f32 %v1683_v37, %v5073_v5  ;;  %v1921_v5 = vmax.f32 %v1681_v40, 0.0 }
 0x2b0   : > { %v1953_v9 = vmax.f32 %v1691_v30, 0.0 }
 0x2b1   : > { %v5899_v14 = vpop.f32.mrf.mxu2 }
 0x2b2   : > { %7091 = vst [vmem:[#allocation50_spill] sm:$0xff] %v5899_v14 }
 0x2b4   : > { %2465 = vmatmul.bf16.gmra.mxu0 %v7074_v19 }
 0x2b5   : > { %v1693_v16 = vpop.f32.mrf.mxu1 }
 0x2b6   : > { %v1694_v17 = vadd.f32 %v1693_v16, %v7062_v22  ;;  %v1945_v22 = vmax.f32 %v1689_v35, 0.0  ;;  %v5925_v16 = vpop.f32.mrf.mxu0 }
 0x2b8   : > { %2240 = vmatmul.bf16.gmra.mxu1 %v5751_v2  ;;  %v1961_v49 = vmax.f32 %v1694_v17, 0.0  ;;  %v2025_v17 = vpack.c.bf16 %v1953_v9, %v1945_v22 }
 0x2b9   : > { %v5905_v52 = vpop.f32.mrf.mxu2 }
 0x2ba   : > { %7092 = vst [vmem:[#allocation51_spill] sm:$0xff] %v5905_v52 }
 0x2bd   : > { %v1695_v50 = vpop.f32.mrf.mxu1 }
 0x2be   : > { %v1696_v4 = vadd.f32 %v1695_v50, %v5053_v47  ;;  %2529 = vmatmul.bf16.gmra.mxu2 %v5700_v36  ;;  %2578 = vmatmul.bf16.gmra.mxu3 %v5700_v36  ;;  %v5920_v47 = vpop.f32.mrf.mxu3  ;;  %v5937_v9 = vpop.f32.mrf.mxu0 }
 0x2bf   : > { %7094 = vst [vmem:[#allocation53_spill] sm:$0xff] %v5920_v47 }
 0x2c0   : > { %v1969_v61 = vmax.f32 %v1696_v4, 0.0 }
 0x2c1   : > { %v5915_v43 = vpop.f32.mrf.mxu2 }
 0x2c2   : > { %7093 = vst [vmem:[#allocation52_spill] sm:$0xff] %v5915_v43  ;;  %v2033_v57 = vpack.c.bf16 %v1969_v61, %v1961_v49  ;;  %v1929_v49 = vmax.f32 %v1684_v48, 0.0 }
 0x2c4   : > { %2470 = vmatmul.bf16.gmra.mxu0 %v7081_v10  ;;  %2393 = vmatpush.bf16.msrb.mxu1 %v2033_v57  ;;  %v2017_v35 = vpack.c.bf16 %v1937_v33, %v1929_v49  ;;  %v1913_v57 = vmax.f32 %v1679_v7, 0.0 }
 0x2c5   : > { %v5922_v38 = vpop.f32.mrf.mxu1 }
 0x2c6   : > { %v2009_v23 = vpack.c.bf16 %v1921_v5, %v1913_v57  ;;  %v5935_v58 = vpop.f32.mrf.mxu3  ;;  %v5950_v50 = vpop.f32.mrf.mxu0 }
 0x2c7   : > { %7096 = vst [vmem:[#allocation55_spill] sm:$0xff] %v5935_v58 }
 0x2c8   : > { %2394 = vmatpush.bf16.msrb.mxu1 %v2025_v17 }
 0x2c9   : > { %v5929_v61 = vpop.f32.mrf.mxu2 }
 0x2ca   : > { %7095 = vst [vmem:[#allocation54_spill] sm:$0xff] %v5929_v61 }
 0x2cc   : > { %2395 = vmatpush.bf16.msrb.mxu1 %v2017_v35 }
 0x2cd   : > { %v5931_v37 = vpop.f32.mrf.mxu1 }
 0x2ce   : > { %2534 = vmatmul.bf16.gmra.mxu2 %v5751_v2  ;;  %2583 = vmatmul.bf16.gmra.mxu3 %v5751_v2  ;;  %v5946_v11 = vpop.f32.mrf.mxu3 }
 0x2cf   : > { %7098 = vst [vmem:[#allocation57_spill] sm:$0xff] %v5946_v11 }
 0x2d0   : > { %2396 = vmatpush.bf16.msrb.mxu1 %v2009_v23 }
 0x2d1   : > { %v5939_v26 = vpop.f32.mrf.mxu2 }
 0x2d2   : > { %7097 = vst [vmem:[#allocation56_spill] sm:$0xff] %v5939_v26  ;;  %v7122_v26 = vld [vmem:[#allocation37_spill] sm:$0xff] }
 0x2d4   : > { %2475 = vmatmul.bf16.gmra.mxu0 %v7086_v12  ;;  %2397 = vmatpush.bf16.msrb.mxu1 %v5855_v0 }
 0x2d5   : > { %v5943_v53 = vpop.f32.mrf.mxu1 }
 0x2d6   : > { %v5958_v48 = vpop.f32.mrf.mxu3 }
 0x2d7   : > { %7101 = vst [vmem:[#allocation60_spill] sm:$0xff] %v5958_v48 }
 0x2d8   : > { %2398 = vmatpush.bf16.msrb.mxu1 %v5830_v45  ;;  %v5962_v45 = vpop.f32.mrf.mxu0 }
 0x2d9   : > { %v5948_v63 = vpop.f32.mrf.mxu2 }
 0x2da   : > { %7099 = vst [vmem:[#allocation58_spill] sm:$0xff] %v5948_v63 }
 0x2dc   : > { %2399 = vmatpush.bf16.msrb.mxu1 %v5799_v42 }
 0x2dd   : > { %v5953_v30 = vpop.f32.mrf.mxu1 }
 0x2de   : > { %v5968_v40 = vpop.f32.mrf.mxu3 }
 0x2df   : > { %7103 = vst [vmem:[#allocation62_spill] sm:$0xff] %v5968_v40 }
 0x2e0   : > { %2400 = vmatpush.bf16.msrb.mxu1 %v5774_v62  ;;  %v5972_v33 = vpop.f32.mrf.mxu0 }
 0x2e1   : > { %v5956_v4 = vpop.f32.mrf.mxu2 }
 0x2e2   : > { %7100 = vst [vmem:[#allocation59_spill] sm:$0xff] %v5956_v4  ;;  %v7124_v4 = vld [vmem:[#allocation44_spill] sm:$0xff] }
 0x2e3   : > { %2401 = vmatmul.bf16.vlgmr.msrb.gmra.mxu1 %v5566_v54 }
 0x2e4   : > { %2480 = vmatmul.bf16.gmra.mxu0 %v5700_v36 }
 0x2e5   : > { %v5964_v0 = vpop.f32.mrf.mxu1 }
 0x2e6   : > { %v5980_v17 = vpop.f32.mrf.mxu3 }
 0x2e7   : > { %7105 = vst [vmem:[#allocation64_spill] sm:$0xff] %v5980_v17 }
 0x2e8   : > { %v5982_v7 = vpop.f32.mrf.mxu0 }
 0x2e9   : > { %v5966_v22 = vpop.f32.mrf.mxu2 }
 0x2ea   : > { %7102 = vst [vmem:[#allocation61_spill] sm:$0xff] %v5966_v22  ;;  %v7126_v22 = vld [vmem:[#allocation42_spill] sm:$0xff] }
 0x2ed   : > { %v5970_v42 = vpop.f32.mrf.mxu1 }
 0x2ee   : > { %v5988_v57 = vpop.f32.mrf.mxu3 }
 0x2ef   : > { %7108 = vst [vmem:[#allocation67_spill] sm:$0xff] %v5988_v57 }
 0x2f1   : > { %v5974_v62 = vpop.f32.mrf.mxu2 }
 0x2f2   : > { %7104 = vst [vmem:[#allocation63_spill] sm:$0xff] %v5974_v62 }
 0x2f3   : > { %2406 = vmatmul.bf16.gmra.mxu1 %v5586_v20 }
 0x2f4   : > { %2485 = vmatmul.bf16.gmra.mxu0 %v5751_v2 }
 0x2f5   : > { %v5978_v54 = vpop.f32.mrf.mxu1 }
 0x2f6   : > { %v5997_v11 = vpop.f32.mrf.mxu3 }
 0x2f7   : > { %7111 = vst [vmem:[#allocation70_spill] sm:$0xff] %v5997_v11 }
 0x2f9   : > { %v5984_v49 = vpop.f32.mrf.mxu2 }
 0x2fa   : > { %7106 = vst [vmem:[#allocation65_spill] sm:$0xff] %v5984_v49 }
 0x2fd   : > { %v2223_v5 = vpop.f32.mrf.mxu1 }
 0x301   : > { %v5986_v35 = vpop.f32.mrf.mxu0  ;;  %v5990_v23 = vpop.f32.mrf.mxu2 }
 0x302   : > { %7107 = vst [vmem:[#allocation66_spill] sm:$0xff] %v5986_v35  ;;  %v6004_v35 = vpop.f32.mrf.mxu3 }
 0x303   : > { %7109 = vst [vmem:[#allocation68_spill] sm:$0xff] %v5990_v23  ;;  %2411 = vmatmul.bf16.gmra.mxu1 %v7068_v55 }
 0x304   : > { %7113 = vst [vmem:[#allocation72_spill] sm:$0xff] %v6004_v35 }
 0x305   : > { %v2226_v20 = vpop.f32.mrf.mxu1 }
 0x309   : > { %v5993_v47 = vpop.f32.mrf.mxu0  ;;  %v5995_v58 = vpop.f32.mrf.mxu2 }
 0x30a   : > { %7110 = vst [vmem:[#allocation69_spill] sm:$0xff] %v5993_v47  ;;  %v6010_v47 = vpop.f32.mrf.mxu3 }
 0x30b   : > { %7115 = vst [vmem:[#allocation74_spill] sm:$0xff] %v6010_v47 }
 0x30d   : > { %v2228_v48 = vpop.f32.mrf.mxu1 }
 0x311   : > { %v5999_v40 = vpop.f32.mrf.mxu0  ;;  %v6001_v17 = vpop.f32.mrf.mxu2 }
 0x312   : > { %7112 = vst [vmem:[#allocation71_spill] sm:$0xff] %v5999_v40 }
 0x313   : > { %2416 = vmatmul.bf16.gmra.mxu1 %v7074_v19  ;;  %v6019_v19 = vpop.f32.mrf.mxu3 }
 0x314   : > { %7118 = vst [vmem:[#allocation77_spill] sm:$0xff] %v6019_v19 }
 0x315   : > { %v2231_v57 = vpop.f32.mrf.mxu1 }
 0x319   : > { %v6006_v6 = vpop.f32.mrf.mxu0  ;;  %v6008_v55 = vpop.f32.mrf.mxu2 }
 0x31a   : > { %7114 = vst [vmem:[#allocation73_spill] sm:$0xff] %v6006_v6 }
 0x31b   : > { %v6027_v61 = vpop.f32.mrf.mxu3 }
 0x31c   : > { %7120 = vst [vmem:[#allocation79_spill] sm:$0xff] %v6027_v61 }
 0x31d   : > { %v2233_v21 = vpop.f32.mrf.mxu1 }
 0x321   : > { %v6012_v25 = vpop.f32.mrf.mxu0  ;;  %v6014_v11 = vpop.f32.mrf.mxu2 }
 0x322   : > { %7116 = vst [vmem:[#allocation75_spill] sm:$0xff] %v6012_v25 }
 0x323   : > { %2421 = vmatmul.bf16.gmra.mxu1 %v7081_v10  ;;  %v6035_v32 = vpop.f32.mrf.mxu3 }
 0x324   : > { %7123 = vst [vmem:[#allocation37_spill] sm:$0xff] %v6035_v32 }
 0x325   : > { %v2236_v40 = vpop.f32.mrf.mxu1 }
 0x326   : > { %v2237_v41 = vadd.f32 %v2236_v40, %v7126_v22 }
 0x328   : > { %v2685_v23 = vmax.f32 %v2237_v41, 0.0  ;;  %v2222_v41 = vadd.f32 %v5978_v54, %v5772_v51  ;;  %v2214_v54 = vadd.f32 %v5953_v30, %v5835_v34  ;;  %v2207_v30 = vadd.f32 %v5922_v38, %v5807_v3 }
 0x329   : > { %v6017_v14 = vpop.f32.mrf.mxu0  ;;  %v6021_v35 = vpop.f32.mrf.mxu2 }
 0x32a   : > { %7117 = vst [vmem:[#allocation76_spill] sm:$0xff] %v6017_v14 }
 0x32b   : > { %v6046_v40 = vpop.f32.mrf.mxu3 }
 0x32d   : > { %v2238_v52 = vpop.f32.mrf.mxu1 }
 0x32e   : > { %v2239_v63 = vadd.f32 %v2238_v52, %v7124_v4  ;;  %v2229_v52 = vadd.f32 %v2228_v48, %v5744_v24 }
 0x330   : > { %v2693_v49 = vmax.f32 %v2239_v63, 0.0 }
 0x331   : > { %v6023_v6 = vpop.f32.mrf.mxu0  ;;  %v6025_v43 = vpop.f32.mrf.mxu2 }
 0x332   : > { %7119 = vst [vmem:[#allocation78_spill] sm:$0xff] %v6023_v6  ;;  %v2765_v46 = vpack.c.bf16 %v2693_v49, %v2685_v23  ;;  %v2637_v49 = vmax.f32 %v2222_v41, 0.0 }
 0x333   : > { %2426 = vmatmul.bf16.gmra.mxu1 %v7086_v12 }
 0x335   : > { %v2241_v47 = vpop.f32.mrf.mxu1 }
 0x336   : > { %v2242_v14 = vadd.f32 %v2241_v47, %v7122_v26  ;;  %v7128_v47 = vld [vmem:[#allocation46_spill] sm:$0xff] }
 0x337   : > { %v2232_v32 = vadd.f32 %v2231_v57, %v7128_v47 }
 0x338   : > { %v2701_v62 = vmax.f32 %v2242_v14, 0.0 }
 0x339   : > { %v6030_v25 = vpop.f32.mrf.mxu0  ;;  %v6032_v10 = vpop.f32.mrf.mxu2  ;;  %v2669_v14 = vmax.f32 %v2232_v32, 0.0  ;;  %v2217_v32 = vadd.f32 %v5964_v0, %v5821_v39  ;;  %v2209_v0 = vadd.f32 %v5931_v37, %v5811_v27 }
 0x33a   : > { %7121 = vst [vmem:[#allocation80_spill] sm:$0xff] %v6030_v25  ;;  %v2234_v25 = vadd.f32 %v2233_v21, %v5710_v56 }
 0x33b   : > { %v2597_v41 = vmax.f32 %v2209_v0, 0.0 }
 0x33d   : > { %v2243_v19 = vpop.f32.mrf.mxu1 }
 0x33e   : > { %v2244_v6 = vadd.f32 %v2243_v19, %v7125_v1  ;;  %v2677_v19 = vmax.f32 %v2234_v25, 0.0  ;;  %v2219_v25 = vadd.f32 %v5970_v42, %v5784_v8  ;;  %v2212_v42 = vadd.f32 %v5943_v53, %v5788_v13 }
 0x33f   : > { %v2291_v53 = vadd.f32 %v5972_v33, %v7122_v26  ;;  %v1212_v33 = vpop.trf.xlu1 }
 0x340   : > { %v2709_v61 = vmax.f32 %v2244_v6, 0.0  ;;  %v2227_v6 = vadd.f32 %v2226_v20, %v5736_v15  ;;  %v2757_v63 = vpack.c.bf16 %v2677_v19, %v2669_v14  ;;  %v2629_v23 = vmax.f32 %v2219_v25, 0.0 }
 0x341   : > { %v6040_v31 = vpop.f32.mrf.mxu0  ;;  %v2530_v12 = vpop.f32.mrf.mxu2  ;;  %v2613_v19 = vmax.f32 %v2214_v54, 0.0  ;;  %v2293_v14 = vadd.f32 %v5982_v7, %v7125_v1  ;;  %v2288_v7 = vadd.f32 %v5962_v45, %v7124_v4  ;;  %v2286_v54 = vadd.f32 %v5950_v50, %v7126_v22 }
 0x342   : > { %7127 = vst [vmem:[#allocation44_spill] sm:$0xff] %v6040_v31  ;;  %v2773_v59 = vpack.c.bf16 %v2709_v61, %v2701_v62  ;;  %v2224_v61 = vadd.f32 %v2223_v5, %v5780_v60  ;;  %v6060_v5 = vpop.f32.mrf.mxu3 }
 0x343   : > { %2431 = vmatmul.bf16.gmra.mxu1 %v5700_v36  ;;  %v2661_v36 = vmax.f32 %v2229_v52, 0.0  ;;  %v2621_v52 = vmax.f32 %v2217_v32, 0.0  ;;  %v2710_v38 = vmax.f32 %v2293_v14, 0.0  ;;  %v2531_v32 = vadd.f32 %v2530_v12, %v7126_v22 }
 0x344   : > { %2781 = vmatpush.bf16.msra.mxu1 %v2773_v59  ;;  %v2653_v59 = vmax.f32 %v2227_v6, 0.0  ;;  %v2645_v48 = vmax.f32 %v2224_v61, 0.0  ;;  %v2605_v61 = vmax.f32 %v2212_v42, 0.0  ;;  %v2694_v0 = vmax.f32 %v2288_v7, 0.0 }
 0x345   : > { %v2733_v6 = vpack.c.bf16 %v2629_v23, %v2621_v52  ;;  %v2528_v23 = vadd.f32 %v6032_v10, %v5710_v56  ;;  %v2283_v52 = vadd.f32 %v5937_v9, %v5710_v56  ;;  %v6091_v12 = vpack.c.bf16 %v1212_v33, %v1212_v33 }
 0x346   : > { %v2749_v62 = vpack.c.bf16 %v2661_v36, %v2653_v59  ;;  %v2741_v20 = vpack.c.bf16 %v2645_v48, %v2637_v49  ;;  %v2725_v25 = vpack.c.bf16 %v2613_v19, %v2605_v61  ;;  %v2691_v14 = vmax.f32 %v2531_v32, 0.0 }
 0x347   : > { %v2281_v10 = vadd.f32 %v5925_v16, %v7128_v47  ;;  %v2686_v61 = vmax.f32 %v2286_v54, 0.0  ;;  %v2523_v9 = vadd.f32 %v6021_v35, %v5744_v24  ;;  %v2276_v16 = vadd.f32 %v5901_v28, %v5736_v15 }
 0x348   : > { %2782 = vmatpush.bf16.msra.mxu1 %v2765_v46  ;;  %v2518_v35 = vadd.f32 %v6008_v55, %v5780_v60  ;;  %v2271_v54 = vadd.f32 %v5881_v29, %v5772_v51  ;;  %v2513_v55 = vadd.f32 %v5995_v58, %v5784_v8 }
 0x349   : > { %v6049_v31 = vpop.f32.mrf.mxu0  ;;  %v2532_v21 = vpop.f32.mrf.mxu2 }
 0x34a   : > { %v2533_v37 = vadd.f32 %v2532_v21, %v7124_v4  ;;  %v6082_v48 = vpop.f32.mrf.mxu3  ;;  %v2702_v21 = vmax.f32 %v2291_v53, 0.0 }
 0x34c   : > { %2783 = vmatpush.bf16.msra.mxu1 %v2757_v63  ;;  %v2774_v19 = vpack.c.bf16 %v2710_v38, %v2702_v21  ;;  %v2654_v21 = vmax.f32 %v2276_v16, 0.0 }
 0x350   : > { %2784 = vmatpush.bf16.msra.mxu1 %v2749_v62  ;;  %v2589_v62 = vmax.f32 %v2207_v30, 0.0 }
 0x351   : > { %v6058_v46 = vpop.f32.mrf.mxu0  ;;  %v2535_v57 = vpop.f32.mrf.mxu2 }
 0x352   : > { %v2536_v36 = vadd.f32 %v2535_v57, %v7122_v26  ;;  %v2717_v45 = vpack.c.bf16 %v2597_v41, %v2589_v62  ;;  %v2766_v41 = vpack.c.bf16 %v2694_v0, %v2686_v61  ;;  %v6110_v7 = vpop.f32.mrf.mxu3  ;;  %v2273_v62 = vadd.f32 %v5892_v44, %v5780_v60 }
 0x353   : > { %2436 = vmatmul.bf16.gmra.mxu1 %v5751_v2  ;;  %v2635_v61 = vmax.f32 %v2513_v55, 0.0 }
 0x354   : > { %2785 = vmatpush.bf16.msra.mxu1 %v2741_v20  ;;  %v2707_v49 = vmax.f32 %v2536_v36, 0.0  ;;  %v2699_v20 = vmax.f32 %v2533_v37, 0.0  ;;  %v2683_v36 = vmax.f32 %v2528_v23, 0.0  ;;  %v2521_v37 = vadd.f32 %v6014_v11, %v5736_v15 }
 0x355   : > { %v2516_v11 = vadd.f32 %v6001_v17, %v5772_v51  ;;  %v2651_v23 = vmax.f32 %v2518_v35, 0.0 }
 0x356   : > { %v2771_v53 = vpack.c.bf16 %v2699_v20, %v2691_v14  ;;  %v7129_v20 = vld [vmem:[#allocation36_spill] sm:$0xff]  ;;  %v2638_v14 = vmax.f32 %v2271_v54, 0.0  ;;  %v7137_v54 = vld [vmem:[#allocation15_spill] sm:$0xff] }
 0x358   : > { %2786 = vmatpush.bf16.msra.mxu1 %v2733_v6  ;;  %v2526_v6 = vadd.f32 %v6025_v43, %v7128_v47  ;;  %v2278_v43 = vadd.f32 %v5907_v18, %v5744_v24  ;;  %v2667_v18 = vmax.f32 %v2523_v9, 0.0 }
 0x359   : > { %v6074_v2 = vpop.f32.mrf.mxu0  ;;  %v2537_v63 = vpop.f32.mrf.mxu2 }
 0x35a   : > { %v2538_v59 = vadd.f32 %v2537_v63, %v7125_v1  ;;  %v2678_v63 = vmax.f32 %v2283_v52, 0.0  ;;  %v2662_v32 = vmax.f32 %v2278_v43, 0.0  ;;  %v7130_v52 = vld [vmem:[#allocation68_spill] sm:$0xff] }
 0x35b   : > { %v2511_v0 = vadd.f32 %v7130_v52, %v5821_v39  ;;  %v7140_v52 = vld [vmem:[#allocation14_spill] sm:$0xff] }
 0x35c   : > { %v2715_v57 = vmax.f32 %v2538_v59, 0.0  ;;  %2787 = vmatpush.bf16.msra.mxu1 %v2725_v25  ;;  %v2675_v59 = vmax.f32 %v2526_v6, 0.0  ;;  %v2670_v25 = vmax.f32 %v2281_v10, 0.0  ;;  %v2750_v17 = vpack.c.bf16 %v2662_v32, %v2654_v21  ;;  %v7131_v6 = vld [vmem:[#allocation35_spill] sm:$0xff]  ;;  %v7132_v10 = vld [vmem:[#allocation65_spill] sm:$0xff] }
 0x35d   : > { %v2266_v29 = vadd.f32 %v7131_v6, %v5821_v39  ;;  %v2508_v58 = vadd.f32 %v7132_v10, %v5835_v34  ;;  %v2627_v16 = vmax.f32 %v2511_v0, 0.0  ;;  %v7136_v32 = vld [vmem:[#allocation61_spill] sm:$0xff]  ;;  %v2258_v21 = vadd.f32 %v7137_v54, %v5811_v27  ;;  %v7141_v6 = vld [vmem:[#allocation56_spill] sm:$0xff] }
 0x35e   : > { %v2779_v42 = vpack.c.bf16 %v2715_v57, %v2707_v49  ;;  %v2763_v38 = vpack.c.bf16 %v2683_v36, %v2675_v59  ;;  %v2758_v49 = vpack.c.bf16 %v2678_v63, %v2670_v25  ;;  %v2659_v57 = vmax.f32 %v2521_v37, 0.0  ;;  %v7133_v36 = vld [vmem:[#allocation34_spill] sm:$0xff]  ;;  %v6134_v63 = vpop.f32.mrf.mxu3  ;;  %v7134_v37 = vld [vmem:[#allocation63_spill] sm:$0xff] }
 0x35f   : > { %v2506_v59 = vadd.f32 %v7134_v37, %v5788_v13  ;;  %v2256_v0 = vadd.f32 %v7140_v52, %v5807_v3  ;;  %v7145_v52 = vld [vmem:[#allocation50_spill] sm:$0xff] }
 0x360   : > { %v6095_v30 = vpop.f32.mrf.mxu1  ;;  %2788 = vmatpush.bf16.msra.mxu1 %v2717_v45  ;;  %2859 = vmatpush.bf16.msrb.mxu3 %v2779_v42  ;;  %v2755_v44 = vpack.c.bf16 %v2667_v18, %v2659_v57  ;;  %v2268_v42 = vadd.f32 %v7129_v20, %v5784_v8  ;;  %v2646_v45 = vmax.f32 %v2273_v62, 0.0  ;;  %v7135_v18 = vld [vmem:[#allocation39_spill] sm:$0xff]  ;;  %v2622_v62 = vmax.f32 %v2266_v29, 0.0 }
 0x361   : > { %v6097_v50 = vpop.f32.mrf.mxu0  ;;  %v2739_v57 = vpack.c.bf16 %v2635_v61, %v2627_v16  ;;  %v2340_v29 = vadd.f32 %v7141_v6, %v7122_v26  ;;  %v2590_v16 = vmax.f32 %v2256_v0, 0.0  ;;  %v2330_v0 = vadd.f32 %v7145_v52, %v7128_v47 }
 0x362   : > { %v2630_v43 = vmax.f32 %v2268_v42, 0.0  ;;  %v7139_v42 = vld [vmem:[#allocation59_spill] sm:$0xff] }
 0x363   : > { %2789 = vmatmul.bf16.vlgmr.msra.gmra.mxu1 %v6091_v12 }
 0x364   : > { %2794 = vmatpush.bf16.msrb.mxu1 %v2774_v19  ;;  %2860 = vmatpush.bf16.msrb.mxu3 %v2771_v53  ;;  %v2643_v19 = vmax.f32 %v2516_v11, 0.0  ;;  %v2263_v53 = vadd.f32 %v7133_v36, %v5835_v34  ;;  %v2619_v11 = vmax.f32 %v2508_v58, 0.0  ;;  %v2598_v58 = vmax.f32 %v2258_v21, 0.0  ;;  %v7142_v36 = vld [vmem:[#allocation54_spill] sm:$0xff] }
 0x366   : > { %v2747_v9 = vpack.c.bf16 %v2651_v23, %v2643_v19  ;;  %v2614_v55 = vmax.f32 %v2263_v53, 0.0  ;;  %v2734_v23 = vpack.c.bf16 %v2630_v43, %v2622_v62  ;;  %v2337_v53 = vadd.f32 %v7142_v36, %v7124_v4 }
 0x368   : > { %2795 = vmatpush.bf16.msrb.mxu1 %v2766_v41  ;;  %v6118_v33 = vpop.f32.mrf.mxu1  ;;  %2861 = vmatpush.bf16.msrb.mxu3 %v2763_v38  ;;  %v2742_v41 = vpack.c.bf16 %v2646_v45, %v2638_v14  ;;  %v2261_v38 = vadd.f32 %v7135_v18, %v5788_v13  ;;  %v2501_v45 = vadd.f32 %v7139_v42, %v5807_v3  ;;  %v6159_v18 = vpop.f32.mrf.mxu3 }
 0x369   : > { %v2483_v28 = vpop.f32.mrf.mxu0 }
 0x36a   : > { %v2606_v19 = vmax.f32 %v2261_v38, 0.0  ;;  %v2484_v38 = vadd.f32 %v2483_v28, %v7124_v4  ;;  %v2479_v28 = vadd.f32 %v6074_v2, %v5710_v56 }
 0x36c   : > { %2796 = vmatpush.bf16.msrb.mxu1 %v2758_v49  ;;  %2862 = vmatpush.bf16.msrb.mxu3 %v2755_v44  ;;  %v2503_v49 = vadd.f32 %v7136_v32, %v5811_v27  ;;  %v7138_v44 = vld [vmem:[#allocation58_spill] sm:$0xff] }
 0x36d   : > { %v2342_v20 = vadd.f32 %v7138_v44, %v7125_v1 }
 0x36e   : > { %v2603_v14 = vmax.f32 %v2503_v49, 0.0  ;;  %v2703_v49 = vmax.f32 %v2340_v29, 0.0  ;;  %v7146_v29 = vld [vmem:[#allocation49_spill] sm:$0xff] }
 0x36f   : > { %v2711_v43 = vmax.f32 %v2342_v20, 0.0  ;;  %v2695_v20 = vmax.f32 %v2337_v53, 0.0 }
 0x370   : > { %2797 = vmatpush.bf16.msrb.mxu1 %v2750_v17  ;;  %v6138_v25 = vpop.f32.mrf.mxu1  ;;  %2863 = vmatpush.bf16.msrb.mxu3 %v2747_v9  ;;  %v2611_v17 = vmax.f32 %v2506_v59, 0.0  ;;  %v2726_v9 = vpack.c.bf16 %v2614_v55, %v2606_v19  ;;  %v2718_v55 = vpack.c.bf16 %v2598_v58, %v2590_v16 }
 0x371   : > { %v2486_v35 = vpop.f32.mrf.mxu0  ;;  %v2775_v42 = vpack.c.bf16 %v2711_v43, %v2703_v49  ;;  %v2671_v43 = vmax.f32 %v2330_v0, 0.0 }
 0x372   : > { %v2731_v10 = vpack.c.bf16 %v2619_v11, %v2611_v17  ;;  %v2487_v61 = vadd.f32 %v2486_v35, %v7122_v26  ;;  %v7143_v35 = vld [vmem:[#allocation52_spill] sm:$0xff] }
 0x373   : > { %v2335_v32 = vadd.f32 %v7143_v35, %v7126_v22 }
 0x374   : > { %2798 = vmatpush.bf16.msrb.mxu1 %v2742_v41  ;;  %2864 = vmatpush.bf16.msrb.mxu3 %v2739_v57  ;;  %v2595_v41 = vmax.f32 %v2501_v45, 0.0  ;;  %v2482_v57 = vadd.f32 %v6097_v50, %v7126_v22  ;;  %v2706_v54 = vmax.f32 %v2487_v61, 0.0  ;;  %v2698_v45 = vmax.f32 %v2484_v38, 0.0 }
 0x375   : > { %v2687_v19 = vmax.f32 %v2335_v32, 0.0  ;;  %v2477_v50 = vadd.f32 %v6058_v46, %v7128_v47  ;;  %v2474_v61 = vadd.f32 %v6049_v31, %v5744_v24  ;;  %v7147_v46 = vld [vmem:[#allocation48_spill] sm:$0xff] }
 0x376   : > { %v2723_v11 = vpack.c.bf16 %v2603_v14, %v2595_v41  ;;  %v2690_v6 = vmax.f32 %v2482_v57, 0.0  ;;  %v2327_v14 = vadd.f32 %v7146_v29, %v5744_v24  ;;  %v2325_v53 = vadd.f32 %v7147_v46, %v5736_v15  ;;  %v6185_v41 = vpop.f32.mrf.mxu3  ;;  %v7149_v32 = vld [vmem:[#allocation80_spill] sm:$0xff]  ;;  %v7156_v46 = vld [vmem:[#allocation70_spill] sm:$0xff] }
 0x377   : > { %v2767_v58 = vpack.c.bf16 %v2695_v20, %v2687_v19  ;;  %v2674_v38 = vmax.f32 %v2477_v50, 0.0  ;;  %v2469_v49 = vadd.f32 %v7149_v32, %v5780_v60  ;;  %v2666_v31 = vmax.f32 %v2474_v61, 0.0  ;;  %v7151_v20 = vld [vmem:[#allocation76_spill] sm:$0xff]  ;;  %v7153_v19 = vld [vmem:[#allocation73_spill] sm:$0xff] }
 0x378   : > { %2799 = vmatpush.bf16.msrb.mxu1 %v2734_v23  ;;  %v6157_v37 = vpop.f32.mrf.mxu1  ;;  %2865 = vmatpush.bf16.msrb.mxu3 %v2731_v10  ;;  %v7144_v23 = vld [vmem:[#allocation51_spill] sm:$0xff]  ;;  %v2770_v36 = vpack.c.bf16 %v2698_v45, %v2690_v6  ;;  %v2655_v57 = vmax.f32 %v2325_v53, 0.0  ;;  %v2459_v50 = vadd.f32 %v7153_v19, %v5835_v34  ;;  %v2391_v53 = vadd.f32 %v7156_v46, %v7125_v1  ;;  %v7164_v19 = vld [vmem:[#allocation60_spill] sm:$0xff] }
 0x379   : > { %v2488_v59 = vpop.f32.mrf.mxu0  ;;  %v2332_v44 = vadd.f32 %v7144_v23, %v5710_v56 }
 0x37a   : > { %v2489_v62 = vadd.f32 %v2488_v59, %v7125_v1  ;;  %v7148_v59 = vld [vmem:[#allocation44_spill] sm:$0xff] }
 0x37b   : > { %v2679_v10 = vmax.f32 %v2332_v44, 0.0  ;;  %v2472_v16 = vadd.f32 %v7148_v59, %v5736_v15 }
 0x37c   : > { %2800 = vmatpush.bf16.msrb.mxu1 %v2726_v9  ;;  %v2714_v21 = vmax.f32 %v2489_v62, 0.0  ;;  %2866 = vmatpush.bf16.msrb.mxu3 %v2723_v11  ;;  %v2682_v9 = vmax.f32 %v2479_v28, 0.0  ;;  %v2663_v62 = vmax.f32 %v2327_v14, 0.0  ;;  %v2650_v28 = vmax.f32 %v2469_v49, 0.0  ;;  %v7160_v49 = vld [vmem:[#allocation66_spill] sm:$0xff] }
 0x37d   : > { %v2759_v35 = vpack.c.bf16 %v2679_v10, %v2671_v43  ;;  %v7154_v10 = vld [vmem:[#allocation41_spill] sm:$0xff] }
 0x37e   : > { %v2778_v17 = vpack.c.bf16 %v2714_v21, %v2706_v54  ;;  %v2762_v11 = vpack.c.bf16 %v2682_v9, %v2674_v38  ;;  %v7150_v54 = vld [vmem:[#allocation78_spill] sm:$0xff]  ;;  %v2751_v44 = vpack.c.bf16 %v2663_v62, %v2655_v57  ;;  %v2579_v29 = vpop.f32.mrf.mxu3  ;;  %v7157_v43 = vld [vmem:[#allocation69_spill] sm:$0xff]  ;;  %v7161_v57 = vld [vmem:[#allocation64_spill] sm:$0xff] }
 0x37f   : > { %2867 = vmatmul.bf16.vlgmr.msrb.gmra.mxu3 %v6091_v12  ;;  %v2467_v21 = vadd.f32 %v7150_v54, %v5772_v51  ;;  %v2454_v59 = vadd.f32 %v7157_v43, %v5811_v27  ;;  %v7158_v62 = vld [vmem:[#allocation33_spill] sm:$0xff]  ;;  %v2386_v54 = vadd.f32 %v7161_v57, %v7124_v4 }
 0x380   : > { %2801 = vmatpush.bf16.msrb.mxu1 %v2718_v55  ;;  %2846 = vmatpush.bf16.msrb.mxu2 %v2778_v17  ;;  %v6178_v2 = vpop.f32.mrf.mxu1  ;;  %v2658_v55 = vmax.f32 %v2472_v16, 0.0  ;;  %v7152_v17 = vld [vmem:[#allocation75_spill] sm:$0xff]  ;;  %v2618_v16 = vmax.f32 %v2459_v50, 0.0  ;;  %v2381_v50 = vadd.f32 %v7164_v19, %v5710_v56 }
 0x381   : > { %v2462_v52 = vadd.f32 %v7152_v17, %v5821_v39  ;;  %v2642_v0 = vmax.f32 %v2467_v21, 0.0  ;;  %v2712_v21 = vmax.f32 %v2391_v53, 0.0  ;;  %v7167_v53 = vld [vmem:[#allocation55_spill] sm:$0xff] }
 0x382   : > { %v2754_v45 = vpack.c.bf16 %v2666_v31, %v2658_v55  ;;  %v2452_v31 = vadd.f32 %v7160_v49, %v5807_v3  ;;  %v2602_v55 = vmax.f32 %v2454_v59, 0.0  ;;  %v2376_v43 = vadd.f32 %v7167_v53, %v5744_v24 }
 0x383   : > { %2802 = vmatmul.bf16.vlgmr.msrb.gmra.mxu1 %v6091_v12  ;;  %v2746_v14 = vpack.c.bf16 %v2650_v28, %v2642_v0  ;;  %v2626_v9 = vmax.f32 %v2462_v52, 0.0  ;;  %v2680_v59 = vmax.f32 %v2381_v50, 0.0  ;;  %v7171_v50 = vld [vmem:[#allocation38_spill] sm:$0xff] }
 0x384   : > { %2807 = vmatpush.bf16.msra.mxu1 %v2775_v42  ;;  %2847 = vmatpush.bf16.msrb.mxu2 %v2770_v36  ;;  %v2464_v42 = vadd.f32 %v7151_v20, %v5784_v8  ;;  %v7162_v20 = vld [vmem:[#allocation32_spill] sm:$0xff]  ;;  %v2594_v17 = vmax.f32 %v2452_v31, 0.0  ;;  %v2664_v49 = vmax.f32 %v2376_v43, 0.0 }
 0x386   : > { %v2634_v6 = vmax.f32 %v2464_v42, 0.0  ;;  %v7163_v42 = vld [vmem:[#allocation62_spill] sm:$0xff]  ;;  %v2581_v52 = vpop.f32.mrf.mxu3 }
 0x387   : > { %v2384_v28 = vadd.f32 %v7163_v42, %v7126_v22  ;;  %v7170_v42 = vld [vmem:[#allocation31_spill] sm:$0xff] }
 0x388   : > { %2808 = vmatpush.bf16.msra.mxu1 %v2767_v58  ;;  %2848 = vmatpush.bf16.msrb.mxu2 %v2762_v11  ;;  %v6193_v23 = vpop.f32.mrf.mxu1  ;;  %v7155_v58 = vld [vmem:[#allocation71_spill] sm:$0xff]  ;;  %v2738_v38 = vpack.c.bf16 %v2634_v6, %v2626_v9  ;;  %v2696_v6 = vmax.f32 %v2386_v54, 0.0 }
 0x389   : > { %v2457_v61 = vadd.f32 %v7155_v58, %v5788_v13  ;;  %v7165_v58 = vld [vmem:[#allocation45_spill] sm:$0xff]  ;;  %v2688_v46 = vmax.f32 %v2384_v28, 0.0 }
 0x38b   : > { %v2610_v11 = vmax.f32 %v2457_v61, 0.0  ;;  %v7166_v61 = vld [vmem:[#allocation57_spill] sm:$0xff] }
 0x38c   : > { %2809 = vmatpush.bf16.msra.mxu1 %v2759_v35  ;;  %2849 = vmatpush.bf16.msrb.mxu2 %v2754_v45  ;;  %v7159_v35 = vld [vmem:[#allocation67_spill] sm:$0xff]  ;;  %v2379_v9 = vadd.f32 %v7166_v61, %v7128_v47 }
 0x38d   : > { %v2389_v32 = vadd.f32 %v7159_v35, %v7122_v26 }
 0x38e   : > { %v2672_v35 = vmax.f32 %v2379_v9, 0.0  ;;  %v2584_v31 = vpop.f32.mrf.mxu3  ;;  %v7172_v9 = vld [vmem:[#allocation43_spill] sm:$0xff] }
 0x38f   : > { %v2704_v45 = vmax.f32 %v2389_v32, 0.0  ;;  %v2585_v28 = vadd.f32 %v2584_v31, %v7122_v26 }
 0x390   : > { %2810 = vmatpush.bf16.msra.mxu1 %v2751_v44  ;;  %2850 = vmatpush.bf16.msrb.mxu2 %v2746_v14  ;;  %v6204_v36 = vpop.f32.mrf.mxu1  ;;  %v2730_v44 = vpack.c.bf16 %v2618_v16, %v2610_v11  ;;  %v2768_v16 = vpack.c.bf16 %v2696_v6, %v2688_v46  ;;  %v2760_v11 = vpack.c.bf16 %v2680_v59, %v2672_v35 }
 0x391   : > { %v2776_v14 = vpack.c.bf16 %v2712_v21, %v2704_v45  ;;  %v2580_v6 = vadd.f32 %v2579_v29, %v7126_v22  ;;  %v2575_v46 = vadd.f32 %v6159_v18, %v7128_v47  ;;  %v2565_v35 = vadd.f32 %v6060_v5, %v5772_v51  ;;  %v7175_v5 = vld [vmem:[#allocation77_spill] sm:$0xff] }
 0x393   : > { %v2692_v53 = vmax.f32 %v2580_v6, 0.0 }
 0x394   : > { %2811 = vmatpush.bf16.msra.mxu1 %v7154_v10  ;;  %2851 = vmatpush.bf16.msrb.mxu2 %v2738_v38  ;;  %v2722_v10 = vpack.c.bf16 %v2602_v55, %v2594_v17  ;;  %v7168_v38 = vld [vmem:[#allocation53_spill] sm:$0xff]  ;;  %v2582_v17 = vadd.f32 %v2581_v52, %v7124_v4  ;;  %v2572_v52 = vadd.f32 %v6134_v63, %v5744_v24 }
 0x395   : > { %v2562_v63 = vadd.f32 %v6046_v40, %v5784_v8  ;;  %v7176_v40 = vld [vmem:[#allocation74_spill] sm:$0xff] }
 0x396   : > { %v2586_v55 = vpop.f32.mrf.mxu3 }
 0x398   : > { %2812 = vmatpush.bf16.msra.mxu1 %v7158_v62  ;;  %2852 = vmatpush.bf16.msrb.mxu2 %v2730_v44  ;;  %v6220_v0 = vpop.f32.mrf.mxu1  ;;  %v2374_v62 = vadd.f32 %v7168_v38, %v5736_v15  ;;  %v7169_v44 = vld [vmem:[#allocation47_spill] sm:$0xff]  ;;  %v2567_v38 = vadd.f32 %v6082_v48, %v5780_v60 }
 0x399   : > { %v7174_v48 = vld [vmem:[#allocation79_spill] sm:$0xff] }
 0x39a   : > { %v2656_v57 = vmax.f32 %v2374_v62, 0.0  ;;  %v2668_v62 = vmax.f32 %v2572_v52, 0.0 }
 0x39c   : > { %2813 = vmatpush.bf16.msra.mxu1 %v7162_v20  ;;  %2853 = vmatpush.bf16.msrb.mxu2 %v2722_v10  ;;  %v2752_v54 = vpack.c.bf16 %v2664_v49, %v2656_v57  ;;  %v2587_v20 = vadd.f32 %v2586_v55, %v7125_v1  ;;  %v2577_v10 = vadd.f32 %v6185_v41, %v5710_v56  ;;  %v2644_v55 = vmax.f32 %v2565_v35, 0.0 }
 0x39d   : > { %v2570_v41 = vadd.f32 %v6110_v7, %v5736_v15  ;;  %v7173_v7 = vld [vmem:[#allocation37_spill] sm:$0xff] }
 0x39e   : > { %v2716_v19 = vmax.f32 %v2587_v20, 0.0  ;;  %v2684_v59 = vmax.f32 %v2577_v10, 0.0  ;;  %v2636_v20 = vmax.f32 %v2562_v63, 0.0  ;;  %v7177_v10 = vld [vmem:[#allocation72_spill] sm:$0xff] }
 0x39f   : > { %2854 = vmatmul.bf16.vlgmr.msrb.gmra.mxu2 %v6091_v12  ;;  %v2660_v49 = vmax.f32 %v2570_v41, 0.0 }
 0x3a0   : > { %2814 = vmatpush.bf16.msra.mxu1 %v7165_v58  ;;  %v6233_v32 = vpop.f32.mrf.mxu1  ;;  %v2700_v58 = vmax.f32 %v2582_v17, 0.0 }
 0x3a1   : > { %v2756_v57 = vpack.c.bf16 %v2668_v62, %v2660_v49 }
 0x3a2   : > { %v2772_v29 = vpack.c.bf16 %v2700_v58, %v2692_v53  ;;  %v2550_v58 = vadd.f32 %v7177_v10, %v5807_v3 }
 0x3a3   : > { %2815 = vmatmul.bf16.vlgmr.msra.gmra.mxu1 %v6091_v12 }
 0x3a4   : > { %2820 = vmatpush.bf16.msrb.mxu1 %v2776_v14  ;;  %v2708_v14 = vmax.f32 %v2585_v28, 0.0  ;;  %v2555_v28 = vadd.f32 %v7175_v5, %v5788_v13  ;;  %v2596_v53 = vmax.f32 %v2550_v58, 0.0 }
 0x3a6   : > { %v2780_v61 = vpack.c.bf16 %v2716_v19, %v2708_v14 }
 0x3a8   : > { %2821 = vmatpush.bf16.msrb.mxu1 %v2768_v16  ;;  %v6235_v21 = vpop.f32.mrf.mxu1  ;;  %v2676_v16 = vmax.f32 %v2575_v46, 0.0 }
 0x3aa   : > { %v2764_v18 = vpack.c.bf16 %v2684_v59, %v2676_v16 }
 0x3ac   : > { %2822 = vmatpush.bf16.msrb.mxu1 %v2760_v11  ;;  %v2652_v11 = vmax.f32 %v2567_v38, 0.0 }
 0x3b0   : > { %2823 = vmatpush.bf16.msrb.mxu1 %v2752_v54  ;;  %v6241_v45 = vpop.f32.mrf.mxu1  ;;  %v2560_v54 = vadd.f32 %v7173_v7, %v5821_v39 }
 0x3b2   : > { %v2628_v17 = vmax.f32 %v2560_v54, 0.0  ;;  %v2425_v54 = vadd.f32 %v6235_v21, %v5744_v24 }
 0x3b4   : > { %2824 = vmatpush.bf16.msrb.mxu1 %v7169_v44  ;;  %v2557_v44 = vadd.f32 %v7174_v48, %v5835_v34  ;;  %v2740_v14 = vpack.c.bf16 %v2636_v20, %v2628_v17  ;;  %v2410_v17 = vadd.f32 %v6157_v37, %v5835_v34 }
 0x3b6   : > { %v2620_v6 = vmax.f32 %v2557_v44, 0.0  ;;  %v2418_v44 = vadd.f32 %v6204_v36, %v5772_v51 }
 0x3b8   : > { %2825 = vmatpush.bf16.msrb.mxu1 %v7170_v42  ;;  %v2429_v43 = vpop.f32.mrf.mxu1  ;;  %v2748_v42 = vpack.c.bf16 %v2652_v11, %v2644_v55 }
 0x3b9   : > { %v2430_v49 = vadd.f32 %v2429_v43, %v5710_v56  ;;  %v2420_v56 = vadd.f32 %v6220_v0, %v5780_v60  ;;  %v2665_v43 = vmax.f32 %v2425_v54, 0.0  ;;  %v2641_v60 = vmax.f32 %v2418_v44, 0.0 }
 0x3bc   : > { %2826 = vmatpush.bf16.msrb.mxu1 %v7171_v50  ;;  %v2552_v50 = vadd.f32 %v7176_v40, %v5811_v27  ;;  %v2408_v40 = vadd.f32 %v6138_v25, %v5788_v13 }
 0x3c0   : > { %2827 = vmatpush.bf16.msrb.mxu1 %v7172_v9  ;;  %v2432_v31 = vpop.f32.mrf.mxu1  ;;  %v2604_v9 = vmax.f32 %v2552_v50, 0.0 }
 0x3c1   : > { %v2433_v62 = vadd.f32 %v2432_v31, %v7126_v22  ;;  %v2423_v22 = vadd.f32 %v6233_v32, %v5736_v15  ;;  %v2649_v15 = vmax.f32 %v2420_v56, 0.0 }
 0x3c2   : > { %v2724_v59 = vpack.c.bf16 %v2604_v9, %v2596_v53 }
 0x3c3   : > { %2828 = vmatmul.bf16.vlgmr.msrb.gmra.mxu1 %v6091_v12  ;;  %v2689_v7 = vmax.f32 %v2433_v62, 0.0  ;;  %v2657_v20 = vmax.f32 %v2423_v22, 0.0  ;;  %v633_v62 = vpop.permute.xlu0 %632 }
 0x3c4   : > { %2872 = vmatpush.bf16.msra.mxu1 %v2780_v61  ;;  %v2612_v61 = vmax.f32 %v2555_v28, 0.0  ;;  %v2413_v28 = vadd.f32 %v6178_v2, %v5821_v39  ;;  %v2403_v2 = vadd.f32 %v6095_v30, %v5807_v3 }
 0x3c5   : > { %v2753_v5 = vpack.c.bf16 %v2665_v43, %v2657_v20 }
 0x3c6   : > { %v2732_v46 = vpack.c.bf16 %v2620_v6, %v2612_v61  ;;  %v2625_v50 = vmax.f32 %v2413_v28, 0.0  ;;  %v2617_v6 = vmax.f32 %v2410_v17, 0.0  ;;  %v2593_v58 = vmax.f32 %v2403_v2, 0.0 }
 0x3c8   : > { %2873 = vmatpush.bf16.msra.mxu1 %v2772_v29  ;;  %v2434_v19 = vpop.f32.mrf.mxu1 }
 0x3c9   : > { %v2435_v16 = vadd.f32 %v2434_v19, %v7124_v4  ;;  %v2681_v4 = vmax.f32 %v2430_v49, 0.0  ;;  %v2745_v19 = vpack.c.bf16 %v2649_v15, %v2641_v60 }
 0x3cb   : > { %v2697_v63 = vmax.f32 %v2435_v16, 0.0  ;;  %v643_v15 = vpop.permute.xlu0 %642 }
 0x3cc   : > { %2874 = vmatpush.bf16.msra.mxu1 %v2764_v18 }
 0x3d0   : > { %2875 = vmatpush.bf16.msra.mxu1 %v2756_v57  ;;  %v2437_v52 = vpop.f32.mrf.mxu1  ;;  %v2428_v57 = vadd.f32 %v6241_v45, %v7128_v47 }
 0x3d1   : > { %v2438_v29 = vadd.f32 %v2437_v52, %v7122_v26 }
 0x3d2   : > { %v2673_v31 = vmax.f32 %v2428_v57, 0.0 }
 0x3d3   : > { %v2705_v18 = vmax.f32 %v2438_v29, 0.0 }
 0x3d4   : > { %2876 = vmatpush.bf16.msra.mxu1 %v2748_v42  ;;  %v2761_v45 = vpack.c.bf16 %v2681_v4, %v2673_v31  ;;  %v2415_v42 = vadd.f32 %v6193_v23, %v5784_v8  ;;  %v2405_v23 = vadd.f32 %v6118_v33, %v5811_v27  ;;  %v7179_v4 = vld [vmem:[#allocation23_spill] sm:$0xff] }
 0x3d6   : > { %v2633_v51 = vmax.f32 %v2415_v42, 0.0  ;;  %v2601_v34 = vmax.f32 %v2405_v23, 0.0 }
 0x3d8   : > { %2877 = vmatpush.bf16.msra.mxu1 %v2740_v14  ;;  %v2439_v41 = vpop.f32.mrf.mxu1  ;;  %v2737_v39 = vpack.c.bf16 %v2633_v51, %v2625_v50  ;;  %v2609_v14 = vmax.f32 %v2408_v40, 0.0  ;;  %v2721_v25 = vpack.c.bf16 %v2601_v34, %v2593_v58  ;;  %v7181_v51 = vld [vmem:[#allocation25_spill] sm:$0xff] }
 0x3d9   : > { %v2440_v38 = vadd.f32 %v2439_v41, %v7125_v1  ;;  %v2769_v1 = vpack.c.bf16 %v2697_v63, %v2689_v7  ;;  %v7178_v63 = vld [vmem:[#allocation24_spill] sm:$0xff] }
 0x3da   : > { %v2729_v37 = vpack.c.bf16 %v2617_v6, %v2609_v14 }
 0x3db   : > { %v2713_v35 = vmax.f32 %v2440_v38, 0.0 }
 0x3dc   : > { %2878 = vmatpush.bf16.msra.mxu1 %v2732_v46 }
 0x3dd   : > { %v2777_v11 = vpack.c.bf16 %v2713_v35, %v2705_v18 }
 0x3df   : > { %2833 = vmatpush.bf16.msrb.mxu0 %v2777_v11  ;;  %v886_v11 = vadd.f32 %v7178_v63, %v633_v62  ;;  %v7183_v63 = vld [vmem:[#allocation22_spill] sm:$0xff] }
 0x3e0   : > { %2879 = vmatpush.bf16.msra.mxu1 %v2724_v59  ;;  %v2790_v26 = vpop.f32.mrf.mxu1 }
 0x3e1   : > { %v2885_v55 = vrot.slane %v2790_v26, 4 }
 0x3e3   : > { %2880 = vmatmul.bf16.vlgmr.msra.gmra.mxu1 %v6091_v12  ;;  %v2886_v48 = vmax.f32 %v2790_v26, %v2885_v55  ;;  %2834 = vmatpush.bf16.msrb.mxu0 %v2769_v1 }
 0x3e5   : > { %v2887_v47 = vrot.slane %v2886_v48, 2 }
 0x3e7   : > { %v2888_v24 = vmax.f32 %v2886_v48, %v2887_v47  ;;  %2835 = vmatpush.bf16.msrb.mxu0 %v2761_v45  ;;  %v940_v48 = vmax.f32 %v886_v11, 0.0 }
 0x3e8   : > { %v2792_v21 = vpop.f32.mrf.mxu1 }
 0x3e9   : > { %v2889_v32 = vrot.slane %v2888_v24, 1 }
 0x3eb   : > { %v2890_v0 = vmax.f32 %v2888_v24, %v2889_v32  ;;  %2836 = vmatpush.bf16.msrb.mxu0 %v2753_v5  ;;  %v7180_v5 = vld [vmem:[#allocation26_spill] sm:$0xff] }
 0x3ec   : > { %v891_v28 = vadd.f32 %v7180_v5, %v643_v15  ;;  %v7184_v15 = vld [vmem:[#allocation21_spill] sm:$0xff] }
 0x3ed   : > { %v2933_v36 = vsub.f32 %v2790_v26, %v2890_v0 }
 0x3ee   : > { %v942_v50 = vmax.f32 %v891_v28, 0.0 }
 0x3ef   : > { %v2941_v8 = vmul.f32 1.442695, %v2933_v36  ;;  %2837 = vmatpush.bf16.msrb.mxu0 %v2745_v19 }
 0x3f1   : > { %4360 = vpow2.f32 %v2941_v8 }
 0x3f3   : > { %2838 = vmatpush.bf16.msrb.mxu0 %v2737_v39 }
 0x3f7   : > { %v4361_v10 = vpop.eup %4360  ;;  %2839 = vmatpush.bf16.msrb.mxu0 %v2729_v37 }
 0x3f8   : > { %v2957_v13 = vrot.slane %v4361_v10, 4 }
 0x3fa   : > { %v2958_v61 = vadd.f32 %v4361_v10, %v2957_v13 }
 0x3fb   : > { %2840 = vmatpush.bf16.msrb.mxu0 %v2721_v25 }
 0x3fc   : > { %v2959_v9 = vrot.slane %v2958_v61, 2 }
 0x3fe   : > { %2841 = vmatmul.bf16.vlgmr.msrb.gmra.mxu0 %v6091_v12  ;;  %v2960_v33 = vadd.f32 %v2959_v9, %v2958_v61  ;;  %v628_v12 = vpop.permute.xlu2 %627 }
 0x3ff   : > { %v884_v55 = vadd.f32 %v7179_v4, %v628_v12 }
 0x400   : > { %v2803_v46 = vpop.f32.mrf.mxu1  ;;  %v2961_v52 = vrot.slane %v2960_v33, 1 }
 0x401   : > { %v2891_v27 = vrot.slane %v2803_v46, 4  ;;  %v939_v47 = vmax.f32 %v884_v55, 0.0 }
 0x402   : > { %v2962_v30 = vadd.f32 %v2961_v52, %v2960_v33  ;;  %v2868_v59 = vpop.f32.mrf.mxu3  ;;  %v653_v33 = vpop.permute.xlu0 %652 }
 0x403   : > { %v2892_v53 = vmax.f32 %v2803_v46, %v2891_v27  ;;  %v2921_v29 = vrot.slane %v2868_v59, 4  ;;  %v6304_v20 = vpack.c.bf16 %v940_v48, %v939_v47 }
 0x404   : > { %4362 = vrcp.f32 %v2962_v30 }
 0x405   : > { %v2893_v3 = vrot.slane %v2892_v53, 2  ;;  %v2922_v38 = vmax.f32 %v2868_v59, %v2921_v29  ;;  %v7182_v29 = vld [vmem:[#allocation13_spill] sm:$0xff] }
 0x406   : > { %v638_v0 = vpop.permute.xlu2 %637 }
 0x407   : > { %v2894_v41 = vmax.f32 %v2892_v53, %v2893_v3  ;;  %v2923_v35 = vrot.slane %v2922_v38, 2  ;;  %v889_v36 = vadd.f32 %v7181_v51, %v638_v0 }
 0x408   : > { %v2805_v16 = vpop.f32.mrf.mxu1 }
 0x409   : > { %v2895_v18 = vrot.slane %v2894_v41, 1  ;;  %v2924_v57 = vmax.f32 %v2922_v38, %v2923_v35  ;;  %v941_v39 = vmax.f32 %v889_v36, 0.0 }
 0x40a   : > { %v4363_v7 = vpop.eup %4362  ;;  %v2870_v54 = vpop.f32.mrf.mxu3 }
 0x40b   : > { %v2896_v49 = vmax.f32 %v2894_v41, %v2895_v18  ;;  %v3013_v1 = vmul.f32 %v4363_v7, %v4361_v10  ;;  %v2925_v22 = vrot.slane %v2924_v57, 1  ;;  %v6312_v34 = vpack.c.bf16 %v942_v50, %v941_v39 }
 0x40c   : > { %v896_v41 = vadd.f32 %v7182_v29, %v653_v33 }
 0x40d   : > { %v2934_v26 = vsub.f32 %v2803_v46, %v2896_v49  ;;  %v3021_v56 = vpack.c.bf16 %v3013_v1, %v3013_v1  ;;  %v2926_v43 = vmax.f32 %v2924_v57, %v2925_v22 }
 0x40e   : > { %v648_v18 = vpop.permute.xlu2 %647  ;;  %v944_v12 = vmax.f32 %v896_v41, 0.0 }
 0x40f   : > { %v2943_v31 = vmul.f32 1.442695, %v2934_v26  ;;  %v3056_v45 = vsel %vm3054_vm1, %v3021_v56, 0  ;;  %v2939_v44 = vsub.f32 %v2868_v59, %v2926_v43  ;;  %v894_v11 = vadd.f32 %v7183_v63, %v648_v18 }
 0x410   : > { %3086 = vmatpush.bf16.msra.mxu0 %v3056_v45 }
 0x411   : > { %4364 = vpow2.f32 %v2943_v31  ;;  %v2953_v21 = vmul.f32 1.442695, %v2939_v44  ;;  %v943_v4 = vmax.f32 %v894_v11, 0.0 }
 0x413   : > { %4160 = vmatmul.msk.bf16.vlgmr.msra.gmra.mxu0 %vm3029_vm2, %v6304_v20  ;;  %4366 = vpow2.f32 %v2953_v21  ;;  %v6323_v22 = vpack.c.bf16 %v944_v12, %v943_v4 }
 0x416   : > { %v658_v28 = vpop.permute.xlu2 %657 }
 0x417   : > { %v4365_v24 = vpop.eup %4364 }
 0x418   : > { %v2963_v42 = vrot.slane %v4365_v24, 4 }
 0x419   : > { %v6310_v6 = vpop.eup %4366 }
 0x41a   : > { %v2964_v32 = vadd.f32 %v4365_v24, %v2963_v42  ;;  %v2993_v58 = vrot.slane %v6310_v6, 4 }
 0x41c   : > { %v2965_v60 = vrot.slane %v2964_v32, 2  ;;  %v2994_v27 = vadd.f32 %v6310_v6, %v2993_v58 }
 0x41e   : > { %v2966_v40 = vadd.f32 %v2965_v60, %v2964_v32  ;;  %v2995_v62 = vrot.slane %v2994_v27, 2 }
 0x420   : > { %v2816_v17 = vpop.f32.mrf.mxu1  ;;  %v2967_v23 = vrot.slane %v2966_v40, 1  ;;  %v2996_v26 = vadd.f32 %v2995_v62, %v2994_v27  ;;  %v7187_v62 = vld [vmem:[#allocation19_spill] sm:$0xff] }
 0x421   : > { %v2897_v19 = vrot.slane %v2816_v17, 4 }
 0x422   : > { %v2968_v14 = vadd.f32 %v2967_v23, %v2966_v40  ;;  %v2855_v10 = vpop.f32.mrf.mxu2  ;;  %v2997_v31 = vrot.slane %v2996_v26, 1 }
 0x423   : > { %v2898_v8 = vmax.f32 %v2816_v17, %v2897_v19  ;;  %v2915_v13 = vrot.slane %v2855_v10, 4  ;;  %4161 = vmatmul.msk.bf16.gmra.mxu0 %vm3029_vm2, %v6312_v34 }
 0x424   : > { %4368 = vrcp.f32 %v2968_v14  ;;  %v2998_v43 = vadd.f32 %v2997_v31, %v2996_v26 }
 0x425   : > { %v2899_v2 = vrot.slane %v2898_v8, 2  ;;  %v2916_v9 = vmax.f32 %v2855_v10, %v2915_v13 }
 0x427   : > { %v2900_v37 = vmax.f32 %v2898_v8, %v2899_v2  ;;  %v2917_v53 = vrot.slane %v2916_v9, 2 }
 0x428   : > { %v2818_v25 = vpop.f32.mrf.mxu1 }
 0x429   : > { %v2901_v61 = vrot.slane %v2900_v37, 1  ;;  %v2918_v30 = vmax.f32 %v2916_v9, %v2917_v53 }
 0x42a   : > { %v4369_v52 = vpop.eup %4368  ;;  %v2857_v38 = vpop.f32.mrf.mxu2 }
 0x42b   : > { %v2902_v46 = vmax.f32 %v2900_v37, %v2901_v61  ;;  %v3014_v59 = vmul.f32 %v4369_v52, %v4365_v24  ;;  %v2919_v35 = vrot.slane %v2918_v30, 1  ;;  %v663_v24 = vpop.permute.xlu0 %662 }
 0x42c   : > { %v901_v32 = vadd.f32 %v7184_v15, %v663_v24 }
 0x42d   : > { %v2935_v3 = vsub.f32 %v2816_v17, %v2902_v46  ;;  %v3022_v49 = vpack.c.bf16 %v3014_v59, %v3014_v59  ;;  %v2920_v57 = vmax.f32 %v2918_v30, %v2919_v35  ;;  %v7185_v17 = vld [vmem:[#allocation20_spill] sm:$0xff]  ;;  %v7186_v59 = vld [vmem:[#allocation18_spill] sm:$0xff] }
 0x42e   : > { %v899_v51 = vadd.f32 %v7185_v17, %v658_v28  ;;  %v946_v50 = vmax.f32 %v901_v32, 0.0 }
 0x42f   : > { %v2945_v16 = vmul.f32 1.442695, %v2935_v3  ;;  %v3059_v7 = vsel %vm3054_vm1, %v3022_v49, 0  ;;  %v2938_v54 = vsub.f32 %v2855_v10, %v2920_v57 }
 0x430   : > { %3135 = vmatpush.bf16.msra.mxu2 %v3059_v7  ;;  %v945_v2 = vmax.f32 %v899_v51, 0.0 }
 0x431   : > { %4370 = vpow2.f32 %v2945_v16  ;;  %v2951_v55 = vmul.f32 1.442695, %v2938_v54  ;;  %v668_v16 = vpop.permute.xlu2 %667 }
 0x432   : > { %v6331_v58 = vpack.c.bf16 %v946_v50, %v945_v2  ;;  %v904_v18 = vadd.f32 %v7187_v62, %v668_v16  ;;  %v7190_v2 = vld [vmem:[#allocation30_spill] sm:$0xff] }
 0x433   : > { %4168 = vmatmul.msk.bf16.vlgmr.msra.gmra.mxu2 %vm3029_vm2, %v6304_v20  ;;  %4372 = vpow2.f32 %v2951_v55  ;;  %4162 = vmatmul.msk.bf16.gmra.mxu0 %vm3029_vm2, %v6323_v22  ;;  %v673_v30 = vpop.permute.xlu0 %672 }
 0x434   : > { %4374 = vrcp.f32 %v2998_v43  ;;  %v906_v29 = vadd.f32 %v7186_v59, %v673_v30  ;;  %v947_v57 = vmax.f32 %v904_v18, 0.0 }
 0x436   : > { %v948_v49 = vmax.f32 %v906_v29, 0.0  ;;  %v7192_v29 = vld [vmem:[#allocation16_spill] sm:$0xff] }
 0x437   : > { %v4371_v1 = vpop.eup %4370 }
 0x438   : > { %v2969_v48 = vrot.slane %v4371_v1, 4  ;;  %v6345_v26 = vpack.c.bf16 %v948_v49, %v947_v57 }
 0x439   : > { %v4373_v44 = vpop.eup %4372 }
 0x43a   : > { %v2970_v56 = vadd.f32 %v4371_v1, %v2969_v48  ;;  %v2987_v5 = vrot.slane %v4373_v44, 4  ;;  %v4375_v39 = vpop.eup %4374 }
 0x43b   : > { %v3019_v61 = vmul.f32 %v4375_v39, %v6310_v6  ;;  %v683_v43 = vpop.permute.xlu0 %682 }
 0x43c   : > { %v2971_v47 = vrot.slane %v2970_v56, 2  ;;  %v2988_v36 = vadd.f32 %v4373_v44, %v2987_v5 }
 0x43d   : > { %v3027_v52 = vpack.c.bf16 %v3019_v61, %v3019_v61 }
 0x43e   : > { %v2972_v42 = vadd.f32 %v2971_v47, %v2970_v56  ;;  %v2989_v8 = vrot.slane %v2988_v36, 2  ;;  %v7188_v47 = vld [vmem:[#allocation28_spill] sm:$0xff] }
 0x43f   : > { %v3074_v6 = vsel %vm3054_vm1, %v3027_v52, 0 }
 0x440   : > { %v2829_v45 = vpop.f32.mrf.mxu1  ;;  %v2973_v0 = vrot.slane %v2972_v42, 1  ;;  %v2990_v37 = vadd.f32 %v2989_v8, %v2988_v36 }
 0x441   : > { %v2903_v21 = vrot.slane %v2829_v45, 4 }
 0x442   : > { %v2974_v40 = vadd.f32 %v2973_v0, %v2972_v42  ;;  %v2991_v13 = vrot.slane %v2990_v37, 1  ;;  %v7189_v42 = vld [vmem:[#allocation27_spill] sm:$0xff] }
 0x443   : > { %v2904_v60 = vmax.f32 %v2829_v45, %v2903_v21  ;;  %4169 = vmatmul.msk.bf16.gmra.mxu2 %vm3029_vm2, %v6312_v34  ;;  %4163 = vmatmul.msk.bf16.gmra.mxu0 %vm3029_vm2, %v6331_v58  ;;  %v678_v21 = vpop.permute.xlu2 %677  ;;  %v693_v39 = vpop.permute.xlu0 %692 }
 0x444   : > { %4376 = vrcp.f32 %v2974_v40  ;;  %v2992_v9 = vadd.f32 %v2991_v13, %v2990_v37  ;;  %v909_v15 = vadd.f32 %v7189_v42, %v678_v21  ;;  %v7191_v13 = vld [vmem:[#allocation29_spill] sm:$0xff] }
 0x445   : > { %v2905_v19 = vrot.slane %v2904_v60, 2 }
 0x446   : > { %4378 = vrcp.f32 %v2992_v9  ;;  %v949_v0 = vmax.f32 %v909_v15, 0.0 }
 0x447   : > { %v2906_v23 = vmax.f32 %v2904_v60, %v2905_v19 }
 0x448   : > { %v2831_v14 = vpop.f32.mrf.mxu1 }
 0x449   : > { %v2907_v10 = vrot.slane %v2906_v23, 1  ;;  %v916_v14 = vadd.f32 %v7190_v2, %v693_v39 }
 0x44a   : > { %v4377_v46 = vpop.eup %4376 }
 0x44b   : > { %v2908_v25 = vmax.f32 %v2906_v23, %v2907_v10  ;;  %v3015_v33 = vmul.f32 %v4377_v46, %v4371_v1  ;;  %v688_v37 = vpop.permute.xlu2 %687  ;;  %v952_v9 = vmax.f32 %v916_v14, 0.0  ;;  %v703_v59 = vpop.permute.xlu0 %702 }
 0x44c   : > { %v4379_v38 = vpop.eup %4378 }
 0x44d   : > { %v2936_v27 = vsub.f32 %v2829_v45, %v2908_v25  ;;  %v3023_v3 = vpack.c.bf16 %v3015_v33, %v3015_v33  ;;  %v3018_v35 = vmul.f32 %v4379_v38, %v4373_v44  ;;  %v911_v45 = vadd.f32 %v7188_v47, %v683_v43 }
 0x44e   : > { %v914_v25 = vadd.f32 %v7191_v13, %v688_v37 }
 0x44f   : > { %v2947_v53 = vmul.f32 1.442695, %v2936_v27  ;;  %v3062_v41 = vsel %vm3054_vm1, %v3023_v3, 0  ;;  %v3026_v11 = vpack.c.bf16 %v3018_v35, %v3018_v35  ;;  %v950_v28 = vmax.f32 %v911_v45, 0.0 }
 0x450   : > { %3184 = vmatpush.bf16.msra.mxu3 %v3062_v41  ;;  %v951_v27 = vmax.f32 %v914_v25, 0.0  ;;  %v921_v41 = vadd.f32 %v7192_v29, %v703_v59 }
 0x451   : > { %4380 = vpow2.f32 %v2947_v53  ;;  %v3071_v12 = vsel %vm3054_vm1, %v3026_v11, 0  ;;  %v6355_v36 = vpack.c.bf16 %v950_v28, %v949_v0 }
 0x452   : > { %3331 = vmatpush.bf16.msrb.mxu2 %v3071_v12  ;;  %v6368_v53 = vpack.c.bf16 %v952_v9, %v951_v27  ;;  %v954_v35 = vmax.f32 %v921_v41, 0.0 }
 0x453   : > { %4176 = vmatmul.msk.bf16.vlgmr.msra.gmra.mxu3 %vm3029_vm2, %v6304_v20  ;;  %4170 = vmatmul.msk.bf16.gmra.mxu2 %vm3029_vm2, %v6323_v22  ;;  %v698_v16 = vpop.permute.xlu2 %697 }
 0x454   : > { %3380 = vmatpush.bf16.msrb.mxu3 %v3074_v6  ;;  %4164 = vmatmul.msk.bf16.gmra.mxu0 %vm3029_vm2, %v6345_v26  ;;  %v7193_v6 = vld [vmem:[#allocation17_spill] sm:$0xff] }
 0x455   : > { %v919_v38 = vadd.f32 %v7193_v6, %v698_v16 }
 0x457   : > { %v4381_v63 = vpop.eup %4380  ;;  %v953_v11 = vmax.f32 %v919_v38, 0.0 }
 0x458   : > { %v2975_v7 = vrot.slane %v4381_v63, 4 }
 0x459   : > { %v6380_v12 = vpack.c.bf16 %v954_v35, %v953_v11 }
 0x45a   : > { %v2976_v54 = vadd.f32 %v4381_v63, %v2975_v7 }
 0x45c   : > { %v2977_v4 = vrot.slane %v2976_v54, 2 }
 0x45e   : > { %v2978_v31 = vadd.f32 %v2977_v4, %v2976_v54 }
 0x460   : > { %v2881_v55 = vpop.f32.mrf.mxu1  ;;  %v2979_v56 = vrot.slane %v2978_v31, 1 }
 0x461   : > { %v2927_v1 = vrot.slane %v2881_v55, 4 }
 0x462   : > { %v2980_v24 = vadd.f32 %v2979_v56, %v2978_v31 }
 0x463   : > { %v2928_v48 = vmax.f32 %v2881_v55, %v2927_v1  ;;  %4177 = vmatmul.msk.bf16.gmra.mxu3 %vm3029_vm2, %v6312_v34  ;;  %4171 = vmatmul.msk.bf16.gmra.mxu2 %vm3029_vm2, %v6331_v58 }
 0x464   : > { %4382 = vrcp.f32 %v2980_v24  ;;  %4165 = vmatmul.msk.bf16.gmra.mxu0 %vm3029_vm2, %v6355_v36 }
 0x465   : > { %v2929_v44 = vrot.slane %v2928_v48, 2 }
 0x467   : > { %v2930_v32 = vmax.f32 %v2928_v48, %v2929_v44 }
 0x468   : > { %v2883_v5 = vpop.f32.mrf.mxu1 }
 0x469   : > { %v2931_v60 = vrot.slane %v2930_v32, 1 }
 0x46a   : > { %v4383_v51 = vpop.eup %4382 }
 0x46b   : > { %v2932_v17 = vmax.f32 %v2930_v32, %v2931_v60  ;;  %v3016_v40 = vmul.f32 %v4383_v51, %v4381_v63 }
 0x46d   : > { %v2940_v19 = vsub.f32 %v2881_v55, %v2932_v17  ;;  %v3024_v8 = vpack.c.bf16 %v3016_v40, %v3016_v40 }
 0x46f   : > { %v2955_v50 = vmul.f32 1.442695, %v2940_v19  ;;  %v3065_v23 = vsel %vm3054_vm1, %v3024_v8, 0 }
 0x470   : > { %3233 = vmatpush.bf16.msrb.mxu1 %v3065_v23 }
 0x471   : > { %4384 = vpow2.f32 %v2955_v50 }
 0x473   : > { %4184 = vmatmul.msk.bf16.vlgmr.msrb.gmra.mxu1 %vm3029_vm2, %v6304_v20  ;;  %4178 = vmatmul.msk.bf16.gmra.mxu3 %vm3029_vm2, %v6323_v22 }
 0x474   : > { %4172 = vmatmul.msk.bf16.gmra.mxu2 %vm3029_vm2, %v6345_v26  ;;  %4166 = vmatmul.msk.bf16.gmra.mxu0 %vm3029_vm2, %v6368_v53 }
 0x477   : > { %v4385_v10 = vpop.eup %4384 }
 0x478   : > { %v2999_v61 = vrot.slane %v4385_v10, 4 }
 0x47a   : > { %v3000_v46 = vadd.f32 %v4385_v10, %v2999_v61 }
 0x47b   : > { %v2842_v62 = vpop.f32.mrf.mxu0 }
 0x47c   : > { %v3001_v33 = vrot.slane %v3000_v46, 2  ;;  %v2909_v18 = vrot.slane %v2842_v62, 4 }
 0x47e   : > { %v3002_v52 = vadd.f32 %v3001_v33, %v3000_v46  ;;  %v2910_v63 = vmax.f32 %v2842_v62, %v2909_v18 }
 0x480   : > { %v3003_v3 = vrot.slane %v3002_v52, 1  ;;  %v2911_v7 = vrot.slane %v2910_v63, 2 }
 0x482   : > { %v3004_v30 = vadd.f32 %v3003_v3, %v3002_v52  ;;  %v2912_v4 = vmax.f32 %v2910_v63, %v2911_v7 }
 0x483   : > { %4185 = vmatmul.msk.bf16.gmra.mxu1 %vm3029_vm2, %v6312_v34  ;;  %4179 = vmatmul.msk.bf16.gmra.mxu3 %vm3029_vm2, %v6331_v58  ;;  %v2844_v55 = vpop.f32.mrf.mxu0 }
 0x484   : > { %4386 = vrcp.f32 %v3004_v30  ;;  %4173 = vmatmul.msk.bf16.gmra.mxu2 %vm3029_vm2, %v6355_v36  ;;  %4167 = vmatmul.msk.bf16.gmra.mxu0 %vm3029_vm2, %v6380_v12  ;;  %v2913_v31 = vrot.slane %v2912_v4, 1 }
 0x486   : > { %v2914_v48 = vmax.f32 %v2912_v4, %v2913_v31 }
 0x488   : > { %v2937_v56 = vsub.f32 %v2842_v62, %v2914_v48 }
 0x48a   : > { %v4387_v49 = vpop.eup %4386  ;;  %v2949_v43 = vmul.f32 1.442695, %v2937_v56 }
 0x48b   : > { %v3020_v57 = vmul.f32 %v4387_v49, %v4385_v10 }
 0x48c   : > { %4388 = vpow2.f32 %v2949_v43 }
 0x48d   : > { %v3028_v54 = vpack.c.bf16 %v3020_v57, %v3020_v57 }
 0x48f   : > { %v3077_v1 = vsel %vm3054_vm1, %v3028_v54, 0 }
 0x490   : > { %3429 = vmatpush.bf16.msra.mxu1 %v3077_v1  ;;  %v6389_v47 = vpop.f32.mrf.mxu0 }
 0x492   : > { %v4389_v45 = vpop.eup %4388 }
 0x493   : > { %4186 = vmatmul.msk.bf16.gmra.mxu1 %vm3029_vm2, %v6323_v22  ;;  %4180 = vmatmul.msk.bf16.gmra.mxu3 %vm3029_vm2, %v6345_v26  ;;  %v2981_v44 = vrot.slane %v4389_v45, 4 }
 0x494   : > { %4174 = vmatmul.msk.bf16.gmra.mxu2 %vm3029_vm2, %v6368_v53 }
 0x495   : > { %v2982_v24 = vadd.f32 %v4389_v45, %v2981_v44 }
 0x497   : > { %v2983_v21 = vrot.slane %v2982_v24, 2 }
 0x498   : > { %v6393_v42 = vpop.f32.mrf.mxu0 }
 0x499   : > { %v2984_v15 = vadd.f32 %v2983_v21, %v2982_v24 }
 0x49b   : > { %v2985_v32 = vrot.slane %v2984_v15, 1 }
 0x49d   : > { %v2986_v5 = vadd.f32 %v2985_v32, %v2984_v15 }
 0x49f   : > { %4390 = vrcp.f32 %v2986_v5 }
 0x4a0   : > { %v6399_v28 = vpop.f32.mrf.mxu0 }
 0x4a3   : > { %4187 = vmatmul.msk.bf16.gmra.mxu1 %vm3029_vm2, %v6331_v58  ;;  %4181 = vmatmul.msk.bf16.gmra.mxu3 %vm3029_vm2, %v6355_v36 }
 0x4a4   : > { %4175 = vmatmul.msk.bf16.gmra.mxu2 %vm3029_vm2, %v6380_v12 }
 0x4a5   : > { %v4391_v60 = vpop.eup %4390 }
 0x4a6   : > { %v3017_v0 = vmul.f32 %v4391_v60, %v4389_v45 }
 0x4a8   : > { %v6403_v17 = vpop.f32.mrf.mxu0  ;;  %v3025_v51 = vpack.c.bf16 %v3017_v0, %v3017_v0 }
 0x4aa   : > { %v3068_v19 = vsel %vm3054_vm1, %v3025_v51, 0 }
 0x4ab   : > { %3282 = vmatpush.bf16.msrb.mxu0 %v3068_v19 }
 0x4ae   : > { %4192 = vmatmul.msk.bf16.vlgmr.msrb.gmra.mxu0 %vm3029_vm2, %v6304_v20 }
 0x4b0   : > { %v6412_v40 = vpop.f32.mrf.mxu0 }
 0x4b3   : > { %4188 = vmatmul.msk.bf16.gmra.mxu1 %vm3029_vm2, %v6345_v26  ;;  %4182 = vmatmul.msk.bf16.gmra.mxu3 %vm3029_vm2, %v6368_v53 }
 0x4b4   : > { %4200 = vmatmul.msk.bf16.vlgmr.msrb.gmra.mxu2 %vm3029_vm2, %v6304_v20 }
 0x4b6   : > { %v6416_v50 = vpop.f32.mrf.mxu2 }
 0x4b8   : > { %v6418_v8 = vpop.f32.mrf.mxu0 }
 0x4be   : > { %v6422_v23 = vpop.f32.mrf.mxu2  ;;  %4193 = vmatmul.msk.bf16.gmra.mxu0 %vm3029_vm2, %v6312_v34 }
 0x4bf   : > { %v3476_v39 = vpack.c.bf16 %v6422_v23, %v6416_v50 }
 0x4c0   : > { %v6430_v2 = vpop.f32.mrf.mxu0 }
 0x4c3   : > { %4189 = vmatmul.msk.bf16.gmra.mxu1 %vm3029_vm2, %v6355_v36  ;;  %4183 = vmatmul.msk.bf16.gmra.mxu3 %vm3029_vm2, %v6380_v12 }
 0x4c4   : > { %4201 = vmatmul.msk.bf16.gmra.mxu2 %vm3029_vm2, %v6312_v34 }
 0x4c6   : > { %v6434_v14 = vpop.f32.mrf.mxu2 }
 0x4c8   : > { %v6436_v37 = vpop.f32.mrf.mxu0 }
 0x4ce   : > { %v6440_v10 = vpop.f32.mrf.mxu2  ;;  %4194 = vmatmul.msk.bf16.gmra.mxu0 %vm3029_vm2, %v6323_v22 }
 0x4cf   : > { %v3484_v13 = vpack.c.bf16 %v6440_v10, %v6434_v14 }
 0x4d1   : > { %v6448_v25 = vpop.f32.mrf.mxu0 }
 0x4d3   : > { %4190 = vmatmul.msk.bf16.gmra.mxu1 %vm3029_vm2, %v6368_v53  ;;  %4208 = vmatmul.msk.bf16.vlgmr.msrb.gmra.mxu3 %vm3029_vm2, %v6304_v20 }
 0x4d4   : > { %4202 = vmatmul.msk.bf16.gmra.mxu2 %vm3029_vm2, %v6323_v22 }
 0x4d6   : > { %v6450_v61 = vpop.f32.mrf.mxu3  ;;  %v6454_v9 = vpop.f32.mrf.mxu2 }
 0x4d9   : > { %v3110_v46 = vpop.f32.mrf.mxu0 }
 0x4da   : > { %v3507_v19 = vpack.c.bf16 %v3110_v46, %v6448_v25 }
 0x4de   : > { %v6456_v27 = vpop.f32.mrf.mxu3  ;;  %v6462_v52 = vpop.f32.mrf.mxu2  ;;  %4195 = vmatmul.msk.bf16.gmra.mxu0 %vm3029_vm2, %v6331_v58 }
 0x4df   : > { %v3477_v33 = vpack.c.bf16 %v6456_v27, %v6450_v61  ;;  %v3492_v3 = vpack.c.bf16 %v6462_v52, %v6454_v9 }
 0x4e1   : > { %v3113_v30 = vpop.f32.mrf.mxu0 }
 0x4e3   : > { %4191 = vmatmul.msk.bf16.gmra.mxu1 %vm3029_vm2, %v6380_v12  ;;  %4209 = vmatmul.msk.bf16.gmra.mxu3 %vm3029_vm2, %v6312_v34 }
 0x4e4   : > { %4203 = vmatmul.msk.bf16.gmra.mxu2 %vm3029_vm2, %v6331_v58 }
 0x4e6   : > { %v6470_v59 = vpop.f32.mrf.mxu3  ;;  %v6474_v29 = vpop.f32.mrf.mxu2 }
 0x4e9   : > { %v3115_v16 = vpop.f32.mrf.mxu0 }
 0x4ee   : > { %v6478_v6 = vpop.f32.mrf.mxu3  ;;  %v6484_v62 = vpop.f32.mrf.mxu2  ;;  %4196 = vmatmul.msk.bf16.gmra.mxu0 %vm3029_vm2, %v6345_v26 }
 0x4ef   : > { %v3485_v38 = vpack.c.bf16 %v6478_v6, %v6470_v59  ;;  %v3500_v18 = vpack.c.bf16 %v6484_v62, %v6474_v29 }
 0x4f0   : > { %v6476_v41 = vpop.f32.mrf.mxu1 }
 0x4f1   : > { %v3118_v63 = vpop.f32.mrf.mxu0 }
 0x4f3   : > { %4216 = vmatmul.msk.bf16.vlgmr.msra.gmra.mxu1 %vm3029_vm2, %v6304_v20  ;;  %4210 = vmatmul.msk.bf16.gmra.mxu3 %vm3029_vm2, %v6323_v22 }
 0x4f4   : > { %4204 = vmatmul.msk.bf16.gmra.mxu2 %vm3029_vm2, %v6345_v26 }
 0x4f6   : > { %v6496_v11 = vpop.f32.mrf.mxu3 }
 0x4f7   : > { %v6500_v20 = vpop.f32.mrf.mxu2 }
 0x4f8   : > { %v6492_v35 = vpop.f32.mrf.mxu1 }
 0x4f9   : > { %v3478_v49 = vpack.c.bf16 %v6492_v35, %v6476_v41  ;;  %v3120_v7 = vpop.f32.mrf.mxu0 }
 0x4fa   : > { %v3523_v32 = vpack.c.bf16 %v3120_v7, %v3118_v63 }
 0x4fe   : > { %v6504_v54 = vpop.f32.mrf.mxu3  ;;  %4197 = vmatmul.msk.bf16.gmra.mxu0 %vm3029_vm2, %v6355_v36 }
 0x4ff   : > { %v3493_v4 = vpack.c.bf16 %v6504_v54, %v6496_v11  ;;  %v6510_v55 = vpop.f32.mrf.mxu2 }
 0x500   : > { %v6502_v57 = vpop.f32.mrf.mxu1 }
 0x501   : > { %v3123_v48 = vpop.f32.mrf.mxu0 }
 0x503   : > { %4217 = vmatmul.msk.bf16.gmra.mxu1 %vm3029_vm2, %v6312_v34  ;;  %4211 = vmatmul.msk.bf16.gmra.mxu3 %vm3029_vm2, %v6331_v58 }
 0x504   : > { %4205 = vmatmul.msk.bf16.gmra.mxu2 %vm3029_vm2, %v6355_v36 }
 0x506   : > { %v6520_v56 = vpop.f32.mrf.mxu3 }
 0x507   : > { %v3162_v34 = vpop.f32.mrf.mxu2 }
 0x508   : > { %v6516_v1 = vpop.f32.mrf.mxu1 }
 0x509   : > { %v3486_v31 = vpack.c.bf16 %v6516_v1, %v6502_v57  ;;  %v3125_v45 = vpop.f32.mrf.mxu0 }
 0x50a   : > { %v3531_v24 = vpack.c.bf16 %v3125_v45, %v3123_v48  ;;  %v3499_v48 = vpack.c.bf16 %v6436_v37, %v6430_v2 }
 0x50c   : > { %3575 = vmatpush.bf16.msra.mxu0 %v3531_v24  ;;  %v6576_v24 = vld [vmem:[%s7194_s17] sm:$0xff] }
 0x50e   : > { %v6526_v44 = vpop.f32.mrf.mxu3  ;;  %4198 = vmatmul.msk.bf16.gmra.mxu0 %vm3029_vm2, %v6368_v53 }
 0x50f   : > { %v3501_v21 = vpack.c.bf16 %v6526_v44, %v6520_v56  ;;  %v3164_v15 = vpop.f32.mrf.mxu2 }
 0x510   : > { %v6524_v43 = vpop.f32.mrf.mxu1  ;;  %3576 = vmatpush.bf16.msra.mxu0 %v3523_v32 }
 0x513   : > { %4218 = vmatmul.msk.bf16.gmra.mxu1 %vm3029_vm2, %v6323_v22  ;;  %4212 = vmatmul.msk.bf16.gmra.mxu3 %vm3029_vm2, %v6345_v26  ;;  %v3515_v22 = vpack.c.bf16 %v3115_v16, %v3113_v30  ;;  %v3491_v30 = vpack.c.bf16 %v6418_v8, %v6412_v40  ;;  %v3475_v8 = vpack.c.bf16 %v6393_v42, %v6389_v47 }
 0x514   : > { %4206 = vmatmul.msk.bf16.gmra.mxu2 %vm3029_vm2, %v6368_v53 }
 0x515   : > { %3577 = vmatpush.bf16.msra.mxu0 %v3515_v22 }
 0x516   : > { %v6540_v0 = vpop.f32.mrf.mxu3 }
 0x517   : > { %v3167_v51 = vpop.f32.mrf.mxu2 }
 0x518   : > { %v6536_v5 = vpop.f32.mrf.mxu1 }
 0x519   : > { %v3494_v60 = vpack.c.bf16 %v6536_v5, %v6524_v43  ;;  %3578 = vmatpush.bf16.msra.mxu0 %v3507_v19 }
 0x51d   : > { %3579 = vmatpush.bf16.msra.mxu0 %v3499_v48  ;;  %v3516_v48 = vpack.c.bf16 %v3164_v15, %v3162_v34 }
 0x51e   : > { %v6547_v7 = vpop.f32.mrf.mxu3  ;;  %4199 = vmatmul.msk.bf16.gmra.mxu0 %vm3029_vm2, %v6380_v12 }
 0x51f   : > { %v3169_v45 = vpop.f32.mrf.mxu2 }
 0x520   : > { %v6545_v63 = vpop.f32.mrf.mxu1  ;;  %v3524_v42 = vpack.c.bf16 %v3169_v45, %v3167_v51  ;;  %v6600_v51 = vld [vmem:[%s7194_s17 + $0x8] sm:$0xff] }
 0x521   : > { %3580 = vmatpush.bf16.msra.mxu0 %v3491_v30 }
 0x523   : > { %4219 = vmatmul.msk.bf16.gmra.mxu1 %vm3029_vm2, %v6331_v58  ;;  %4213 = vmatmul.msk.bf16.gmra.mxu3 %vm3029_vm2, %v6355_v36  ;;  %v3483_v58 = vpack.c.bf16 %v6403_v17, %v6399_v28 }
 0x524   : > { %4207 = vmatmul.msk.bf16.gmra.mxu2 %vm3029_vm2, %v6380_v12 }
 0x525   : > { %3581 = vmatpush.bf16.msra.mxu0 %v3483_v58 }
 0x526   : > { %v3211_v37 = vpop.f32.mrf.mxu3 }
 0x527   : > { %v3172_v40 = vpop.f32.mrf.mxu2 }
 0x528   : > { %v6559_v25 = vpop.f32.mrf.mxu1 }
 0x529   : > { %v3502_v2 = vpack.c.bf16 %v6559_v25, %v6545_v63  ;;  %3582 = vmatpush.bf16.msra.mxu0 %v3475_v8 }
 0x52b   : > { %v6578_v22 = vpop.f32.mrf.mxu0 }
 0x52e   : > { %v3213_v16 = vpop.f32.mrf.mxu3  ;;  %3583 = vmatmul.bf16.vlgmr.msra.gmra.mxu0 %v6576_v24 }
 0x52f   : > { %v3174_v32 = vpop.f32.mrf.mxu2 }
 0x530   : > { %v6569_v46 = vpop.f32.mrf.mxu1  ;;  %v3532_v28 = vpack.c.bf16 %v3174_v32, %v3172_v40  ;;  %v3508_v40 = vpack.c.bf16 %v6510_v55, %v6500_v20 }
 0x532   : > { %3594 = vmatpush.bf16.msra.mxu2 %v3532_v28 }
 0x533   : > { %4220 = vmatmul.msk.bf16.gmra.mxu1 %vm3029_vm2, %v6345_v26  ;;  %4214 = vmatmul.msk.bf16.gmra.mxu3 %vm3029_vm2, %v6368_v53  ;;  %v6585_v26 = vpop.f32.mrf.mxu0 }
 0x536   : > { %v3216_v17 = vpop.f32.mrf.mxu3  ;;  %3595 = vmatpush.bf16.msra.mxu2 %v3524_v42 }
 0x537   : > { %v6587_v19 = vpop.f32.mrf.mxu2 }
 0x538   : > { %v6583_v47 = vpop.f32.mrf.mxu1 }
 0x53a   : > { %3596 = vmatpush.bf16.msra.mxu2 %v3516_v48 }
 0x53b   : > { %v6602_v34 = vpop.f32.mrf.mxu0 }
 0x53e   : > { %v3218_v8 = vpop.f32.mrf.mxu3  ;;  %3597 = vmatpush.bf16.msra.mxu2 %v3508_v40  ;;  %3588 = vmatmul.bf16.gmra.mxu0 %v6600_v51 }
 0x53f   : > { %v6604_v15 = vpop.f32.mrf.mxu2  ;;  %v3525_v14 = vpack.c.bf16 %v3218_v8, %v3216_v17 }
 0x540   : > { %v6591_v58 = vpop.f32.mrf.mxu1 }
 0x542   : > { %3598 = vmatpush.bf16.msra.mxu2 %v3500_v18 }
 0x543   : > { %4221 = vmatmul.msk.bf16.gmra.mxu1 %vm3029_vm2, %v6355_v36  ;;  %4215 = vmatmul.msk.bf16.gmra.mxu3 %vm3029_vm2, %v6380_v12  ;;  %v6617_v55 = vpop.f32.mrf.mxu0 }
 0x546   : > { %v3221_v20 = vpop.f32.mrf.mxu3  ;;  %3599 = vmatpush.bf16.msra.mxu2 %v3492_v3  ;;  %v6760_v3 = vpop.permute.xlu2 %3545 }
 0x547   : > { %v6619_v32 = vpop.f32.mrf.mxu2 }
 0x548   : > { %v3262_v36 = vpop.f32.mrf.mxu1 }
 0x549   : > { %v3518_v11 = vpack.c.bf16 %v3262_v36, %v6591_v58 }
 0x54a   : > { %3600 = vmatpush.bf16.msra.mxu2 %v3484_v13 }
 0x54b   : > { %v6631_v9 = vpop.f32.mrf.mxu0 }
 0x54e   : > { %v3223_v29 = vpop.f32.mrf.mxu3  ;;  %3601 = vmatpush.bf16.msra.mxu2 %v3476_v39  ;;  %v3509_v39 = vpack.c.bf16 %v6547_v7, %v6540_v0 }
 0x54f   : > { %v3533_v62 = vpack.c.bf16 %v3223_v29, %v3221_v20  ;;  %v6633_v52 = vpop.f32.mrf.mxu2 }
 0x550   : > { %v3265_v42 = vpop.f32.mrf.mxu1 }
 0x551   : > { %3613 = vmatpush.bf16.msra.mxu3 %v3533_v62  ;;  %3602 = vmatmul.bf16.vlgmr.msra.gmra.mxu2 %v6576_v24 }
 0x553   : > { %4222 = vmatmul.msk.bf16.gmra.mxu1 %vm3029_vm2, %v6368_v53  ;;  %v3517_v53 = vpack.c.bf16 %v3213_v16, %v3211_v37  ;;  %v6640_v18 = vpop.f32.mrf.mxu0 }
 0x555   : > { %3614 = vmatpush.bf16.msra.mxu3 %v3525_v14 }
 0x556   : > { %v6638_v13 = vpop.f32.mrf.mxu3 }
 0x557   : > { %v6642_v50 = vpop.f32.mrf.mxu2 }
 0x558   : > { %v3267_v10 = vpop.f32.mrf.mxu1 }
 0x559   : > { %3615 = vmatpush.bf16.msra.mxu3 %v3517_v53  ;;  %v3526_v56 = vpack.c.bf16 %v3267_v10, %v3265_v42 }
 0x55b   : > { %v6654_v37 = vpop.f32.mrf.mxu0 }
 0x55d   : > { %3616 = vmatpush.bf16.msra.mxu3 %v3509_v39 }
 0x55e   : > { %v6648_v17 = vpop.f32.mrf.mxu3 }
 0x55f   : > { %v6656_v16 = vpop.f32.mrf.mxu2 }
 0x560   : > { %v3270_v48 = vpop.f32.mrf.mxu1 }
 0x561   : > { %3617 = vmatpush.bf16.msra.mxu3 %v3501_v21  ;;  %3607 = vmatmul.bf16.gmra.mxu2 %v6600_v51 }
 0x563   : > { %4223 = vmatmul.msk.bf16.gmra.mxu1 %vm3029_vm2, %v6380_v12  ;;  %v6669_v20 = vpop.f32.mrf.mxu0 }
 0x564   : > { %v3503_v44 = vpack.c.bf16 %v6669_v20, %v6654_v37 }
 0x565   : > { %3618 = vmatpush.bf16.msra.mxu3 %v3493_v4 }
 0x566   : > { %v6667_v12 = vpop.f32.mrf.mxu3 }
 0x567   : > { %v6671_v29 = vpop.f32.mrf.mxu2 }
 0x568   : > { %v3272_v7 = vpop.f32.mrf.mxu1 }
 0x569   : > { %v3534_v8 = vpack.c.bf16 %v3272_v7, %v3270_v48  ;;  %3619 = vmatpush.bf16.msra.mxu3 %v3485_v38  ;;  %v3510_v38 = vpack.c.bf16 %v6583_v47, %v6569_v46 }
 0x56b   : > { %3632 = vmatpush.bf16.msrb.mxu1 %v3534_v8  ;;  %v6689_v59 = vpop.f32.mrf.mxu0 }
 0x56d   : > { %3620 = vmatpush.bf16.msra.mxu3 %v3477_v33 }
 0x56e   : > { %v6684_v54 = vpop.f32.mrf.mxu3 }
 0x56f   : > { %3633 = vmatpush.bf16.msrb.mxu1 %v3526_v56  ;;  %v6691_v6 = vpop.f32.mrf.mxu2 }
 0x570   : > { %v6678_v21 = vpop.f32.mrf.mxu1  ;;  %3621 = vmatmul.bf16.vlgmr.msra.gmra.mxu3 %v6576_v24 }
 0x573   : > { %3634 = vmatpush.bf16.msrb.mxu1 %v3518_v11  ;;  %v3306_v36 = vpop.f32.mrf.mxu0 }
 0x576   : > { %v6701_v58 = vpop.f32.mrf.mxu3 }
 0x577   : > { %3635 = vmatpush.bf16.msrb.mxu1 %v3510_v38  ;;  %v6706_v42 = vpop.f32.mrf.mxu2 }
 0x578   : > { %v6697_v27 = vpop.f32.mrf.mxu1 }
 0x57b   : > { %3636 = vmatpush.bf16.msrb.mxu1 %v3502_v2  ;;  %v3309_v63 = vpop.f32.mrf.mxu0 }
 0x57e   : > { %v6713_v47 = vpop.f32.mrf.mxu3 }
 0x57f   : > { %3637 = vmatpush.bf16.msrb.mxu1 %v3494_v60  ;;  %v6721_v25 = vpop.f32.mrf.mxu2 }
 0x580   : > { %v6711_v46 = vpop.f32.mrf.mxu1  ;;  %3626 = vmatmul.bf16.gmra.mxu3 %v6600_v51 }
 0x583   : > { %3638 = vmatpush.bf16.msrb.mxu1 %v3486_v31  ;;  %v3311_v2 = vpop.f32.mrf.mxu0 }
 0x584   : > { %v3519_v61 = vpack.c.bf16 %v3311_v2, %v3309_v63  ;;  %v6785_v63 = vpop.permute.xlu2 %3555 }
 0x586   : > { %v6730_v60 = vpop.f32.mrf.mxu3 }
 0x587   : > { %3639 = vmatpush.bf16.msrb.mxu1 %v3478_v49  ;;  %v3358_v14 = vpop.f32.mrf.mxu2 }
 0x588   : > { %v6726_v43 = vpop.f32.mrf.mxu1 }
 0x58a   : > { %3640 = vmatmul.bf16.vlgmr.msrb.gmra.mxu1 %v6576_v24 }
 0x58b   : > { %v3314_v41 = vpop.f32.mrf.mxu0 }
 0x58e   : > { %v6735_v1 = vpop.f32.mrf.mxu3 }
 0x58f   : > { %v3360_v35 = vpop.f32.mrf.mxu2 }
 0x590   : > { %v6733_v57 = vpop.f32.mrf.mxu1 }
 0x593   : > { %v3316_v39 = vpop.f32.mrf.mxu0 }
 0x594   : > { %v3527_v31 = vpack.c.bf16 %v3316_v39, %v3314_v41 }
 0x596   : > { %v6743_v53 = vpop.f32.mrf.mxu3 }
 0x597   : > { %v3363_v48 = vpop.f32.mrf.mxu2 }
 0x598   : > { %v6739_v49 = vpop.f32.mrf.mxu1 }
 0x59a   : > { %3645 = vmatmul.bf16.gmra.mxu1 %v6600_v51 }
 0x59b   : > { %v3319_v56 = vpop.f32.mrf.mxu0 }
 0x59e   : > { %v6748_v8 = vpop.f32.mrf.mxu3 }
 0x59f   : > { %v3365_v11 = vpop.f32.mrf.mxu2 }
 0x5a0   : > { %v6746_v7 = vpop.f32.mrf.mxu1 }
 0x5a3   : > { %v3321_v10 = vpop.f32.mrf.mxu0 }
 0x5a4   : > { %v3535_v4 = vpack.c.bf16 %v3321_v10, %v3319_v56  ;;  %v3528_v56 = vpack.c.bf16 %v3365_v11, %v3363_v48 }
 0x5a6   : > { %v6754_v5 = vpop.f32.mrf.mxu3  ;;  %3651 = vmatpush.bf16.msrb.mxu0 %v3535_v4  ;;  %v3511_v4 = vpack.c.bf16 %v3306_v36, %v6689_v59  ;;  %v7195_v36 = vpack.c.bf16 %v6640_v18, %v6631_v9  ;;  %v7198_v18 = vpack.c.bf16 %v6585_v26, %v6578_v22 }
 0x5a7   : > { %v3368_v40 = vpop.f32.mrf.mxu2 }
 0x5a8   : > { %v6750_v38 = vpop.f32.mrf.mxu1 }
 0x5aa   : > { %3652 = vmatpush.bf16.msrb.mxu0 %v3527_v31 }
 0x5ab   : > { %v3584_v30 = vpop.f32.mrf.mxu0 }
 0x5ac   : > { %v3585_v33 = vadd.f32 %v3584_v30, %v6760_v3 }
 0x5ae   : > { %v6758_v45 = vpop.f32.mrf.mxu3  ;;  %v3727_v23 = vmax.f32 %v3585_v33, 0.0  ;;  %3653 = vmatpush.bf16.msrb.mxu0 %v3519_v61 }
 0x5af   : > { %v3370_v0 = vpop.f32.mrf.mxu2 }
 0x5b0   : > { %v6756_v62 = vpop.f32.mrf.mxu1  ;;  %v3536_v28 = vpack.c.bf16 %v3370_v0, %v3368_v40  ;;  %3759 = vst [vmem:[%s6768_s15] sm:$0xff] %v3727_v23  ;;  %v6771_v40 = vpop.permute.xlu0 %3550  ;;  %v3520_v0 = vpack.c.bf16 %v3360_v35, %v3358_v14  ;;  %v3512_v23 = vpack.c.bf16 %v6721_v25, %v6706_v42  ;;  %v7197_v42 = vpack.c.bf16 %v6691_v6, %v6671_v29 }
 0x5b1   : > { %v7199_v14 = vpack.c.bf16 %v6656_v16, %v6642_v50  ;;  %v7200_v29 = vpack.c.bf16 %v6633_v52, %v6619_v32  ;;  %v7201_v50 = vpack.c.bf16 %v6604_v15, %v6587_v19  ;;  %v3521_v32 = vpack.c.bf16 %v6758_v45, %v6754_v5 }
 0x5b2   : > { %3670 = vmatpush.bf16.msrb.mxu2 %v3536_v28  ;;  %3654 = vmatpush.bf16.msrb.mxu0 %v3511_v4  ;;  %v3513_v4 = vpack.c.bf16 %v6748_v8, %v6743_v53  ;;  %v7202_v45 = vpack.c.bf16 %v6735_v1, %v6730_v60  ;;  %v7203_v53 = vpack.c.bf16 %v6713_v47, %v6701_v58 }
 0x5b3   : > { %v3586_v30 = vpop.f32.mrf.mxu0  ;;  %v7205_v1 = vpack.c.bf16 %v6648_v17, %v6638_v13  ;;  %v7206_v17 = vpack.c.bf16 %v6750_v38, %v6746_v7 }
 0x5b4   : > { %v3587_v28 = vadd.f32 %v3586_v30, %v6771_v40 }
 0x5b6   : > { %v3412_v31 = vpop.f32.mrf.mxu3  ;;  %3671 = vmatpush.bf16.msrb.mxu2 %v3528_v56  ;;  %v3735_v61 = vmax.f32 %v3587_v28, 0.0  ;;  %3655 = vmatpush.bf16.msrb.mxu0 %v3503_v44  ;;  %v7196_v44 = vpack.c.bf16 %v6617_v55, %v6602_v34 }
 0x5b8   : > { %v6763_v10 = vpop.f32.mrf.mxu1  ;;  %3767 = vst [vmem:[%s6768_s15 + $0x40] sm:$0xff] %v3735_v61  ;;  %v6801_v41 = vpop.permute.xlu0 %3560  ;;  %v7204_v61 = vpack.c.bf16 %v6684_v54, %v6667_v12 }
 0x5b9   : > { %v3514_v12 = vpack.c.bf16 %v6763_v10, %v6756_v62  ;;  %v7208_v10 = vpack.c.bf16 %v6726_v43, %v6711_v46 }
 0x5ba   : > { %3672 = vmatpush.bf16.msrb.mxu2 %v3520_v0  ;;  %3656 = vmatpush.bf16.msrb.mxu0 %v7195_v36 }
 0x5bb   : > { %v3589_v2 = vpop.f32.mrf.mxu0 }
 0x5bc   : > { %v3590_v37 = vadd.f32 %v3589_v2, %v6785_v63 }
 0x5be   : > { %v3414_v33 = vpop.f32.mrf.mxu3  ;;  %3673 = vmatpush.bf16.msrb.mxu2 %v3512_v23  ;;  %v3743_v20 = vmax.f32 %v3590_v37, 0.0  ;;  %3657 = vmatpush.bf16.msrb.mxu0 %v7196_v44  ;;  %v7207_v37 = vpack.c.bf16 %v6739_v49, %v6733_v57  ;;  %v7209_v44 = vpack.c.bf16 %v6697_v27, %v6678_v21 }
 0x5bf   : > { %v3529_v16 = vpack.c.bf16 %v3414_v33, %v3412_v31 }
 0x5c0   : > { %v6777_v59 = vpop.f32.mrf.mxu1  ;;  %3775 = vst [vmem:[%s6768_s15 + $0x80] sm:$0xff] %v3743_v20 }
 0x5c2   : > { %3674 = vmatpush.bf16.msrb.mxu2 %v7197_v42  ;;  %3658 = vmatpush.bf16.msrb.mxu0 %v7198_v18 }
 0x5c3   : > { %v3591_v35 = vpop.f32.mrf.mxu0 }
 0x5c4   : > { %v3592_v34 = vadd.f32 %v3591_v35, %v6801_v41 }
 0x5c5   : > { %3659 = vmatmul.bf16.vlgmr.msrb.gmra.mxu0 %v6576_v24 }
 0x5c6   : > { %v3417_v9 = vpop.f32.mrf.mxu3  ;;  %3675 = vmatpush.bf16.msrb.mxu2 %v7199_v14  ;;  %v3751_v55 = vmax.f32 %v3592_v34, 0.0 }
 0x5c8   : > { %v3458_v25 = vpop.f32.mrf.mxu1  ;;  %3783 = vst [vmem:[%s6768_s15 + $0xc0] sm:$0xff] %v3751_v55 }
 0x5c9   : > { %v3522_v58 = vpack.c.bf16 %v3458_v25, %v6777_v59 }
 0x5ca   : > { %3676 = vmatpush.bf16.msrb.mxu2 %v7200_v29 }
 0x5ce   : > { %v3419_v22 = vpop.f32.mrf.mxu3  ;;  %3677 = vmatpush.bf16.msrb.mxu2 %v7201_v50 }
 0x5cf   : > { %v3537_v26 = vpack.c.bf16 %v3419_v22, %v3417_v9 }
 0x5d0   : > { %v3461_v6 = vpop.f32.mrf.mxu1 }
 0x5d1   : > { %3689 = vmatpush.bf16.msrb.mxu3 %v3537_v26  ;;  %3678 = vmatmul.bf16.vlgmr.msrb.gmra.mxu2 %v6576_v24 }
 0x5d4   : > { %v3603_v48 = vpop.f32.mrf.mxu2 }
 0x5d5   : > { %3690 = vmatpush.bf16.msrb.mxu3 %v3529_v16  ;;  %v3604_v52 = vadd.f32 %v3603_v48, %v6760_v3  ;;  %3664 = vmatmul.bf16.gmra.mxu0 %v6600_v51 }
 0x5d7   : > { %v3728_v11 = vmax.f32 %v3604_v52, 0.0 }
 0x5d8   : > { %v3463_v39 = vpop.f32.mrf.mxu1 }
 0x5d9   : > { %3691 = vmatpush.bf16.msrb.mxu3 %v3521_v32  ;;  %3760 = vst [vmem:[%s6768_s15 + $0x8] sm:$0xff] %v3728_v11  ;;  %v3530_v60 = vpack.c.bf16 %v3463_v39, %v3461_v6 }
 0x5dc   : > { %v3605_v15 = vpop.f32.mrf.mxu2 }
 0x5dd   : > { %3692 = vmatpush.bf16.msrb.mxu3 %v3513_v4  ;;  %v3606_v56 = vadd.f32 %v3605_v15, %v6771_v40 }
 0x5df   : > { %v3736_v31 = vmax.f32 %v3606_v56, 0.0 }
 0x5e0   : > { %v3466_v19 = vpop.f32.mrf.mxu1 }
 0x5e1   : > { %3693 = vmatpush.bf16.msrb.mxu3 %v7202_v45  ;;  %3768 = vst [vmem:[%s6768_s15 + $0x48] sm:$0xff] %v3736_v31  ;;  %3683 = vmatmul.bf16.gmra.mxu2 %v6600_v51 }
 0x5e4   : > { %v3608_v30 = vpop.f32.mrf.mxu2 }
 0x5e5   : > { %3694 = vmatpush.bf16.msrb.mxu3 %v7203_v53  ;;  %v3609_v0 = vadd.f32 %v3608_v30, %v6785_v63 }
 0x5e7   : > { %v3744_v28 = vmax.f32 %v3609_v0, 0.0 }
 0x5e8   : > { %v3468_v5 = vpop.f32.mrf.mxu1 }
 0x5e9   : > { %v3538_v8 = vpack.c.bf16 %v3468_v5, %v3466_v19  ;;  %3695 = vmatpush.bf16.msrb.mxu3 %v7204_v61  ;;  %3776 = vst [vmem:[%s6768_s15 + $0x88] sm:$0xff] %v3744_v28 }
 0x5eb   : > { %3708 = vmatpush.bf16.msra.mxu1 %v3538_v8 }
 0x5ec   : > { %v3610_v47 = vpop.f32.mrf.mxu2 }
 0x5ed   : > { %3696 = vmatpush.bf16.msrb.mxu3 %v7205_v1  ;;  %v3611_v23 = vadd.f32 %v3610_v47, %v6801_v41 }
 0x5ef   : > { %3709 = vmatpush.bf16.msra.mxu1 %v3530_v60  ;;  %v3752_v33 = vmax.f32 %v3611_v23, 0.0 }
 0x5f0   : > { %3697 = vmatmul.bf16.vlgmr.msrb.gmra.mxu3 %v6576_v24 }
 0x5f1   : > { %3784 = vst [vmem:[%s6768_s15 + $0xc8] sm:$0xff] %v3752_v33 }
 0x5f3   : > { %3710 = vmatpush.bf16.msra.mxu1 %v3522_v58  ;;  %v3622_v54 = vpop.f32.mrf.mxu3 }
 0x5f4   : > { %v3623_v36 = vadd.f32 %v3622_v54, %v6760_v3 }
 0x5f6   : > { %v3729_v13 = vmax.f32 %v3623_v36, 0.0 }
 0x5f7   : > { %3711 = vmatpush.bf16.msra.mxu1 %v3514_v12 }
 0x5f8   : > { %3761 = vst [vmem:[%s6768_s15 + $0x10] sm:$0xff] %v3729_v13 }
 0x5fb   : > { %3712 = vmatpush.bf16.msra.mxu1 %v7206_v17  ;;  %v3624_v59 = vpop.f32.mrf.mxu3 }
 0x5fc   : > { %v3625_v2 = vadd.f32 %v3624_v59, %v6771_v40 }
 0x5fe   : > { %v3737_v62 = vmax.f32 %v3625_v2, 0.0 }
 0x5ff   : > { %3713 = vmatpush.bf16.msra.mxu1 %v7207_v37 }
 0x600   : > { %3769 = vst [vmem:[%s6768_s15 + $0x50] sm:$0xff] %v3737_v62  ;;  %3702 = vmatmul.bf16.gmra.mxu3 %v6600_v51 }
 0x603   : > { %3714 = vmatpush.bf16.msra.mxu1 %v7208_v10  ;;  %v3627_v20 = vpop.f32.mrf.mxu3 }
 0x604   : > { %v3628_v7 = vadd.f32 %v3627_v20, %v6785_v63 }
 0x606   : > { %v3745_v49 = vmax.f32 %v3628_v7, 0.0 }
 0x607   : > { %v3641_v38 = vpop.f32.mrf.mxu1  ;;  %3715 = vmatpush.bf16.msra.mxu1 %v7209_v44 }
 0x608   : > { %v3642_v57 = vadd.f32 %v3641_v38, %v6760_v3  ;;  %3777 = vst [vmem:[%s6768_s15 + $0x90] sm:$0xff] %v3745_v49 }
 0x60a   : > { %v3730_v42 = vmax.f32 %v3642_v57, 0.0  ;;  %3716 = vmatmul.bf16.vlgmr.msra.gmra.mxu1 %v6576_v24 }
 0x60b   : > { %v3629_v46 = vpop.f32.mrf.mxu3 }
 0x60c   : > { %3762 = vst [vmem:[%s6768_s15 + $0x18] sm:$0xff] %v3730_v42  ;;  %v3630_v43 = vadd.f32 %v3629_v46, %v6801_v41 }
 0x60e   : > { %v3753_v18 = vmax.f32 %v3630_v43, 0.0 }
 0x60f   : > { %v3643_v25 = vpop.f32.mrf.mxu1 }
 0x610   : > { %v3644_v9 = vadd.f32 %v3643_v25, %v6771_v40  ;;  %3785 = vst [vmem:[%s6768_s15 + $0xd0] sm:$0xff] %v3753_v18 }
 0x612   : > { %v3738_v21 = vmax.f32 %v3644_v9, 0.0 }
 0x614   : > { %3770 = vst [vmem:[%s6768_s15 + $0x58] sm:$0xff] %v3738_v21 }
 0x617   : > { %v3646_v27 = vpop.f32.mrf.mxu1 }
 0x618   : > { %v3647_v14 = vadd.f32 %v3646_v27, %v6785_v63 }
 0x61a   : > { %v3746_v35 = vmax.f32 %v3647_v14, 0.0  ;;  %3721 = vmatmul.bf16.gmra.mxu1 %v6600_v51 }
 0x61c   : > { %3778 = vst [vmem:[%s6768_s15 + $0x98] sm:$0xff] %v3746_v35 }
 0x61f   : > { %v3648_v24 = vpop.f32.mrf.mxu1 }
 0x620   : > { %v3649_v34 = vadd.f32 %v3648_v24, %v6801_v41 }
 0x622   : > { %v3754_v55 = vmax.f32 %v3649_v34, 0.0 }
 0x624   : > { %3786 = vst [vmem:[%s6768_s15 + $0xd8] sm:$0xff] %v3754_v55 }
 0x642   : > { %v3660_v29 = vpop.f32.mrf.mxu0 }
 0x643   : > { %v3661_v6 = vadd.f32 %v3660_v29, %v6760_v3 }
 0x645   : > { %v3731_v22 = vmax.f32 %v3661_v6, 0.0 }
 0x647   : > { %3763 = vst [vmem:[%s6768_s15 + $0x20] sm:$0xff] %v3731_v22 }
 0x64a   : > { %v3662_v26 = vpop.f32.mrf.mxu0 }
 0x64b   : > { %v3663_v50 = vadd.f32 %v3662_v26, %v6771_v40 }
 0x64d   : > { %v3739_v16 = vmax.f32 %v3663_v50, 0.0 }
 0x64f   : > { %3771 = vst [vmem:[%s6768_s15 + $0x60] sm:$0xff] %v3739_v16 }
 0x652   : > { %v3665_v48 = vpop.f32.mrf.mxu0 }
 0x653   : > { %v3666_v52 = vadd.f32 %v3665_v48, %v6785_v63 }
 0x654   : > { %v3679_v51 = vpop.f32.mrf.mxu2 }
 0x655   : > { %v3680_v39 = vadd.f32 %v3679_v51, %v6760_v3  ;;  %v3747_v11 = vmax.f32 %v3666_v52, 0.0 }
 0x657   : > { %v3732_v32 = vmax.f32 %v3680_v39, 0.0  ;;  %3779 = vst [vmem:[%s6768_s15 + $0xa0] sm:$0xff] %v3747_v11 }
 0x659   : > { %3764 = vst [vmem:[%s6768_s15 + $0x28] sm:$0xff] %v3732_v32 }
 0x65a   : > { %v3667_v15 = vpop.f32.mrf.mxu0 }
 0x65b   : > { %v3668_v31 = vadd.f32 %v3667_v15, %v6801_v41 }
 0x65c   : > { %v3681_v4 = vpop.f32.mrf.mxu2 }
 0x65d   : > { %v3682_v19 = vadd.f32 %v3681_v4, %v6771_v40  ;;  %v3755_v45 = vmax.f32 %v3668_v31, 0.0 }
 0x65f   : > { %v3740_v56 = vmax.f32 %v3682_v19, 0.0  ;;  %3787 = vst [vmem:[%s6768_s15 + $0xe0] sm:$0xff] %v3755_v45 }
 0x661   : > { %3772 = vst [vmem:[%s6768_s15 + $0x68] sm:$0xff] %v3740_v56 }
 0x664   : > { %v3684_v5 = vpop.f32.mrf.mxu2 }
 0x665   : > { %v3685_v53 = vadd.f32 %v3684_v5, %v6785_v63 }
 0x667   : > { %v3748_v8 = vmax.f32 %v3685_v53, 0.0 }
 0x669   : > { %3780 = vst [vmem:[%s6768_s15 + $0xa8] sm:$0xff] %v3748_v8 }
 0x66c   : > { %v3686_v30 = vpop.f32.mrf.mxu2 }
 0x66d   : > { %v3687_v0 = vadd.f32 %v3686_v30, %v6801_v41 }
 0x66f   : > { %v3756_v28 = vmax.f32 %v3687_v0, 0.0 }
 0x671   : > { %3788 = vst [vmem:[%s6768_s15 + $0xe8] sm:$0xff] %v3756_v28 }
 0x673   : > { %v3698_v61 = vpop.f32.mrf.mxu3 }
 0x674   : > { %v3699_v60 = vadd.f32 %v3698_v61, %v6760_v3 }
 0x676   : > { %v3733_v1 = vmax.f32 %v3699_v60, 0.0 }
 0x678   : > { %3765 = vst [vmem:[%s6768_s15 + $0x30] sm:$0xff] %v3733_v1 }
 0x67b   : > { %v3700_v58 = vpop.f32.mrf.mxu3 }
 0x67c   : > { %v3701_v47 = vadd.f32 %v3700_v58, %v6771_v40 }
 0x67e   : > { %v3741_v23 = vmax.f32 %v3701_v47, 0.0 }
 0x680   : > { %3773 = vst [vmem:[%s6768_s15 + $0x70] sm:$0xff] %v3741_v23 }
 0x683   : > { %v3703_v33 = vpop.f32.mrf.mxu3 }
 0x684   : > { %v3704_v12 = vadd.f32 %v3703_v33, %v6785_v63 }
 0x686   : > { %v3749_v13 = vmax.f32 %v3704_v12, 0.0 }
 0x687   : > { %v3717_v54 = vpop.f32.mrf.mxu1 }
 0x688   : > { %v3718_v36 = vadd.f32 %v3717_v54, %v6760_v3  ;;  %3781 = vst [vmem:[%s6768_s15 + $0xb0] sm:$0xff] %v3749_v13 }
 0x68a   : > { %v3734_v17 = vmax.f32 %v3718_v36, 0.0 }
 0x68b   : > { %v3705_v59 = vpop.f32.mrf.mxu3 }
 0x68c   : > { %3766 = vst [vmem:[%s6768_s15 + $0x38] sm:$0xff] %v3734_v17  ;;  %v3706_v2 = vadd.f32 %v3705_v59, %v6801_v41 }
 0x68e   : > { %v3757_v10 = vmax.f32 %v3706_v2, 0.0 }
 0x68f   : > { %v3719_v37 = vpop.f32.mrf.mxu1 }
 0x690   : > { %v3720_v62 = vadd.f32 %v3719_v37, %v6771_v40  ;;  %3789 = vst [vmem:[%s6768_s15 + $0xf0] sm:$0xff] %v3757_v10 }
 0x692   : > { %v3742_v20 = vmax.f32 %v3720_v62, 0.0 }
 0x694   : > { %3774 = vst [vmem:[%s6768_s15 + $0x78] sm:$0xff] %v3742_v20 }
 0x697   : > { %v3722_v7 = vpop.f32.mrf.mxu1 }
 0x698   : > { %v3723_v3 = vadd.f32 %v3722_v7, %v6785_v63 }
 0x69a   : > { %v3750_v38 = vmax.f32 %v3723_v3, 0.0 }
 0x69c   : > { %3782 = vst [vmem:[%s6768_s15 + $0xb8] sm:$0xff] %v3750_v38 }
 0x69f   : > { %v3724_v40 = vpop.f32.mrf.mxu1 }
 0x6a0   : > { %v3725_v44 = vadd.f32 %v3724_v40, %v6801_v41 }
 0x6a2   : > { %v3758_v57 = vmax.f32 %v3725_v44, 0.0 }
 0x6a4   : > { %3790 = vst [vmem:[%s6768_s15 + $0xf8] sm:$0xff] %v3758_v57 }
 0x6a5   : > { %4457 = shalt.err (!%p4454_p0)
}
 0x6a6   : > { %s4517_s25 = smov 1024   ;;  %s4518_s15 = smov 64  }
 0x6a7   : > { %4292 = dma.vmem_to_hbm [thread:$0]  (%p4635_p9), %s3807_s21, 4096, %s3809_s10, %s3792_s13, %s4517_s25, %s4517_s25, %s4518_s15  }
 0x6a8 PF: > { %s7212_s30 = sld [smem:[#allocation8_spill]]  ;;  %p4299_p1 = pnand %p3911_p12, %p4642_p11 }
 0x6aa   : > { %p4300_p2 = pneg %p4299_p1 }
 0x6ae   : > { %s3823_s0 = sand.u32 1, %s7212_s30  }
 0x6af   : > { %s3824_s19 = scalar_lea.sflag [#allocation4], %s3823_s0 }
 0x6b0   : > { %4487 = dma.done.wait (%p4300_p2), %s3824_s19, 4096  }
 0x6b1   : > { %4489 = vsyncadd (%p4300_p2), %s3824_s19, 4294963200  ;;  %s28_s26 = sadd.s32 1, %s4512_s26   ;;  %s7213_s16 = sld [smem:[#allocation12_spill]] }
 0x6b2   : > { %p25_p3 = scmp.ge.s32.totalorder %s28_s26, 4   ;;  %s7214_s24 = sld [smem:[#allocation9_spill]] }
 0x6b3   : > { %s7215_s25 = sld [smem:[#allocation10_spill]]  ;;  %s7216_s21 = smov %s4496_s22 }
 0x6b4   : > { %s7217_s22 = smov %s4500_s23  ;;  %27 = sbr.rel (!%p25_p3) target bundleno = 10 (0xa), region = 116 }
 0x6b7   : > { %s7218_s23 = smov %s7213_s16 }
 0x6b9   :  { %3830 = vsyncpa [#allocation3], 1 }
 0x6ba   :  { %3832 = vsyncpa [#allocation3 + $0x1], 1 }
 0x6bb   :  { %3833 = vsyncpa [#allocation4], 1 }
 0x6bc   :  { %3835 = vsyncpa [#allocation4 + $0x1], 1 }

</bundles_post_ra>
